<compile_context>
chip_gen: v7x
topology: tpu7x:2x2x1
jax: 0.10.0
libtpu: 0.0.40
codegen_flags: <defaults>
</compile_context>

<pallas_src>
import jax
import jax.numpy as jnp
from jax.experimental import pallas as pl
from jax.experimental.pallas import tpu as pltpu


# ----------------------------------------------------------------------------
# Fused Encoder_FF kernel
#   x_tb_ref   : (T*B, F)  time-major rows (t, b) of the input
#   x_flat_ref : (B, T*F)  torch.flatten(start_dim=1) layout of x
#   w*i_ref    : (Din, 4H) transposed PyTorch weight_ih_l*
#   w*h_ref    : (H,   4H) transposed PyTorch weight_hh_l*
#   b*_ref     : (1,   4H) b_ih + b_hh
#   wfx_ref    : (T*F, O)  fc columns acting on x  (row order (t, f))
#   wfl_ref    : (T*L, O)  fc columns acting on latent (row order (t, l))
#   bf_ref     : (1, O)
#   out_ref    : (B, O)
# Gate order follows PyTorch: [i, f, g, o]
# ----------------------------------------------------------------------------
def fused_encoder_kernel(
        x_tb_ref, x_flat_ref,
        w1i_ref, w1h_ref, b1_ref,      # lstm1 layer 0
        w2i_ref, w2h_ref, b2_ref,      # lstm1 layer 1
        w3i_ref, w3h_ref, b3_ref,      # lstm2 layer 0
        wfx_ref, wfl_ref, bf_ref,      # fc (split into x / latent column groups)
        out_ref,
        hseq1_ref, hseq2_ref, latflat_ref):
    B = out_ref.shape[0]
    T = x_tb_ref.shape[0] // B
    L = w3h_ref.shape[0]

    def run_layer(xs, wih, whh, bias, write_step):
        """One LSTM layer. xs: (T*B, Din) value, time-major row order (t, b)."""
        H = whh.shape[0]
        # Hoisted input projection: one well-shaped matmul for all (t, b) pairs.
        # NOTE: default matmul precision; use precision=jax.lax.Precision.HIGHEST
        # in these dots if bit-level f32 parity with PyTorch is required.
        gx = jnp.dot(xs, wih, preferred_element_type=jnp.float32) + bias   # (T*B, 4H)
        h = jnp.zeros((B, H), jnp.float32)
        c = jnp.zeros((B, H), jnp.float32)
        for t in range(T):                                   # static unroll (T small)
            g = gx[t * B:(t + 1) * B, :] + jnp.dot(
                h, whh, preferred_element_type=jnp.float32)  # (B, 4H)
            sg = jax.nn.sigmoid(g)                           # one EUP pass, full gates
            i_g = sg[:, 0 * H:1 * H]
            f_g = sg[:, 1 * H:2 * H]
            g_g = jnp.tanh(g[:, 2 * H:3 * H])
            o_g = sg[:, 3 * H:4 * H]
            c = f_g * c + i_g * g_g
            h = o_g * jnp.tanh(c)
            write_step(t, h)

    def write_hseq1(t, h):
        hseq1_ref[t * B:(t + 1) * B, :] = h                  # (T*B, H1) time-major

    def write_hseq2(t, h):
        hseq2_ref[t * B:(t + 1) * B, :] = h                  # (T*B, H1) time-major

    def write_latent(t, h):
        latflat_ref[:, t * L:(t + 1) * L] = h                # (B, T*L) fc layout

    # lstm1 (2 stacked layers; inter-layer dropout is a no-op in eval / dropout=0)
    run_layer(x_tb_ref[...], w1i_ref[...], w1h_ref[...], b1_ref[...], write_hseq1)
    run_layer(hseq1_ref[...], w2i_ref[...], w2h_ref[...], b2_ref[...], write_hseq2)
    # lstm2 (1 layer), latent written directly in flattened fc layout
    run_layer(hseq2_ref[...], w3i_ref[...], w3h_ref[...], b3_ref[...], write_latent)

    # fc over concat(x, latent) flattened: split-weight form == W @ flatten(cat(...))
    out_ref[...] = (
        jnp.dot(x_flat_ref[...], wfx_ref[...], preferred_element_type=jnp.float32)
        + jnp.dot(latflat_ref[...], wfl_ref[...], preferred_element_type=jnp.float32)
        + bf_ref[...])


# ----------------------------------------------------------------------------
# Host wrapper (single pallas_call, everything else is tiny layout prep on x)
# ----------------------------------------------------------------------------
def _full_spec(shape):
    nd = len(shape)

    def idx():
        return (0,) * nd

    return pl.BlockSpec(shape, idx)


@jax.jit
def encoder_ff_forward(packed, x):
    """x: (B, T, F) float32 -> (B, latent_dim). `packed` from pack_params()."""
    B, T, F = x.shape
    H1 = packed["w1h"].shape[0]
    L = packed["w3h"].shape[0]
    O = packed["bf"].shape[1]

    # Tiny layout prep of the input only (fused by XLA into the same program).
    x_tb = jnp.transpose(x, (1, 0, 2)).reshape(T * B, F)     # time-major rows (t, b)
    x_flat = x.reshape(B, T * F)                             # torch.flatten order

    args = (x_tb, x_flat,
            packed["w1i"], packed["w1h"], packed["b1"],
            packed["w2i"], packed["w2h"], packed["b2"],
            packed["w3i"], packed["w3h"], packed["b3"],
            packed["wfx"], packed["wfl"], packed["bf"])

    return pl.pallas_call(
        fused_encoder_kernel,
        out_shape=jax.ShapeDtypeStruct((B, O), jnp.float32),
        in_specs=[_full_spec(a.shape) for a in args],
        out_specs=_full_spec((B, O)),
        scratch_shapes=[
            pltpu.VMEM((T * B, H1), jnp.float32),   # lstm1 layer-0 hidden sequence
            pltpu.VMEM((T * B, H1), jnp.float32),   # lstm1 layer-1 hidden sequence
            pltpu.VMEM((B, T * L), jnp.float32),    # latent in flattened fc layout
        ],
    )(*args)


# ----------------------------------------------------------------------------
# Parameter construction (PyTorch-style uniform(-k, k)) and one-time packing
# ----------------------------------------------------------------------------
def init_lstm_params(key, din, hidden):
    k = 1.0 / jnp.sqrt(hidden)
    ks = jax.random.split(key, 4)
    return dict(
        w_ih=jax.random.uniform(ks[0], (4 * hidden, din), jnp.float32, -k, k),
        w_hh=jax.random.uniform(ks[1], (4 * hidden, hidden), jnp.float32, -k, k),
        b_ih=jax.random.uniform(ks[2], (4 * hidden,), jnp.float32, -k, k),
        b_hh=jax.random.uniform(ks[3], (4 * hidden,), jnp.float32, -k, k),
    )


def init_linear_params(key, din, dout):
    k = 1.0 / jnp.sqrt(din)
    ks = jax.random.split(key, 2)
    return dict(
        w=jax.random.uniform(ks[0], (dout, din), jnp.float32, -k, k),
        b=jax.random.uniform(ks[1], (dout,), jnp.float32, -k, k),
    )


def pack_params(params, seq_len, in_feat, latent_dim):
    """One-time weight packing: transposes, bias fusion, fc column split."""
    def pack_lstm(p):
        return (jnp.transpose(p["w_ih"]),                   # (Din, 4H)
                jnp.transpose(p["w_hh"]),                   # (H,   4H)
                (p["b_ih"] + p["b_hh"]).reshape(1, -1))     # (1,   4H)

    w1i, w1h, b1 = pack_lstm(params["lstm1_l0"])
    w2i, w2h, b2 = pack_lstm(params["lstm1_l1"])
    w3i, w3h, b3 = pack_lstm(params["lstm2_l0"])

    fc_w, fc_b = params["fc"]["w"], params["fc"]["b"]       # (O, T*(F+L)), (O,)
    O = fc_w.shape[0]
    wt = jnp.transpose(fc_w).reshape(seq_len, in_feat + latent_dim, O)
    wfx = wt[:, :in_feat, :].reshape(seq_len * in_feat, O)          # rows (t, f)
    wfl = wt[:, in_feat:, :].reshape(seq_len * latent_dim, O)       # rows (t, l)

    return dict(w1i=w1i, w1h=w1h, b1=b1,
                w2i=w2i, w2h=w2h, b2=b2,
                w3i=w3i, w3h=w3h, b3=b3,
                wfx=wfx, wfl=wfl, bf=fc_b.reshape(1, O))


if __name__ == "__main__":
    # Shapes consistent with Encoder_FF: fc expects seq_len == 10 (batch_first).
    B, T, F = 2, 10, 4                  # input_shape = (10, 4)
    ATT_HIDDEN = 32                     # attention_hidden_dim (4H = 128 lanes)
    LATENT = 16                         # latent_dim

    key = jax.random.PRNGKey(0)
    k_x, k1, k2, k3, k4 = jax.random.split(key, 5)

    params = {
        "lstm1_l0": init_lstm_params(k1, F, ATT_HIDDEN),
        "lstm1_l1": init_lstm_params(k2, ATT_HIDDEN, ATT_HIDDEN),
        "lstm2_l0": init_lstm_params(k3, ATT_HIDDEN, LATENT),
        "fc": init_linear_params(k4, T * (F + LATENT), LATENT),
    }
    packed = pack_params(params, T, F, LATENT)   # one-time weight packing

    x = jax.random.normal(k_x, (B, T, F), dtype=jnp.float32)

    out = encoder_ff_forward(packed, x)
    jax.block_until_ready(out)
    assert out.shape == (B, LATENT), out.shape
    print("KERNEL_OK")
</pallas_src>

<mosaic_0001>
module attributes {stable_mosaic.version = 11 : i64} {
  func.func @fused_encoder_kernel(%arg0: memref<20x4xf32, #tpu.memory_space<vmem>>, %arg1: memref<2x40xf32, #tpu.memory_space<vmem>>, %arg2: memref<4x128xf32, #tpu.memory_space<vmem>>, %arg3: memref<32x128xf32, #tpu.memory_space<vmem>>, %arg4: memref<1x128xf32, #tpu.memory_space<vmem>>, %arg5: memref<32x128xf32, #tpu.memory_space<vmem>>, %arg6: memref<32x128xf32, #tpu.memory_space<vmem>>, %arg7: memref<1x128xf32, #tpu.memory_space<vmem>>, %arg8: memref<32x64xf32, #tpu.memory_space<vmem>>, %arg9: memref<16x64xf32, #tpu.memory_space<vmem>>, %arg10: memref<1x64xf32, #tpu.memory_space<vmem>>, %arg11: memref<40x16xf32, #tpu.memory_space<vmem>>, %arg12: memref<160x16xf32, #tpu.memory_space<vmem>>, %arg13: memref<1x16xf32, #tpu.memory_space<vmem>>, %arg14: memref<2x16xf32, #tpu.memory_space<vmem>>, %arg15: memref<20x32xf32, #tpu.memory_space<vmem>>, %arg16: memref<20x32xf32, #tpu.memory_space<vmem>>, %arg17: memref<2x160xf32, #tpu.memory_space<vmem>>) attributes {dimension_semantics = [], scalar_prefetch = 0 : i64, scratch_operands = 3 : i64, tpu.core_type = #tpu.core_type<tc>} {
    %c0 = arith.constant 0 : index
    %c0_0 = arith.constant 0 : index
    %0 = vector.load %arg0[%c0, %c0_0] : memref<20x4xf32, #tpu.memory_space<vmem>>, vector<20x4xf32>
    %c0_1 = arith.constant 0 : index
    %c0_2 = arith.constant 0 : index
    %1 = vector.load %arg2[%c0_1, %c0_2] : memref<4x128xf32, #tpu.memory_space<vmem>>, vector<4x128xf32>
    %c0_3 = arith.constant 0 : index
    %c0_4 = arith.constant 0 : index
    %2 = vector.load %arg3[%c0_3, %c0_4] : memref<32x128xf32, #tpu.memory_space<vmem>>, vector<32x128xf32>
    %c0_5 = arith.constant 0 : index
    %c0_6 = arith.constant 0 : index
    %3 = vector.load %arg4[%c0_5, %c0_6] : memref<1x128xf32, #tpu.memory_space<vmem>>, vector<1x128xf32>
    %cst = arith.constant dense<0.000000e+00> : vector<20x128xf32>
    %4 = tpu.matmul %0, %1, %cst {dimension_numbers = #tpu.dot_dimension_numbers<[1], [0], [0], [1], [0, 0, 1, 1], [], []>} : vector<20x4xf32>, vector<4x128xf32>, vector<20x128xf32> -> vector<20x128xf32>
    %5 = vector.broadcast %3 : vector<1x128xf32> to vector<20x128xf32>
    %6 = arith.addf %4, %5 : vector<20x128xf32>
    %cst_7 = arith.constant 0.000000e+00 : f32
    %7 = vector.broadcast %cst_7 : f32 to vector<2x32xf32>
    %cst_8 = arith.constant 0.000000e+00 : f32
    %8 = vector.broadcast %cst_8 : f32 to vector<2x32xf32>
    %9 = vector.extract_strided_slice %6 {offsets = [0, 0], sizes = [2, 128], strides = [1, 1]} : vector<20x128xf32> to vector<2x128xf32>
    %cst_9 = arith.constant dense<0.000000e+00> : vector<2x128xf32>
    %10 = tpu.matmul %7, %2, %cst_9 {dimension_numbers = #tpu.dot_dimension_numbers<[1], [0], [0], [1], [0, 0, 1, 1], [], []>} : vector<2x32xf32>, vector<32x128xf32>, vector<2x128xf32> -> vector<2x128xf32>
    %11 = arith.addf %9, %10 : vector<2x128xf32>
    %12 = arith.negf %11 : vector<2x128xf32>
    %13 = math.exp %12 : vector<2x128xf32>
    %cst_10 = arith.constant 1.000000e+00 : f32
    %14 = vector.broadcast %cst_10 : f32 to vector<2x128xf32>
    %15 = arith.addf %14, %13 : vector<2x128xf32>
    %16 = arith.divf %14, %15 : vector<2x128xf32>
    %17 = vector.extract_strided_slice %16 {offsets = [0, 0], sizes = [2, 32], strides = [1, 1]} : vector<2x128xf32> to vector<2x32xf32>
    %18 = vector.extract_strided_slice %16 {offsets = [0, 32], sizes = [2, 32], strides = [1, 1]} : vector<2x128xf32> to vector<2x32xf32>
    %19 = vector.extract_strided_slice %11 {offsets = [0, 64], sizes = [2, 32], strides = [1, 1]} : vector<2x128xf32> to vector<2x32xf32>
    %20 = math.tanh %19 : vector<2x32xf32>
    %21 = vector.extract_strided_slice %16 {offsets = [0, 96], sizes = [2, 32], strides = [1, 1]} : vector<2x128xf32> to vector<2x32xf32>
    %22 = arith.mulf %18, %8 : vector<2x32xf32>
    %23 = arith.mulf %17, %20 : vector<2x32xf32>
    %24 = arith.addf %22, %23 : vector<2x32xf32>
    %25 = math.tanh %24 : vector<2x32xf32>
    %26 = arith.mulf %21, %25 : vector<2x32xf32>
    %c0_11 = arith.constant 0 : index
    %c0_12 = arith.constant 0 : index
    %27 = vector.load %arg15[%c0_11, %c0_12] : memref<20x32xf32, #tpu.memory_space<vmem>>, vector<2x32xf32>
    tpu.vector_store %arg15[%c0_11, %c0_12], %26 {strides = array<i32>} : memref<20x32xf32, #tpu.memory_space<vmem>>, vector<2x32xf32>,
    %28 = vector.extract_strided_slice %6 {offsets = [2, 0], sizes = [2, 128], strides = [1, 1]} : vector<20x128xf32> to vector<2x128xf32>
    %cst_13 = arith.constant dense<0.000000e+00> : vector<2x128xf32>
    %29 = tpu.matmul %26, %2, %cst_13 {dimension_numbers = #tpu.dot_dimension_numbers<[1], [0], [0], [1], [0, 0, 1, 1], [], []>} : vector<2x32xf32>, vector<32x128xf32>, vector<2x128xf32> -> vector<2x128xf32>
    %30 = arith.addf %28, %29 : vector<2x128xf32>
    %31 = arith.negf %30 : vector<2x128xf32>
    %32 = math.exp %31 : vector<2x128xf32>
    %cst_14 = arith.constant 1.000000e+00 : f32
    %33 = vector.broadcast %cst_14 : f32 to vector<2x128xf32>
    %34 = arith.addf %33, %32 : vector<2x128xf32>
    %35 = arith.divf %33, %34 : vector<2x128xf32>
    %36 = vector.extract_strided_slice %35 {offsets = [0, 0], sizes = [2, 32], strides = [1, 1]} : vector<2x128xf32> to vector<2x32xf32>
    %37 = vector.extract_strided_slice %35 {offsets = [0, 32], sizes = [2, 32], strides = [1, 1]} : vector<2x128xf32> to vector<2x32xf32>
    %38 = vector.extract_strided_slice %30 {offsets = [0, 64], sizes = [2, 32], strides = [1, 1]} : vector<2x128xf32> to vector<2x32xf32>
    %39 = math.tanh %38 : vector<2x32xf32>
    %40 = vector.extract_strided_slice %35 {offsets = [0, 96], sizes = [2, 32], strides = [1, 1]} : vector<2x128xf32> to vector<2x32xf32>
    %41 = arith.mulf %37, %24 : vector<2x32xf32>
    %42 = arith.mulf %36, %39 : vector<2x32xf32>
    %43 = arith.addf %41, %42 : vector<2x32xf32>
    %44 = math.tanh %43 : vector<2x32xf32>
    %45 = arith.mulf %40, %44 : vector<2x32xf32>
    %c2 = arith.constant 2 : index
    %c0_15 = arith.constant 0 : index
    %46 = vector.load %arg15[%c2, %c0_15] : memref<20x32xf32, #tpu.memory_space<vmem>>, vector<2x32xf32>
    tpu.vector_store %arg15[%c2, %c0_15], %45 {strides = array<i32>} : memref<20x32xf32, #tpu.memory_space<vmem>>, vector<2x32xf32>,
    %47 = vector.extract_strided_slice %6 {offsets = [4, 0], sizes = [2, 128], strides = [1, 1]} : vector<20x128xf32> to vector<2x128xf32>
    %cst_16 = arith.constant dense<0.000000e+00> : vector<2x128xf32>
    %48 = tpu.matmul %45, %2, %cst_16 {dimension_numbers = #tpu.dot_dimension_numbers<[1], [0], [0], [1], [0, 0, 1, 1], [], []>} : vector<2x32xf32>, vector<32x128xf32>, vector<2x128xf32> -> vector<2x128xf32>
    %49 = arith.addf %47, %48 : vector<2x128xf32>
    %50 = arith.negf %49 : vector<2x128xf32>
    %51 = math.exp %50 : vector<2x128xf32>
    %cst_17 = arith.constant 1.000000e+00 : f32
    %52 = vector.broadcast %cst_17 : f32 to vector<2x128xf32>
    %53 = arith.addf %52, %51 : vector<2x128xf32>
    %54 = arith.divf %52, %53 : vector<2x128xf32>
    %55 = vector.extract_strided_slice %54 {offsets = [0, 0], sizes = [2, 32], strides = [1, 1]} : vector<2x128xf32> to vector<2x32xf32>
    %56 = vector.extract_strided_slice %54 {offsets = [0, 32], sizes = [2, 32], strides = [1, 1]} : vector<2x128xf32> to vector<2x32xf32>
    %57 = vector.extract_strided_slice %49 {offsets = [0, 64], sizes = [2, 32], strides = [1, 1]} : vector<2x128xf32> to vector<2x32xf32>
    %58 = math.tanh %57 : vector<2x32xf32>
    %59 = vector.extract_strided_slice %54 {offsets = [0, 96], sizes = [2, 32], strides = [1, 1]} : vector<2x128xf32> to vector<2x32xf32>
    %60 = arith.mulf %56, %43 : vector<2x32xf32>
    %61 = arith.mulf %55, %58 : vector<2x32xf32>
    %62 = arith.addf %60, %61 : vector<2x32xf32>
    %63 = math.tanh %62 : vector<2x32xf32>
    %64 = arith.mulf %59, %63 : vector<2x32xf32>
    %c4 = arith.constant 4 : index
    %c0_18 = arith.constant 0 : index
    %65 = vector.load %arg15[%c4, %c0_18] : memref<20x32xf32, #tpu.memory_space<vmem>>, vector<2x32xf32>
    tpu.vector_store %arg15[%c4, %c0_18], %64 {strides = array<i32>} : memref<20x32xf32, #tpu.memory_space<vmem>>, vector<2x32xf32>,
    %66 = vector.extract_strided_slice %6 {offsets = [6, 0], sizes = [2, 128], strides = [1, 1]} : vector<20x128xf32> to vector<2x128xf32>
    %cst_19 = arith.constant dense<0.000000e+00> : vector<2x128xf32>
    %67 = tpu.matmul %64, %2, %cst_19 {dimension_numbers = #tpu.dot_dimension_numbers<[1], [0], [0], [1], [0, 0, 1, 1], [], []>} : vector<2x32xf32>, vector<32x128xf32>, vector<2x128xf32> -> vector<2x128xf32>
    %68 = arith.addf %66, %67 : vector<2x128xf32>
    %69 = arith.negf %68 : vector<2x128xf32>
    %70 = math.exp %69 : vector<2x128xf32>
    %cst_20 = arith.constant 1.000000e+00 : f32
    %71 = vector.broadcast %cst_20 : f32 to vector<2x128xf32>
    %72 = arith.addf %71, %70 : vector<2x128xf32>
    %73 = arith.divf %71, %72 : vector<2x128xf32>
    %74 = vector.extract_strided_slice %73 {offsets = [0, 0], sizes = [2, 32], strides = [1, 1]} : vector<2x128xf32> to vector<2x32xf32>
    %75 = vector.extract_strided_slice %73 {offsets = [0, 32], sizes = [2, 32], strides = [1, 1]} : vector<2x128xf32> to vector<2x32xf32>
    %76 = vector.extract_strided_slice %68 {offsets = [0, 64], sizes = [2, 32], strides = [1, 1]} : vector<2x128xf32> to vector<2x32xf32>
    %77 = math.tanh %76 : vector<2x32xf32>
    %78 = vector.extract_strided_slice %73 {offsets = [0, 96], sizes = [2, 32], strides = [1, 1]} : vector<2x128xf32> to vector<2x32xf32>
    %79 = arith.mulf %75, %62 : vector<2x32xf32>
    %80 = arith.mulf %74, %77 : vector<2x32xf32>
    %81 = arith.addf %79, %80 : vector<2x32xf32>
    %82 = math.tanh %81 : vector<2x32xf32>
    %83 = arith.mulf %78, %82 : vector<2x32xf32>
    %c6 = arith.constant 6 : index
    %c0_21 = arith.constant 0 : index
    %84 = vector.load %arg15[%c6, %c0_21] : memref<20x32xf32, #tpu.memory_space<vmem>>, vector<2x32xf32>
    tpu.vector_store %arg15[%c6, %c0_21], %83 {strides = array<i32>} : memref<20x32xf32, #tpu.memory_space<vmem>>, vector<2x32xf32>,
    %85 = vector.extract_strided_slice %6 {offsets = [8, 0], sizes = [2, 128], strides = [1, 1]} : vector<20x128xf32> to vector<2x128xf32>
    %cst_22 = arith.constant dense<0.000000e+00> : vector<2x128xf32>
    %86 = tpu.matmul %83, %2, %cst_22 {dimension_numbers = #tpu.dot_dimension_numbers<[1], [0], [0], [1], [0, 0, 1, 1], [], []>} : vector<2x32xf32>, vector<32x128xf32>, vector<2x128xf32> -> vector<2x128xf32>
    %87 = arith.addf %85, %86 : vector<2x128xf32>
    %88 = arith.negf %87 : vector<2x128xf32>
    %89 = math.exp %88 : vector<2x128xf32>
    %cst_23 = arith.constant 1.000000e+00 : f32
    %90 = vector.broadcast %cst_23 : f32 to vector<2x128xf32>
    %91 = arith.addf %90, %89 : vector<2x128xf32>
    %92 = arith.divf %90, %91 : vector<2x128xf32>
    %93 = vector.extract_strided_slice %92 {offsets = [0, 0], sizes = [2, 32], strides = [1, 1]} : vector<2x128xf32> to vector<2x32xf32>
    %94 = vector.extract_strided_slice %92 {offsets = [0, 32], sizes = [2, 32], strides = [1, 1]} : vector<2x128xf32> to vector<2x32xf32>
    %95 = vector.extract_strided_slice %87 {offsets = [0, 64], sizes = [2, 32], strides = [1, 1]} : vector<2x128xf32> to vector<2x32xf32>
    %96 = math.tanh %95 : vector<2x32xf32>
    %97 = vector.extract_strided_slice %92 {offsets = [0, 96], sizes = [2, 32], strides = [1, 1]} : vector<2x128xf32> to vector<2x32xf32>
    %98 = arith.mulf %94, %81 : vector<2x32xf32>
    %99 = arith.mulf %93, %96 : vector<2x32xf32>
    %100 = arith.addf %98, %99 : vector<2x32xf32>
    %101 = math.tanh %100 : vector<2x32xf32>
    %102 = arith.mulf %97, %101 : vector<2x32xf32>
    %c8 = arith.constant 8 : index
    %c0_24 = arith.constant 0 : index
    %103 = vector.load %arg15[%c8, %c0_24] : memref<20x32xf32, #tpu.memory_space<vmem>>, vector<2x32xf32>
    tpu.vector_store %arg15[%c8, %c0_24], %102 {strides = array<i32>} : memref<20x32xf32, #tpu.memory_space<vmem>>, vector<2x32xf32>,
    %104 = vector.extract_strided_slice %6 {offsets = [10, 0], sizes = [2, 128], strides = [1, 1]} : vector<20x128xf32> to vector<2x128xf32>
    %cst_25 = arith.constant dense<0.000000e+00> : vector<2x128xf32>
    %105 = tpu.matmul %102, %2, %cst_25 {dimension_numbers = #tpu.dot_dimension_numbers<[1], [0], [0], [1], [0, 0, 1, 1], [], []>} : vector<2x32xf32>, vector<32x128xf32>, vector<2x128xf32> -> vector<2x128xf32>
    %106 = arith.addf %104, %105 : vector<2x128xf32>
    %107 = arith.negf %106 : vector<2x128xf32>
    %108 = math.exp %107 : vector<2x128xf32>
    %cst_26 = arith.constant 1.000000e+00 : f32
    %109 = vector.broadcast %cst_26 : f32 to vector<2x128xf32>
    %110 = arith.addf %109, %108 : vector<2x128xf32>
    %111 = arith.divf %109, %110 : vector<2x128xf32>
    %112 = vector.extract_strided_slice %111 {offsets = [0, 0], sizes = [2, 32], strides = [1, 1]} : vector<2x128xf32> to vector<2x32xf32>
    %113 = vector.extract_strided_slice %111 {offsets = [0, 32], sizes = [2, 32], strides = [1, 1]} : vector<2x128xf32> to vector<2x32xf32>
    %114 = vector.extract_strided_slice %106 {offsets = [0, 64], sizes = [2, 32], strides = [1, 1]} : vector<2x128xf32> to vector<2x32xf32>
    %115 = math.tanh %114 : vector<2x32xf32>
    %116 = vector.extract_strided_slice %111 {offsets = [0, 96], sizes = [2, 32], strides = [1, 1]} : vector<2x128xf32> to vector<2x32xf32>
    %117 = arith.mulf %113, %100 : vector<2x32xf32>
    %118 = arith.mulf %112, %115 : vector<2x32xf32>
    %119 = arith.addf %117, %118 : vector<2x32xf32>
    %120 = math.tanh %119 : vector<2x32xf32>
    %121 = arith.mulf %116, %120 : vector<2x32xf32>
    %c10 = arith.constant 10 : index
    %c0_27 = arith.constant 0 : index
    %122 = vector.load %arg15[%c10, %c0_27] : memref<20x32xf32, #tpu.memory_space<vmem>>, vector<2x32xf32>
    tpu.vector_store %arg15[%c10, %c0_27], %121 {strides = array<i32>} : memref<20x32xf32, #tpu.memory_space<vmem>>, vector<2x32xf32>,
    %123 = vector.extract_strided_slice %6 {offsets = [12, 0], sizes = [2, 128], strides = [1, 1]} : vector<20x128xf32> to vector<2x128xf32>
    %cst_28 = arith.constant dense<0.000000e+00> : vector<2x128xf32>
    %124 = tpu.matmul %121, %2, %cst_28 {dimension_numbers = #tpu.dot_dimension_numbers<[1], [0], [0], [1], [0, 0, 1, 1], [], []>} : vector<2x32xf32>, vector<32x128xf32>, vector<2x128xf32> -> vector<2x128xf32>
    %125 = arith.addf %123, %124 : vector<2x128xf32>
    %126 = arith.negf %125 : vector<2x128xf32>
    %127 = math.exp %126 : vector<2x128xf32>
    %cst_29 = arith.constant 1.000000e+00 : f32
    %128 = vector.broadcast %cst_29 : f32 to vector<2x128xf32>
    %129 = arith.addf %128, %127 : vector<2x128xf32>
    %130 = arith.divf %128, %129 : vector<2x128xf32>
    %131 = vector.extract_strided_slice %130 {offsets = [0, 0], sizes = [2, 32], strides = [1, 1]} : vector<2x128xf32> to vector<2x32xf32>
    %132 = vector.extract_strided_slice %130 {offsets = [0, 32], sizes = [2, 32], strides = [1, 1]} : vector<2x128xf32> to vector<2x32xf32>
    %133 = vector.extract_strided_slice %125 {offsets = [0, 64], sizes = [2, 32], strides = [1, 1]} : vector<2x128xf32> to vector<2x32xf32>
    %134 = math.tanh %133 : vector<2x32xf32>
    %135 = vector.extract_strided_slice %130 {offsets = [0, 96], sizes = [2, 32], strides = [1, 1]} : vector<2x128xf32> to vector<2x32xf32>
    %136 = arith.mulf %132, %119 : vector<2x32xf32>
    %137 = arith.mulf %131, %134 : vector<2x32xf32>
    %138 = arith.addf %136, %137 : vector<2x32xf32>
    %139 = math.tanh %138 : vector<2x32xf32>
    %140 = arith.mulf %135, %139 : vector<2x32xf32>
    %c12 = arith.constant 12 : index
    %c0_30 = arith.constant 0 : index
    %141 = vector.load %arg15[%c12, %c0_30] : memref<20x32xf32, #tpu.memory_space<vmem>>, vector<2x32xf32>
    tpu.vector_store %arg15[%c12, %c0_30], %140 {strides = array<i32>} : memref<20x32xf32, #tpu.memory_space<vmem>>, vector<2x32xf32>,
    %142 = vector.extract_strided_slice %6 {offsets = [14, 0], sizes = [2, 128], strides = [1, 1]} : vector<20x128xf32> to vector<2x128xf32>
    %cst_31 = arith.constant dense<0.000000e+00> : vector<2x128xf32>
    %143 = tpu.matmul %140, %2, %cst_31 {dimension_numbers = #tpu.dot_dimension_numbers<[1], [0], [0], [1], [0, 0, 1, 1], [], []>} : vector<2x32xf32>, vector<32x128xf32>, vector<2x128xf32> -> vector<2x128xf32>
    %144 = arith.addf %142, %143 : vector<2x128xf32>
    %145 = arith.negf %144 : vector<2x128xf32>
    %146 = math.exp %145 : vector<2x128xf32>
    %cst_32 = arith.constant 1.000000e+00 : f32
    %147 = vector.broadcast %cst_32 : f32 to vector<2x128xf32>
    %148 = arith.addf %147, %146 : vector<2x128xf32>
    %149 = arith.divf %147, %148 : vector<2x128xf32>
    %150 = vector.extract_strided_slice %149 {offsets = [0, 0], sizes = [2, 32], strides = [1, 1]} : vector<2x128xf32> to vector<2x32xf32>
    %151 = vector.extract_strided_slice %149 {offsets = [0, 32], sizes = [2, 32], strides = [1, 1]} : vector<2x128xf32> to vector<2x32xf32>
    %152 = vector.extract_strided_slice %144 {offsets = [0, 64], sizes = [2, 32], strides = [1, 1]} : vector<2x128xf32> to vector<2x32xf32>
    %153 = math.tanh %152 : vector<2x32xf32>
    %154 = vector.extract_strided_slice %149 {offsets = [0, 96], sizes = [2, 32], strides = [1, 1]} : vector<2x128xf32> to vector<2x32xf32>
    %155 = arith.mulf %151, %138 : vector<2x32xf32>
    %156 = arith.mulf %150, %153 : vector<2x32xf32>
    %157 = arith.addf %155, %156 : vector<2x32xf32>
    %158 = math.tanh %157 : vector<2x32xf32>
    %159 = arith.mulf %154, %158 : vector<2x32xf32>
    %c14 = arith.constant 14 : index
    %c0_33 = arith.constant 0 : index
    %160 = vector.load %arg15[%c14, %c0_33] : memref<20x32xf32, #tpu.memory_space<vmem>>, vector<2x32xf32>
    tpu.vector_store %arg15[%c14, %c0_33], %159 {strides = array<i32>} : memref<20x32xf32, #tpu.memory_space<vmem>>, vector<2x32xf32>,
    %161 = vector.extract_strided_slice %6 {offsets = [16, 0], sizes = [2, 128], strides = [1, 1]} : vector<20x128xf32> to vector<2x128xf32>
    %cst_34 = arith.constant dense<0.000000e+00> : vector<2x128xf32>
    %162 = tpu.matmul %159, %2, %cst_34 {dimension_numbers = #tpu.dot_dimension_numbers<[1], [0], [0], [1], [0, 0, 1, 1], [], []>} : vector<2x32xf32>, vector<32x128xf32>, vector<2x128xf32> -> vector<2x128xf32>
    %163 = arith.addf %161, %162 : vector<2x128xf32>
    %164 = arith.negf %163 : vector<2x128xf32>
    %165 = math.exp %164 : vector<2x128xf32>
    %cst_35 = arith.constant 1.000000e+00 : f32
    %166 = vector.broadcast %cst_35 : f32 to vector<2x128xf32>
    %167 = arith.addf %166, %165 : vector<2x128xf32>
    %168 = arith.divf %166, %167 : vector<2x128xf32>
    %169 = vector.extract_strided_slice %168 {offsets = [0, 0], sizes = [2, 32], strides = [1, 1]} : vector<2x128xf32> to vector<2x32xf32>
    %170 = vector.extract_strided_slice %168 {offsets = [0, 32], sizes = [2, 32], strides = [1, 1]} : vector<2x128xf32> to vector<2x32xf32>
    %171 = vector.extract_strided_slice %163 {offsets = [0, 64], sizes = [2, 32], strides = [1, 1]} : vector<2x128xf32> to vector<2x32xf32>
    %172 = math.tanh %171 : vector<2x32xf32>
    %173 = vector.extract_strided_slice %168 {offsets = [0, 96], sizes = [2, 32], strides = [1, 1]} : vector<2x128xf32> to vector<2x32xf32>
    %174 = arith.mulf %170, %157 : vector<2x32xf32>
    %175 = arith.mulf %169, %172 : vector<2x32xf32>
    %176 = arith.addf %174, %175 : vector<2x32xf32>
    %177 = math.tanh %176 : vector<2x32xf32>
    %178 = arith.mulf %173, %177 : vector<2x32xf32>
    %c16 = arith.constant 16 : index
    %c0_36 = arith.constant 0 : index
    %179 = vector.load %arg15[%c16, %c0_36] : memref<20x32xf32, #tpu.memory_space<vmem>>, vector<2x32xf32>
    tpu.vector_store %arg15[%c16, %c0_36], %178 {strides = array<i32>} : memref<20x32xf32, #tpu.memory_space<vmem>>, vector<2x32xf32>,
    %180 = vector.extract_strided_slice %6 {offsets = [18, 0], sizes = [2, 128], strides = [1, 1]} : vector<20x128xf32> to vector<2x128xf32>
    %cst_37 = arith.constant dense<0.000000e+00> : vector<2x128xf32>
    %181 = tpu.matmul %178, %2, %cst_37 {dimension_numbers = #tpu.dot_dimension_numbers<[1], [0], [0], [1], [0, 0, 1, 1], [], []>} : vector<2x32xf32>, vector<32x128xf32>, vector<2x128xf32> -> vector<2x128xf32>
    %182 = arith.addf %180, %181 : vector<2x128xf32>
    %183 = arith.negf %182 : vector<2x128xf32>
    %184 = math.exp %183 : vector<2x128xf32>
    %cst_38 = arith.constant 1.000000e+00 : f32
    %185 = vector.broadcast %cst_38 : f32 to vector<2x128xf32>
    %186 = arith.addf %185, %184 : vector<2x128xf32>
    %187 = arith.divf %185, %186 : vector<2x128xf32>
    %188 = vector.extract_strided_slice %187 {offsets = [0, 0], sizes = [2, 32], strides = [1, 1]} : vector<2x128xf32> to vector<2x32xf32>
    %189 = vector.extract_strided_slice %187 {offsets = [0, 32], sizes = [2, 32], strides = [1, 1]} : vector<2x128xf32> to vector<2x32xf32>
    %190 = vector.extract_strided_slice %182 {offsets = [0, 64], sizes = [2, 32], strides = [1, 1]} : vector<2x128xf32> to vector<2x32xf32>
    %191 = math.tanh %190 : vector<2x32xf32>
    %192 = vector.extract_strided_slice %187 {offsets = [0, 96], sizes = [2, 32], strides = [1, 1]} : vector<2x128xf32> to vector<2x32xf32>
    %193 = arith.mulf %189, %176 : vector<2x32xf32>
    %194 = arith.mulf %188, %191 : vector<2x32xf32>
    %195 = arith.addf %193, %194 : vector<2x32xf32>
    %196 = math.tanh %195 : vector<2x32xf32>
    %197 = arith.mulf %192, %196 : vector<2x32xf32>
    %c18 = arith.constant 18 : index
    %c0_39 = arith.constant 0 : index
    %198 = vector.load %arg15[%c18, %c0_39] : memref<20x32xf32, #tpu.memory_space<vmem>>, vector<2x32xf32>
    tpu.vector_store %arg15[%c18, %c0_39], %197 {strides = array<i32>} : memref<20x32xf32, #tpu.memory_space<vmem>>, vector<2x32xf32>,
    %c0_40 = arith.constant 0 : index
    %c0_41 = arith.constant 0 : index
    %199 = vector.load %arg15[%c0_40, %c0_41] : memref<20x32xf32, #tpu.memory_space<vmem>>, vector<20x32xf32>
    %c0_42 = arith.constant 0 : index
    %c0_43 = arith.constant 0 : index
    %200 = vector.load %arg5[%c0_42, %c0_43] : memref<32x128xf32, #tpu.memory_space<vmem>>, vector<32x128xf32>
    %c0_44 = arith.constant 0 : index
    %c0_45 = arith.constant 0 : index
    %201 = vector.load %arg6[%c0_44, %c0_45] : memref<32x128xf32, #tpu.memory_space<vmem>>, vector<32x128xf32>
    %c0_46 = arith.constant 0 : index
    %c0_47 = arith.constant 0 : index
    %202 = vector.load %arg7[%c0_46, %c0_47] : memref<1x128xf32, #tpu.memory_space<vmem>>, vector<1x128xf32>
    %cst_48 = arith.constant dense<0.000000e+00> : vector<20x128xf32>
    %203 = tpu.matmul %199, %200, %cst_48 {dimension_numbers = #tpu.dot_dimension_numbers<[1], [0], [0], [1], [0, 0, 1, 1], [], []>} : vector<20x32xf32>, vector<32x128xf32>, vector<20x128xf32> -> vector<20x128xf32>
    %204 = vector.broadcast %202 : vector<1x128xf32> to vector<20x128xf32>
    %205 = arith.addf %203, %204 : vector<20x128xf32>
    %cst_49 = arith.constant 0.000000e+00 : f32
    %206 = vector.broadcast %cst_49 : f32 to vector<2x32xf32>
    %cst_50 = arith.constant 0.000000e+00 : f32
    %207 = vector.broadcast %cst_50 : f32 to vector<2x32xf32>
    %208 = vector.extract_strided_slice %205 {offsets = [0, 0], sizes = [2, 128], strides = [1, 1]} : vector<20x128xf32> to vector<2x128xf32>
    %cst_51 = arith.constant dense<0.000000e+00> : vector<2x128xf32>
    %209 = tpu.matmul %206, %201, %cst_51 {dimension_numbers = #tpu.dot_dimension_numbers<[1], [0], [0], [1], [0, 0, 1, 1], [], []>} : vector<2x32xf32>, vector<32x128xf32>, vector<2x128xf32> -> vector<2x128xf32>
    %210 = arith.addf %208, %209 : vector<2x128xf32>
    %211 = arith.negf %210 : vector<2x128xf32>
    %212 = math.exp %211 : vector<2x128xf32>
    %cst_52 = arith.constant 1.000000e+00 : f32
    %213 = vector.broadcast %cst_52 : f32 to vector<2x128xf32>
    %214 = arith.addf %213, %212 : vector<2x128xf32>
    %215 = arith.divf %213, %214 : vector<2x128xf32>
    %216 = vector.extract_strided_slice %215 {offsets = [0, 0], sizes = [2, 32], strides = [1, 1]} : vector<2x128xf32> to vector<2x32xf32>
    %217 = vector.extract_strided_slice %215 {offsets = [0, 32], sizes = [2, 32], strides = [1, 1]} : vector<2x128xf32> to vector<2x32xf32>
    %218 = vector.extract_strided_slice %210 {offsets = [0, 64], sizes = [2, 32], strides = [1, 1]} : vector<2x128xf32> to vector<2x32xf32>
    %219 = math.tanh %218 : vector<2x32xf32>
    %220 = vector.extract_strided_slice %215 {offsets = [0, 96], sizes = [2, 32], strides = [1, 1]} : vector<2x128xf32> to vector<2x32xf32>
    %221 = arith.mulf %217, %207 : vector<2x32xf32>
    %222 = arith.mulf %216, %219 : vector<2x32xf32>
    %223 = arith.addf %221, %222 : vector<2x32xf32>
    %224 = math.tanh %223 : vector<2x32xf32>
    %225 = arith.mulf %220, %224 : vector<2x32xf32>
    %c0_53 = arith.constant 0 : index
    %c0_54 = arith.constant 0 : index
    %226 = vector.load %arg16[%c0_53, %c0_54] : memref<20x32xf32, #tpu.memory_space<vmem>>, vector<2x32xf32>
    tpu.vector_store %arg16[%c0_53, %c0_54], %225 {strides = array<i32>} : memref<20x32xf32, #tpu.memory_space<vmem>>, vector<2x32xf32>,
    %227 = vector.extract_strided_slice %205 {offsets = [2, 0], sizes = [2, 128], strides = [1, 1]} : vector<20x128xf32> to vector<2x128xf32>
    %cst_55 = arith.constant dense<0.000000e+00> : vector<2x128xf32>
    %228 = tpu.matmul %225, %201, %cst_55 {dimension_numbers = #tpu.dot_dimension_numbers<[1], [0], [0], [1], [0, 0, 1, 1], [], []>} : vector<2x32xf32>, vector<32x128xf32>, vector<2x128xf32> -> vector<2x128xf32>
    %229 = arith.addf %227, %228 : vector<2x128xf32>
    %230 = arith.negf %229 : vector<2x128xf32>
    %231 = math.exp %230 : vector<2x128xf32>
    %cst_56 = arith.constant 1.000000e+00 : f32
    %232 = vector.broadcast %cst_56 : f32 to vector<2x128xf32>
    %233 = arith.addf %232, %231 : vector<2x128xf32>
    %234 = arith.divf %232, %233 : vector<2x128xf32>
    %235 = vector.extract_strided_slice %234 {offsets = [0, 0], sizes = [2, 32], strides = [1, 1]} : vector<2x128xf32> to vector<2x32xf32>
    %236 = vector.extract_strided_slice %234 {offsets = [0, 32], sizes = [2, 32], strides = [1, 1]} : vector<2x128xf32> to vector<2x32xf32>
    %237 = vector.extract_strided_slice %229 {offsets = [0, 64], sizes = [2, 32], strides = [1, 1]} : vector<2x128xf32> to vector<2x32xf32>
    %238 = math.tanh %237 : vector<2x32xf32>
    %239 = vector.extract_strided_slice %234 {offsets = [0, 96], sizes = [2, 32], strides = [1, 1]} : vector<2x128xf32> to vector<2x32xf32>
    %240 = arith.mulf %236, %223 : vector<2x32xf32>
    %241 = arith.mulf %235, %238 : vector<2x32xf32>
    %242 = arith.addf %240, %241 : vector<2x32xf32>
    %243 = math.tanh %242 : vector<2x32xf32>
    %244 = arith.mulf %239, %243 : vector<2x32xf32>
    %c2_57 = arith.constant 2 : index
    %c0_58 = arith.constant 0 : index
    %245 = vector.load %arg16[%c2_57, %c0_58] : memref<20x32xf32, #tpu.memory_space<vmem>>, vector<2x32xf32>
    tpu.vector_store %arg16[%c2_57, %c0_58], %244 {strides = array<i32>} : memref<20x32xf32, #tpu.memory_space<vmem>>, vector<2x32xf32>,
    %246 = vector.extract_strided_slice %205 {offsets = [4, 0], sizes = [2, 128], strides = [1, 1]} : vector<20x128xf32> to vector<2x128xf32>
    %cst_59 = arith.constant dense<0.000000e+00> : vector<2x128xf32>
    %247 = tpu.matmul %244, %201, %cst_59 {dimension_numbers = #tpu.dot_dimension_numbers<[1], [0], [0], [1], [0, 0, 1, 1], [], []>} : vector<2x32xf32>, vector<32x128xf32>, vector<2x128xf32> -> vector<2x128xf32>
    %248 = arith.addf %246, %247 : vector<2x128xf32>
    %249 = arith.negf %248 : vector<2x128xf32>
    %250 = math.exp %249 : vector<2x128xf32>
    %cst_60 = arith.constant 1.000000e+00 : f32
    %251 = vector.broadcast %cst_60 : f32 to vector<2x128xf32>
    %252 = arith.addf %251, %250 : vector<2x128xf32>
    %253 = arith.divf %251, %252 : vector<2x128xf32>
    %254 = vector.extract_strided_slice %253 {offsets = [0, 0], sizes = [2, 32], strides = [1, 1]} : vector<2x128xf32> to vector<2x32xf32>
    %255 = vector.extract_strided_slice %253 {offsets = [0, 32], sizes = [2, 32], strides = [1, 1]} : vector<2x128xf32> to vector<2x32xf32>
    %256 = vector.extract_strided_slice %248 {offsets = [0, 64], sizes = [2, 32], strides = [1, 1]} : vector<2x128xf32> to vector<2x32xf32>
    %257 = math.tanh %256 : vector<2x32xf32>
    %258 = vector.extract_strided_slice %253 {offsets = [0, 96], sizes = [2, 32], strides = [1, 1]} : vector<2x128xf32> to vector<2x32xf32>
    %259 = arith.mulf %255, %242 : vector<2x32xf32>
    %260 = arith.mulf %254, %257 : vector<2x32xf32>
    %261 = arith.addf %259, %260 : vector<2x32xf32>
    %262 = math.tanh %261 : vector<2x32xf32>
    %263 = arith.mulf %258, %262 : vector<2x32xf32>
    %c4_61 = arith.constant 4 : index
    %c0_62 = arith.constant 0 : index
    %264 = vector.load %arg16[%c4_61, %c0_62] : memref<20x32xf32, #tpu.memory_space<vmem>>, vector<2x32xf32>
    tpu.vector_store %arg16[%c4_61, %c0_62], %263 {strides = array<i32>} : memref<20x32xf32, #tpu.memory_space<vmem>>, vector<2x32xf32>,
    %265 = vector.extract_strided_slice %205 {offsets = [6, 0], sizes = [2, 128], strides = [1, 1]} : vector<20x128xf32> to vector<2x128xf32>
    %cst_63 = arith.constant dense<0.000000e+00> : vector<2x128xf32>
    %266 = tpu.matmul %263, %201, %cst_63 {dimension_numbers = #tpu.dot_dimension_numbers<[1], [0], [0], [1], [0, 0, 1, 1], [], []>} : vector<2x32xf32>, vector<32x128xf32>, vector<2x128xf32> -> vector<2x128xf32>
    %267 = arith.addf %265, %266 : vector<2x128xf32>
    %268 = arith.negf %267 : vector<2x128xf32>
    %269 = math.exp %268 : vector<2x128xf32>
    %cst_64 = arith.constant 1.000000e+00 : f32
    %270 = vector.broadcast %cst_64 : f32 to vector<2x128xf32>
    %271 = arith.addf %270, %269 : vector<2x128xf32>
    %272 = arith.divf %270, %271 : vector<2x128xf32>
    %273 = vector.extract_strided_slice %272 {offsets = [0, 0], sizes = [2, 32], strides = [1, 1]} : vector<2x128xf32> to vector<2x32xf32>
    %274 = vector.extract_strided_slice %272 {offsets = [0, 32], sizes = [2, 32], strides = [1, 1]} : vector<2x128xf32> to vector<2x32xf32>
    %275 = vector.extract_strided_slice %267 {offsets = [0, 64], sizes = [2, 32], strides = [1, 1]} : vector<2x128xf32> to vector<2x32xf32>
    %276 = math.tanh %275 : vector<2x32xf32>
    %277 = vector.extract_strided_slice %272 {offsets = [0, 96], sizes = [2, 32], strides = [1, 1]} : vector<2x128xf32> to vector<2x32xf32>
    %278 = arith.mulf %274, %261 : vector<2x32xf32>
    %279 = arith.mulf %273, %276 : vector<2x32xf32>
    %280 = arith.addf %278, %279 : vector<2x32xf32>
    %281 = math.tanh %280 : vector<2x32xf32>
    %282 = arith.mulf %277, %281 : vector<2x32xf32>
    %c6_65 = arith.constant 6 : index
    %c0_66 = arith.constant 0 : index
    %283 = vector.load %arg16[%c6_65, %c0_66] : memref<20x32xf32, #tpu.memory_space<vmem>>, vector<2x32xf32>
    tpu.vector_store %arg16[%c6_65, %c0_66], %282 {strides = array<i32>} : memref<20x32xf32, #tpu.memory_space<vmem>>, vector<2x32xf32>,
    %284 = vector.extract_strided_slice %205 {offsets = [8, 0], sizes = [2, 128], strides = [1, 1]} : vector<20x128xf32> to vector<2x128xf32>
    %cst_67 = arith.constant dense<0.000000e+00> : vector<2x128xf32>
    %285 = tpu.matmul %282, %201, %cst_67 {dimension_numbers = #tpu.dot_dimension_numbers<[1], [0], [0], [1], [0, 0, 1, 1], [], []>} : vector<2x32xf32>, vector<32x128xf32>, vector<2x128xf32> -> vector<2x128xf32>
    %286 = arith.addf %284, %285 : vector<2x128xf32>
    %287 = arith.negf %286 : vector<2x128xf32>
    %288 = math.exp %287 : vector<2x128xf32>
    %cst_68 = arith.constant 1.000000e+00 : f32
    %289 = vector.broadcast %cst_68 : f32 to vector<2x128xf32>
    %290 = arith.addf %289, %288 : vector<2x128xf32>
    %291 = arith.divf %289, %290 : vector<2x128xf32>
    %292 = vector.extract_strided_slice %291 {offsets = [0, 0], sizes = [2, 32], strides = [1, 1]} : vector<2x128xf32> to vector<2x32xf32>
    %293 = vector.extract_strided_slice %291 {offsets = [0, 32], sizes = [2, 32], strides = [1, 1]} : vector<2x128xf32> to vector<2x32xf32>
    %294 = vector.extract_strided_slice %286 {offsets = [0, 64], sizes = [2, 32], strides = [1, 1]} : vector<2x128xf32> to vector<2x32xf32>
    %295 = math.tanh %294 : vector<2x32xf32>
    %296 = vector.extract_strided_slice %291 {offsets = [0, 96], sizes = [2, 32], strides = [1, 1]} : vector<2x128xf32> to vector<2x32xf32>
    %297 = arith.mulf %293, %280 : vector<2x32xf32>
    %298 = arith.mulf %292, %295 : vector<2x32xf32>
    %299 = arith.addf %297, %298 : vector<2x32xf32>
    %300 = math.tanh %299 : vector<2x32xf32>
    %301 = arith.mulf %296, %300 : vector<2x32xf32>
    %c8_69 = arith.constant 8 : index
    %c0_70 = arith.constant 0 : index
    %302 = vector.load %arg16[%c8_69, %c0_70] : memref<20x32xf32, #tpu.memory_space<vmem>>, vector<2x32xf32>
    tpu.vector_store %arg16[%c8_69, %c0_70], %301 {strides = array<i32>} : memref<20x32xf32, #tpu.memory_space<vmem>>, vector<2x32xf32>,
    %303 = vector.extract_strided_slice %205 {offsets = [10, 0], sizes = [2, 128], strides = [1, 1]} : vector<20x128xf32> to vector<2x128xf32>
    %cst_71 = arith.constant dense<0.000000e+00> : vector<2x128xf32>
    %304 = tpu.matmul %301, %201, %cst_71 {dimension_numbers = #tpu.dot_dimension_numbers<[1], [0], [0], [1], [0, 0, 1, 1], [], []>} : vector<2x32xf32>, vector<32x128xf32>, vector<2x128xf32> -> vector<2x128xf32>
    %305 = arith.addf %303, %304 : vector<2x128xf32>
    %306 = arith.negf %305 : vector<2x128xf32>
    %307 = math.exp %306 : vector<2x128xf32>
    %cst_72 = arith.constant 1.000000e+00 : f32
    %308 = vector.broadcast %cst_72 : f32 to vector<2x128xf32>
    %309 = arith.addf %308, %307 : vector<2x128xf32>
    %310 = arith.divf %308, %309 : vector<2x128xf32>
    %311 = vector.extract_strided_slice %310 {offsets = [0, 0], sizes = [2, 32], strides = [1, 1]} : vector<2x128xf32> to vector<2x32xf32>
    %312 = vector.extract_strided_slice %310 {offsets = [0, 32], sizes = [2, 32], strides = [1, 1]} : vector<2x128xf32> to vector<2x32xf32>
    %313 = vector.extract_strided_slice %305 {offsets = [0, 64], sizes = [2, 32], strides = [1, 1]} : vector<2x128xf32> to vector<2x32xf32>
    %314 = math.tanh %313 : vector<2x32xf32>
    %315 = vector.extract_strided_slice %310 {offsets = [0, 96], sizes = [2, 32], strides = [1, 1]} : vector<2x128xf32> to vector<2x32xf32>
    %316 = arith.mulf %312, %299 : vector<2x32xf32>
    %317 = arith.mulf %311, %314 : vector<2x32xf32>
    %318 = arith.addf %316, %317 : vector<2x32xf32>
    %319 = math.tanh %318 : vector<2x32xf32>
    %320 = arith.mulf %315, %319 : vector<2x32xf32>
    %c10_73 = arith.constant 10 : index
    %c0_74 = arith.constant 0 : index
    %321 = vector.load %arg16[%c10_73, %c0_74] : memref<20x32xf32, #tpu.memory_space<vmem>>, vector<2x32xf32>
    tpu.vector_store %arg16[%c10_73, %c0_74], %320 {strides = array<i32>} : memref<20x32xf32, #tpu.memory_space<vmem>>, vector<2x32xf32>,
    %322 = vector.extract_strided_slice %205 {offsets = [12, 0], sizes = [2, 128], strides = [1, 1]} : vector<20x128xf32> to vector<2x128xf32>
    %cst_75 = arith.constant dense<0.000000e+00> : vector<2x128xf32>
    %323 = tpu.matmul %320, %201, %cst_75 {dimension_numbers = #tpu.dot_dimension_numbers<[1], [0], [0], [1], [0, 0, 1, 1], [], []>} : vector<2x32xf32>, vector<32x128xf32>, vector<2x128xf32> -> vector<2x128xf32>
    %324 = arith.addf %322, %323 : vector<2x128xf32>
    %325 = arith.negf %324 : vector<2x128xf32>
    %326 = math.exp %325 : vector<2x128xf32>
    %cst_76 = arith.constant 1.000000e+00 : f32
    %327 = vector.broadcast %cst_76 : f32 to vector<2x128xf32>
    %328 = arith.addf %327, %326 : vector<2x128xf32>
    %329 = arith.divf %327, %328 : vector<2x128xf32>
    %330 = vector.extract_strided_slice %329 {offsets = [0, 0], sizes = [2, 32], strides = [1, 1]} : vector<2x128xf32> to vector<2x32xf32>
    %331 = vector.extract_strided_slice %329 {offsets = [0, 32], sizes = [2, 32], strides = [1, 1]} : vector<2x128xf32> to vector<2x32xf32>
    %332 = vector.extract_strided_slice %324 {offsets = [0, 64], sizes = [2, 32], strides = [1, 1]} : vector<2x128xf32> to vector<2x32xf32>
    %333 = math.tanh %332 : vector<2x32xf32>
    %334 = vector.extract_strided_slice %329 {offsets = [0, 96], sizes = [2, 32], strides = [1, 1]} : vector<2x128xf32> to vector<2x32xf32>
    %335 = arith.mulf %331, %318 : vector<2x32xf32>
    %336 = arith.mulf %330, %333 : vector<2x32xf32>
    %337 = arith.addf %335, %336 : vector<2x32xf32>
    %338 = math.tanh %337 : vector<2x32xf32>
    %339 = arith.mulf %334, %338 : vector<2x32xf32>
    %c12_77 = arith.constant 12 : index
    %c0_78 = arith.constant 0 : index
    %340 = vector.load %arg16[%c12_77, %c0_78] : memref<20x32xf32, #tpu.memory_space<vmem>>, vector<2x32xf32>
    tpu.vector_store %arg16[%c12_77, %c0_78], %339 {strides = array<i32>} : memref<20x32xf32, #tpu.memory_space<vmem>>, vector<2x32xf32>,
    %341 = vector.extract_strided_slice %205 {offsets = [14, 0], sizes = [2, 128], strides = [1, 1]} : vector<20x128xf32> to vector<2x128xf32>
    %cst_79 = arith.constant dense<0.000000e+00> : vector<2x128xf32>
    %342 = tpu.matmul %339, %201, %cst_79 {dimension_numbers = #tpu.dot_dimension_numbers<[1], [0], [0], [1], [0, 0, 1, 1], [], []>} : vector<2x32xf32>, vector<32x128xf32>, vector<2x128xf32> -> vector<2x128xf32>
    %343 = arith.addf %341, %342 : vector<2x128xf32>
    %344 = arith.negf %343 : vector<2x128xf32>
    %345 = math.exp %344 : vector<2x128xf32>
    %cst_80 = arith.constant 1.000000e+00 : f32
    %346 = vector.broadcast %cst_80 : f32 to vector<2x128xf32>
    %347 = arith.addf %346, %345 : vector<2x128xf32>
    %348 = arith.divf %346, %347 : vector<2x128xf32>
    %349 = vector.extract_strided_slice %348 {offsets = [0, 0], sizes = [2, 32], strides = [1, 1]} : vector<2x128xf32> to vector<2x32xf32>
    %350 = vector.extract_strided_slice %348 {offsets = [0, 32], sizes = [2, 32], strides = [1, 1]} : vector<2x128xf32> to vector<2x32xf32>
    %351 = vector.extract_strided_slice %343 {offsets = [0, 64], sizes = [2, 32], strides = [1, 1]} : vector<2x128xf32> to vector<2x32xf32>
    %352 = math.tanh %351 : vector<2x32xf32>
    %353 = vector.extract_strided_slice %348 {offsets = [0, 96], sizes = [2, 32], strides = [1, 1]} : vector<2x128xf32> to vector<2x32xf32>
    %354 = arith.mulf %350, %337 : vector<2x32xf32>
    %355 = arith.mulf %349, %352 : vector<2x32xf32>
    %356 = arith.addf %354, %355 : vector<2x32xf32>
    %357 = math.tanh %356 : vector<2x32xf32>
    %358 = arith.mulf %353, %357 : vector<2x32xf32>
    %c14_81 = arith.constant 14 : index
    %c0_82 = arith.constant 0 : index
    %359 = vector.load %arg16[%c14_81, %c0_82] : memref<20x32xf32, #tpu.memory_space<vmem>>, vector<2x32xf32>
    tpu.vector_store %arg16[%c14_81, %c0_82], %358 {strides = array<i32>} : memref<20x32xf32, #tpu.memory_space<vmem>>, vector<2x32xf32>,
    %360 = vector.extract_strided_slice %205 {offsets = [16, 0], sizes = [2, 128], strides = [1, 1]} : vector<20x128xf32> to vector<2x128xf32>
    %cst_83 = arith.constant dense<0.000000e+00> : vector<2x128xf32>
    %361 = tpu.matmul %358, %201, %cst_83 {dimension_numbers = #tpu.dot_dimension_numbers<[1], [0], [0], [1], [0, 0, 1, 1], [], []>} : vector<2x32xf32>, vector<32x128xf32>, vector<2x128xf32> -> vector<2x128xf32>
    %362 = arith.addf %360, %361 : vector<2x128xf32>
    %363 = arith.negf %362 : vector<2x128xf32>
    %364 = math.exp %363 : vector<2x128xf32>
    %cst_84 = arith.constant 1.000000e+00 : f32
    %365 = vector.broadcast %cst_84 : f32 to vector<2x128xf32>
    %366 = arith.addf %365, %364 : vector<2x128xf32>
    %367 = arith.divf %365, %366 : vector<2x128xf32>
    %368 = vector.extract_strided_slice %367 {offsets = [0, 0], sizes = [2, 32], strides = [1, 1]} : vector<2x128xf32> to vector<2x32xf32>
    %369 = vector.extract_strided_slice %367 {offsets = [0, 32], sizes = [2, 32], strides = [1, 1]} : vector<2x128xf32> to vector<2x32xf32>
    %370 = vector.extract_strided_slice %362 {offsets = [0, 64], sizes = [2, 32], strides = [1, 1]} : vector<2x128xf32> to vector<2x32xf32>
    %371 = math.tanh %370 : vector<2x32xf32>
    %372 = vector.extract_strided_slice %367 {offsets = [0, 96], sizes = [2, 32], strides = [1, 1]} : vector<2x128xf32> to vector<2x32xf32>
    %373 = arith.mulf %369, %356 : vector<2x32xf32>
    %374 = arith.mulf %368, %371 : vector<2x32xf32>
    %375 = arith.addf %373, %374 : vector<2x32xf32>
    %376 = math.tanh %375 : vector<2x32xf32>
    %377 = arith.mulf %372, %376 : vector<2x32xf32>
    %c16_85 = arith.constant 16 : index
    %c0_86 = arith.constant 0 : index
    %378 = vector.load %arg16[%c16_85, %c0_86] : memref<20x32xf32, #tpu.memory_space<vmem>>, vector<2x32xf32>
    tpu.vector_store %arg16[%c16_85, %c0_86], %377 {strides = array<i32>} : memref<20x32xf32, #tpu.memory_space<vmem>>, vector<2x32xf32>,
    %379 = vector.extract_strided_slice %205 {offsets = [18, 0], sizes = [2, 128], strides = [1, 1]} : vector<20x128xf32> to vector<2x128xf32>
    %cst_87 = arith.constant dense<0.000000e+00> : vector<2x128xf32>
    %380 = tpu.matmul %377, %201, %cst_87 {dimension_numbers = #tpu.dot_dimension_numbers<[1], [0], [0], [1], [0, 0, 1, 1], [], []>} : vector<2x32xf32>, vector<32x128xf32>, vector<2x128xf32> -> vector<2x128xf32>
    %381 = arith.addf %379, %380 : vector<2x128xf32>
    %382 = arith.negf %381 : vector<2x128xf32>
    %383 = math.exp %382 : vector<2x128xf32>
    %cst_88 = arith.constant 1.000000e+00 : f32
    %384 = vector.broadcast %cst_88 : f32 to vector<2x128xf32>
    %385 = arith.addf %384, %383 : vector<2x128xf32>
    %386 = arith.divf %384, %385 : vector<2x128xf32>
    %387 = vector.extract_strided_slice %386 {offsets = [0, 0], sizes = [2, 32], strides = [1, 1]} : vector<2x128xf32> to vector<2x32xf32>
    %388 = vector.extract_strided_slice %386 {offsets = [0, 32], sizes = [2, 32], strides = [1, 1]} : vector<2x128xf32> to vector<2x32xf32>
    %389 = vector.extract_strided_slice %381 {offsets = [0, 64], sizes = [2, 32], strides = [1, 1]} : vector<2x128xf32> to vector<2x32xf32>
    %390 = math.tanh %389 : vector<2x32xf32>
    %391 = vector.extract_strided_slice %386 {offsets = [0, 96], sizes = [2, 32], strides = [1, 1]} : vector<2x128xf32> to vector<2x32xf32>
    %392 = arith.mulf %388, %375 : vector<2x32xf32>
    %393 = arith.mulf %387, %390 : vector<2x32xf32>
    %394 = arith.addf %392, %393 : vector<2x32xf32>
    %395 = math.tanh %394 : vector<2x32xf32>
    %396 = arith.mulf %391, %395 : vector<2x32xf32>
    %c18_89 = arith.constant 18 : index
    %c0_90 = arith.constant 0 : index
    %397 = vector.load %arg16[%c18_89, %c0_90] : memref<20x32xf32, #tpu.memory_space<vmem>>, vector<2x32xf32>
    tpu.vector_store %arg16[%c18_89, %c0_90], %396 {strides = array<i32>} : memref<20x32xf32, #tpu.memory_space<vmem>>, vector<2x32xf32>,
    %c0_91 = arith.constant 0 : index
    %c0_92 = arith.constant 0 : index
    %398 = vector.load %arg16[%c0_91, %c0_92] : memref<20x32xf32, #tpu.memory_space<vmem>>, vector<20x32xf32>
    %c0_93 = arith.constant 0 : index
    %c0_94 = arith.constant 0 : index
    %399 = vector.load %arg8[%c0_93, %c0_94] : memref<32x64xf32, #tpu.memory_space<vmem>>, vector<32x64xf32>
    %c0_95 = arith.constant 0 : index
    %c0_96 = arith.constant 0 : index
    %400 = vector.load %arg9[%c0_95, %c0_96] : memref<16x64xf32, #tpu.memory_space<vmem>>, vector<16x64xf32>
    %c0_97 = arith.constant 0 : index
    %c0_98 = arith.constant 0 : index
    %401 = vector.load %arg10[%c0_97, %c0_98] : memref<1x64xf32, #tpu.memory_space<vmem>>, vector<1x64xf32>
    %cst_99 = arith.constant dense<0.000000e+00> : vector<20x64xf32>
    %402 = tpu.matmul %398, %399, %cst_99 {dimension_numbers = #tpu.dot_dimension_numbers<[1], [0], [0], [1], [0, 0, 1, 1], [], []>} : vector<20x32xf32>, vector<32x64xf32>, vector<20x64xf32> -> vector<20x64xf32>
    %403 = vector.broadcast %401 : vector<1x64xf32> to vector<20x64xf32>
    %404 = arith.addf %402, %403 : vector<20x64xf32>
    %cst_100 = arith.constant 0.000000e+00 : f32
    %405 = vector.broadcast %cst_100 : f32 to vector<2x16xf32>
    %cst_101 = arith.constant 0.000000e+00 : f32
    %406 = vector.broadcast %cst_101 : f32 to vector<2x16xf32>
    %407 = vector.extract_strided_slice %404 {offsets = [0, 0], sizes = [2, 64], strides = [1, 1]} : vector<20x64xf32> to vector<2x64xf32>
    %cst_102 = arith.constant dense<0.000000e+00> : vector<2x64xf32>
    %408 = tpu.matmul %405, %400, %cst_102 {dimension_numbers = #tpu.dot_dimension_numbers<[1], [0], [0], [1], [0, 0, 1, 1], [], []>} : vector<2x16xf32>, vector<16x64xf32>, vector<2x64xf32> -> vector<2x64xf32>
    %409 = arith.addf %407, %408 : vector<2x64xf32>
    %410 = arith.negf %409 : vector<2x64xf32>
    %411 = math.exp %410 : vector<2x64xf32>
    %cst_103 = arith.constant 1.000000e+00 : f32
    %412 = vector.broadcast %cst_103 : f32 to vector<2x64xf32>
    %413 = arith.addf %412, %411 : vector<2x64xf32>
    %414 = arith.divf %412, %413 : vector<2x64xf32>
    %415 = vector.extract_strided_slice %414 {offsets = [0, 0], sizes = [2, 16], strides = [1, 1]} : vector<2x64xf32> to vector<2x16xf32>
    %416 = vector.extract_strided_slice %414 {offsets = [0, 16], sizes = [2, 16], strides = [1, 1]} : vector<2x64xf32> to vector<2x16xf32>
    %417 = vector.extract_strided_slice %409 {offsets = [0, 32], sizes = [2, 16], strides = [1, 1]} : vector<2x64xf32> to vector<2x16xf32>
    %418 = math.tanh %417 : vector<2x16xf32>
    %419 = vector.extract_strided_slice %414 {offsets = [0, 48], sizes = [2, 16], strides = [1, 1]} : vector<2x64xf32> to vector<2x16xf32>
    %420 = arith.mulf %416, %406 : vector<2x16xf32>
    %421 = arith.mulf %415, %418 : vector<2x16xf32>
    %422 = arith.addf %420, %421 : vector<2x16xf32>
    %423 = math.tanh %422 : vector<2x16xf32>
    %424 = arith.mulf %419, %423 : vector<2x16xf32>
    %c0_104 = arith.constant 0 : index
    %c0_105 = arith.constant 0 : index
    %425 = vector.load %arg17[%c0_104, %c0_105] : memref<2x160xf32, #tpu.memory_space<vmem>>, vector<2x16xf32>
    tpu.vector_store %arg17[%c0_104, %c0_105], %424 {strides = array<i32>} : memref<2x160xf32, #tpu.memory_space<vmem>>, vector<2x16xf32>,
    %426 = vector.extract_strided_slice %404 {offsets = [2, 0], sizes = [2, 64], strides = [1, 1]} : vector<20x64xf32> to vector<2x64xf32>
    %cst_106 = arith.constant dense<0.000000e+00> : vector<2x64xf32>
    %427 = tpu.matmul %424, %400, %cst_106 {dimension_numbers = #tpu.dot_dimension_numbers<[1], [0], [0], [1], [0, 0, 1, 1], [], []>} : vector<2x16xf32>, vector<16x64xf32>, vector<2x64xf32> -> vector<2x64xf32>
    %428 = arith.addf %426, %427 : vector<2x64xf32>
    %429 = arith.negf %428 : vector<2x64xf32>
    %430 = math.exp %429 : vector<2x64xf32>
    %cst_107 = arith.constant 1.000000e+00 : f32
    %431 = vector.broadcast %cst_107 : f32 to vector<2x64xf32>
    %432 = arith.addf %431, %430 : vector<2x64xf32>
    %433 = arith.divf %431, %432 : vector<2x64xf32>
    %434 = vector.extract_strided_slice %433 {offsets = [0, 0], sizes = [2, 16], strides = [1, 1]} : vector<2x64xf32> to vector<2x16xf32>
    %435 = vector.extract_strided_slice %433 {offsets = [0, 16], sizes = [2, 16], strides = [1, 1]} : vector<2x64xf32> to vector<2x16xf32>
    %436 = vector.extract_strided_slice %428 {offsets = [0, 32], sizes = [2, 16], strides = [1, 1]} : vector<2x64xf32> to vector<2x16xf32>
    %437 = math.tanh %436 : vector<2x16xf32>
    %438 = vector.extract_strided_slice %433 {offsets = [0, 48], sizes = [2, 16], strides = [1, 1]} : vector<2x64xf32> to vector<2x16xf32>
    %439 = arith.mulf %435, %422 : vector<2x16xf32>
    %440 = arith.mulf %434, %437 : vector<2x16xf32>
    %441 = arith.addf %439, %440 : vector<2x16xf32>
    %442 = math.tanh %441 : vector<2x16xf32>
    %443 = arith.mulf %438, %442 : vector<2x16xf32>
    %c0_108 = arith.constant 0 : index
    %c16_109 = arith.constant 16 : index
    %444 = vector.load %arg17[%c0_108, %c16_109] : memref<2x160xf32, #tpu.memory_space<vmem>>, vector<2x16xf32>
    tpu.vector_store %arg17[%c0_108, %c16_109], %443 {strides = array<i32>} : memref<2x160xf32, #tpu.memory_space<vmem>>, vector<2x16xf32>,
    %445 = vector.extract_strided_slice %404 {offsets = [4, 0], sizes = [2, 64], strides = [1, 1]} : vector<20x64xf32> to vector<2x64xf32>
    %cst_110 = arith.constant dense<0.000000e+00> : vector<2x64xf32>
    %446 = tpu.matmul %443, %400, %cst_110 {dimension_numbers = #tpu.dot_dimension_numbers<[1], [0], [0], [1], [0, 0, 1, 1], [], []>} : vector<2x16xf32>, vector<16x64xf32>, vector<2x64xf32> -> vector<2x64xf32>
    %447 = arith.addf %445, %446 : vector<2x64xf32>
    %448 = arith.negf %447 : vector<2x64xf32>
    %449 = math.exp %448 : vector<2x64xf32>
    %cst_111 = arith.constant 1.000000e+00 : f32
    %450 = vector.broadcast %cst_111 : f32 to vector<2x64xf32>
    %451 = arith.addf %450, %449 : vector<2x64xf32>
    %452 = arith.divf %450, %451 : vector<2x64xf32>
    %453 = vector.extract_strided_slice %452 {offsets = [0, 0], sizes = [2, 16], strides = [1, 1]} : vector<2x64xf32> to vector<2x16xf32>
    %454 = vector.extract_strided_slice %452 {offsets = [0, 16], sizes = [2, 16], strides = [1, 1]} : vector<2x64xf32> to vector<2x16xf32>
    %455 = vector.extract_strided_slice %447 {offsets = [0, 32], sizes = [2, 16], strides = [1, 1]} : vector<2x64xf32> to vector<2x16xf32>
    %456 = math.tanh %455 : vector<2x16xf32>
    %457 = vector.extract_strided_slice %452 {offsets = [0, 48], sizes = [2, 16], strides = [1, 1]} : vector<2x64xf32> to vector<2x16xf32>
    %458 = arith.mulf %454, %441 : vector<2x16xf32>
    %459 = arith.mulf %453, %456 : vector<2x16xf32>
    %460 = arith.addf %458, %459 : vector<2x16xf32>
    %461 = math.tanh %460 : vector<2x16xf32>
    %462 = arith.mulf %457, %461 : vector<2x16xf32>
    %c0_112 = arith.constant 0 : index
    %c32 = arith.constant 32 : index
    %463 = vector.load %arg17[%c0_112, %c32] : memref<2x160xf32, #tpu.memory_space<vmem>>, vector<2x16xf32>
    tpu.vector_store %arg17[%c0_112, %c32], %462 {strides = array<i32>} : memref<2x160xf32, #tpu.memory_space<vmem>>, vector<2x16xf32>,
    %464 = vector.extract_strided_slice %404 {offsets = [6, 0], sizes = [2, 64], strides = [1, 1]} : vector<20x64xf32> to vector<2x64xf32>
    %cst_113 = arith.constant dense<0.000000e+00> : vector<2x64xf32>
    %465 = tpu.matmul %462, %400, %cst_113 {dimension_numbers = #tpu.dot_dimension_numbers<[1], [0], [0], [1], [0, 0, 1, 1], [], []>} : vector<2x16xf32>, vector<16x64xf32>, vector<2x64xf32> -> vector<2x64xf32>
    %466 = arith.addf %464, %465 : vector<2x64xf32>
    %467 = arith.negf %466 : vector<2x64xf32>
    %468 = math.exp %467 : vector<2x64xf32>
    %cst_114 = arith.constant 1.000000e+00 : f32
    %469 = vector.broadcast %cst_114 : f32 to vector<2x64xf32>
    %470 = arith.addf %469, %468 : vector<2x64xf32>
    %471 = arith.divf %469, %470 : vector<2x64xf32>
    %472 = vector.extract_strided_slice %471 {offsets = [0, 0], sizes = [2, 16], strides = [1, 1]} : vector<2x64xf32> to vector<2x16xf32>
    %473 = vector.extract_strided_slice %471 {offsets = [0, 16], sizes = [2, 16], strides = [1, 1]} : vector<2x64xf32> to vector<2x16xf32>
    %474 = vector.extract_strided_slice %466 {offsets = [0, 32], sizes = [2, 16], strides = [1, 1]} : vector<2x64xf32> to vector<2x16xf32>
    %475 = math.tanh %474 : vector<2x16xf32>
    %476 = vector.extract_strided_slice %471 {offsets = [0, 48], sizes = [2, 16], strides = [1, 1]} : vector<2x64xf32> to vector<2x16xf32>
    %477 = arith.mulf %473, %460 : vector<2x16xf32>
    %478 = arith.mulf %472, %475 : vector<2x16xf32>
    %479 = arith.addf %477, %478 : vector<2x16xf32>
    %480 = math.tanh %479 : vector<2x16xf32>
    %481 = arith.mulf %476, %480 : vector<2x16xf32>
    %c0_115 = arith.constant 0 : index
    %c48 = arith.constant 48 : index
    %482 = vector.load %arg17[%c0_115, %c48] : memref<2x160xf32, #tpu.memory_space<vmem>>, vector<2x16xf32>
    tpu.vector_store %arg17[%c0_115, %c48], %481 {strides = array<i32>} : memref<2x160xf32, #tpu.memory_space<vmem>>, vector<2x16xf32>,
    %483 = vector.extract_strided_slice %404 {offsets = [8, 0], sizes = [2, 64], strides = [1, 1]} : vector<20x64xf32> to vector<2x64xf32>
    %cst_116 = arith.constant dense<0.000000e+00> : vector<2x64xf32>
    %484 = tpu.matmul %481, %400, %cst_116 {dimension_numbers = #tpu.dot_dimension_numbers<[1], [0], [0], [1], [0, 0, 1, 1], [], []>} : vector<2x16xf32>, vector<16x64xf32>, vector<2x64xf32> -> vector<2x64xf32>
    %485 = arith.addf %483, %484 : vector<2x64xf32>
    %486 = arith.negf %485 : vector<2x64xf32>
    %487 = math.exp %486 : vector<2x64xf32>
    %cst_117 = arith.constant 1.000000e+00 : f32
    %488 = vector.broadcast %cst_117 : f32 to vector<2x64xf32>
    %489 = arith.addf %488, %487 : vector<2x64xf32>
    %490 = arith.divf %488, %489 : vector<2x64xf32>
    %491 = vector.extract_strided_slice %490 {offsets = [0, 0], sizes = [2, 16], strides = [1, 1]} : vector<2x64xf32> to vector<2x16xf32>
    %492 = vector.extract_strided_slice %490 {offsets = [0, 16], sizes = [2, 16], strides = [1, 1]} : vector<2x64xf32> to vector<2x16xf32>
    %493 = vector.extract_strided_slice %485 {offsets = [0, 32], sizes = [2, 16], strides = [1, 1]} : vector<2x64xf32> to vector<2x16xf32>
    %494 = math.tanh %493 : vector<2x16xf32>
    %495 = vector.extract_strided_slice %490 {offsets = [0, 48], sizes = [2, 16], strides = [1, 1]} : vector<2x64xf32> to vector<2x16xf32>
    %496 = arith.mulf %492, %479 : vector<2x16xf32>
    %497 = arith.mulf %491, %494 : vector<2x16xf32>
    %498 = arith.addf %496, %497 : vector<2x16xf32>
    %499 = math.tanh %498 : vector<2x16xf32>
    %500 = arith.mulf %495, %499 : vector<2x16xf32>
    %c0_118 = arith.constant 0 : index
    %c64 = arith.constant 64 : index
    %501 = vector.load %arg17[%c0_118, %c64] : memref<2x160xf32, #tpu.memory_space<vmem>>, vector<2x16xf32>
    tpu.vector_store %arg17[%c0_118, %c64], %500 {strides = array<i32>} : memref<2x160xf32, #tpu.memory_space<vmem>>, vector<2x16xf32>,
    %502 = vector.extract_strided_slice %404 {offsets = [10, 0], sizes = [2, 64], strides = [1, 1]} : vector<20x64xf32> to vector<2x64xf32>
    %cst_119 = arith.constant dense<0.000000e+00> : vector<2x64xf32>
    %503 = tpu.matmul %500, %400, %cst_119 {dimension_numbers = #tpu.dot_dimension_numbers<[1], [0], [0], [1], [0, 0, 1, 1], [], []>} : vector<2x16xf32>, vector<16x64xf32>, vector<2x64xf32> -> vector<2x64xf32>
    %504 = arith.addf %502, %503 : vector<2x64xf32>
    %505 = arith.negf %504 : vector<2x64xf32>
    %506 = math.exp %505 : vector<2x64xf32>
    %cst_120 = arith.constant 1.000000e+00 : f32
    %507 = vector.broadcast %cst_120 : f32 to vector<2x64xf32>
    %508 = arith.addf %507, %506 : vector<2x64xf32>
    %509 = arith.divf %507, %508 : vector<2x64xf32>
    %510 = vector.extract_strided_slice %509 {offsets = [0, 0], sizes = [2, 16], strides = [1, 1]} : vector<2x64xf32> to vector<2x16xf32>
    %511 = vector.extract_strided_slice %509 {offsets = [0, 16], sizes = [2, 16], strides = [1, 1]} : vector<2x64xf32> to vector<2x16xf32>
    %512 = vector.extract_strided_slice %504 {offsets = [0, 32], sizes = [2, 16], strides = [1, 1]} : vector<2x64xf32> to vector<2x16xf32>
    %513 = math.tanh %512 : vector<2x16xf32>
    %514 = vector.extract_strided_slice %509 {offsets = [0, 48], sizes = [2, 16], strides = [1, 1]} : vector<2x64xf32> to vector<2x16xf32>
    %515 = arith.mulf %511, %498 : vector<2x16xf32>
    %516 = arith.mulf %510, %513 : vector<2x16xf32>
    %517 = arith.addf %515, %516 : vector<2x16xf32>
    %518 = math.tanh %517 : vector<2x16xf32>
    %519 = arith.mulf %514, %518 : vector<2x16xf32>
    %c0_121 = arith.constant 0 : index
    %c80 = arith.constant 80 : index
    %520 = vector.load %arg17[%c0_121, %c80] : memref<2x160xf32, #tpu.memory_space<vmem>>, vector<2x16xf32>
    tpu.vector_store %arg17[%c0_121, %c80], %519 {strides = array<i32>} : memref<2x160xf32, #tpu.memory_space<vmem>>, vector<2x16xf32>,
    %521 = vector.extract_strided_slice %404 {offsets = [12, 0], sizes = [2, 64], strides = [1, 1]} : vector<20x64xf32> to vector<2x64xf32>
    %cst_122 = arith.constant dense<0.000000e+00> : vector<2x64xf32>
    %522 = tpu.matmul %519, %400, %cst_122 {dimension_numbers = #tpu.dot_dimension_numbers<[1], [0], [0], [1], [0, 0, 1, 1], [], []>} : vector<2x16xf32>, vector<16x64xf32>, vector<2x64xf32> -> vector<2x64xf32>
    %523 = arith.addf %521, %522 : vector<2x64xf32>
    %524 = arith.negf %523 : vector<2x64xf32>
    %525 = math.exp %524 : vector<2x64xf32>
    %cst_123 = arith.constant 1.000000e+00 : f32
    %526 = vector.broadcast %cst_123 : f32 to vector<2x64xf32>
    %527 = arith.addf %526, %525 : vector<2x64xf32>
    %528 = arith.divf %526, %527 : vector<2x64xf32>
    %529 = vector.extract_strided_slice %528 {offsets = [0, 0], sizes = [2, 16], strides = [1, 1]} : vector<2x64xf32> to vector<2x16xf32>
    %530 = vector.extract_strided_slice %528 {offsets = [0, 16], sizes = [2, 16], strides = [1, 1]} : vector<2x64xf32> to vector<2x16xf32>
    %531 = vector.extract_strided_slice %523 {offsets = [0, 32], sizes = [2, 16], strides = [1, 1]} : vector<2x64xf32> to vector<2x16xf32>
    %532 = math.tanh %531 : vector<2x16xf32>
    %533 = vector.extract_strided_slice %528 {offsets = [0, 48], sizes = [2, 16], strides = [1, 1]} : vector<2x64xf32> to vector<2x16xf32>
    %534 = arith.mulf %530, %517 : vector<2x16xf32>
    %535 = arith.mulf %529, %532 : vector<2x16xf32>
    %536 = arith.addf %534, %535 : vector<2x16xf32>
    %537 = math.tanh %536 : vector<2x16xf32>
    %538 = arith.mulf %533, %537 : vector<2x16xf32>
    %c0_124 = arith.constant 0 : index
    %c96 = arith.constant 96 : index
    %539 = vector.load %arg17[%c0_124, %c96] : memref<2x160xf32, #tpu.memory_space<vmem>>, vector<2x16xf32>
    tpu.vector_store %arg17[%c0_124, %c96], %538 {strides = array<i32>} : memref<2x160xf32, #tpu.memory_space<vmem>>, vector<2x16xf32>,
    %540 = vector.extract_strided_slice %404 {offsets = [14, 0], sizes = [2, 64], strides = [1, 1]} : vector<20x64xf32> to vector<2x64xf32>
    %cst_125 = arith.constant dense<0.000000e+00> : vector<2x64xf32>
    %541 = tpu.matmul %538, %400, %cst_125 {dimension_numbers = #tpu.dot_dimension_numbers<[1], [0], [0], [1], [0, 0, 1, 1], [], []>} : vector<2x16xf32>, vector<16x64xf32>, vector<2x64xf32> -> vector<2x64xf32>
    %542 = arith.addf %540, %541 : vector<2x64xf32>
    %543 = arith.negf %542 : vector<2x64xf32>
    %544 = math.exp %543 : vector<2x64xf32>
    %cst_126 = arith.constant 1.000000e+00 : f32
    %545 = vector.broadcast %cst_126 : f32 to vector<2x64xf32>
    %546 = arith.addf %545, %544 : vector<2x64xf32>
    %547 = arith.divf %545, %546 : vector<2x64xf32>
    %548 = vector.extract_strided_slice %547 {offsets = [0, 0], sizes = [2, 16], strides = [1, 1]} : vector<2x64xf32> to vector<2x16xf32>
    %549 = vector.extract_strided_slice %547 {offsets = [0, 16], sizes = [2, 16], strides = [1, 1]} : vector<2x64xf32> to vector<2x16xf32>
    %550 = vector.extract_strided_slice %542 {offsets = [0, 32], sizes = [2, 16], strides = [1, 1]} : vector<2x64xf32> to vector<2x16xf32>
    %551 = math.tanh %550 : vector<2x16xf32>
    %552 = vector.extract_strided_slice %547 {offsets = [0, 48], sizes = [2, 16], strides = [1, 1]} : vector<2x64xf32> to vector<2x16xf32>
    %553 = arith.mulf %549, %536 : vector<2x16xf32>
    %554 = arith.mulf %548, %551 : vector<2x16xf32>
    %555 = arith.addf %553, %554 : vector<2x16xf32>
    %556 = math.tanh %555 : vector<2x16xf32>
    %557 = arith.mulf %552, %556 : vector<2x16xf32>
    %c0_127 = arith.constant 0 : index
    %c112 = arith.constant 112 : index
    %558 = vector.load %arg17[%c0_127, %c112] : memref<2x160xf32, #tpu.memory_space<vmem>>, vector<2x16xf32>
    tpu.vector_store %arg17[%c0_127, %c112], %557 {strides = array<i32>} : memref<2x160xf32, #tpu.memory_space<vmem>>, vector<2x16xf32>,
    %559 = vector.extract_strided_slice %404 {offsets = [16, 0], sizes = [2, 64], strides = [1, 1]} : vector<20x64xf32> to vector<2x64xf32>
    %cst_128 = arith.constant dense<0.000000e+00> : vector<2x64xf32>
    %560 = tpu.matmul %557, %400, %cst_128 {dimension_numbers = #tpu.dot_dimension_numbers<[1], [0], [0], [1], [0, 0, 1, 1], [], []>} : vector<2x16xf32>, vector<16x64xf32>, vector<2x64xf32> -> vector<2x64xf32>
    %561 = arith.addf %559, %560 : vector<2x64xf32>
    %562 = arith.negf %561 : vector<2x64xf32>
    %563 = math.exp %562 : vector<2x64xf32>
    %cst_129 = arith.constant 1.000000e+00 : f32
    %564 = vector.broadcast %cst_129 : f32 to vector<2x64xf32>
    %565 = arith.addf %564, %563 : vector<2x64xf32>
    %566 = arith.divf %564, %565 : vector<2x64xf32>
    %567 = vector.extract_strided_slice %566 {offsets = [0, 0], sizes = [2, 16], strides = [1, 1]} : vector<2x64xf32> to vector<2x16xf32>
    %568 = vector.extract_strided_slice %566 {offsets = [0, 16], sizes = [2, 16], strides = [1, 1]} : vector<2x64xf32> to vector<2x16xf32>
    %569 = vector.extract_strided_slice %561 {offsets = [0, 32], sizes = [2, 16], strides = [1, 1]} : vector<2x64xf32> to vector<2x16xf32>
    %570 = math.tanh %569 : vector<2x16xf32>
    %571 = vector.extract_strided_slice %566 {offsets = [0, 48], sizes = [2, 16], strides = [1, 1]} : vector<2x64xf32> to vector<2x16xf32>
    %572 = arith.mulf %568, %555 : vector<2x16xf32>
    %573 = arith.mulf %567, %570 : vector<2x16xf32>
    %574 = arith.addf %572, %573 : vector<2x16xf32>
    %575 = math.tanh %574 : vector<2x16xf32>
    %576 = arith.mulf %571, %575 : vector<2x16xf32>
    %c0_130 = arith.constant 0 : index
    %c128 = arith.constant 128 : index
    %577 = vector.load %arg17[%c0_130, %c128] : memref<2x160xf32, #tpu.memory_space<vmem>>, vector<2x16xf32>
    tpu.vector_store %arg17[%c0_130, %c128], %576 {strides = array<i32>} : memref<2x160xf32, #tpu.memory_space<vmem>>, vector<2x16xf32>,
    %578 = vector.extract_strided_slice %404 {offsets = [18, 0], sizes = [2, 64], strides = [1, 1]} : vector<20x64xf32> to vector<2x64xf32>
    %cst_131 = arith.constant dense<0.000000e+00> : vector<2x64xf32>
    %579 = tpu.matmul %576, %400, %cst_131 {dimension_numbers = #tpu.dot_dimension_numbers<[1], [0], [0], [1], [0, 0, 1, 1], [], []>} : vector<2x16xf32>, vector<16x64xf32>, vector<2x64xf32> -> vector<2x64xf32>
    %580 = arith.addf %578, %579 : vector<2x64xf32>
    %581 = arith.negf %580 : vector<2x64xf32>
    %582 = math.exp %581 : vector<2x64xf32>
    %cst_132 = arith.constant 1.000000e+00 : f32
    %583 = vector.broadcast %cst_132 : f32 to vector<2x64xf32>
    %584 = arith.addf %583, %582 : vector<2x64xf32>
    %585 = arith.divf %583, %584 : vector<2x64xf32>
    %586 = vector.extract_strided_slice %585 {offsets = [0, 0], sizes = [2, 16], strides = [1, 1]} : vector<2x64xf32> to vector<2x16xf32>
    %587 = vector.extract_strided_slice %585 {offsets = [0, 16], sizes = [2, 16], strides = [1, 1]} : vector<2x64xf32> to vector<2x16xf32>
    %588 = vector.extract_strided_slice %580 {offsets = [0, 32], sizes = [2, 16], strides = [1, 1]} : vector<2x64xf32> to vector<2x16xf32>
    %589 = math.tanh %588 : vector<2x16xf32>
    %590 = vector.extract_strided_slice %585 {offsets = [0, 48], sizes = [2, 16], strides = [1, 1]} : vector<2x64xf32> to vector<2x16xf32>
    %591 = arith.mulf %587, %574 : vector<2x16xf32>
    %592 = arith.mulf %586, %589 : vector<2x16xf32>
    %593 = arith.addf %591, %592 : vector<2x16xf32>
    %594 = math.tanh %593 : vector<2x16xf32>
    %595 = arith.mulf %590, %594 : vector<2x16xf32>
    %c0_133 = arith.constant 0 : index
    %c144 = arith.constant 144 : index
    %596 = vector.load %arg17[%c0_133, %c144] : memref<2x160xf32, #tpu.memory_space<vmem>>, vector<2x16xf32>
    tpu.vector_store %arg17[%c0_133, %c144], %595 {strides = array<i32>} : memref<2x160xf32, #tpu.memory_space<vmem>>, vector<2x16xf32>,
    %c0_134 = arith.constant 0 : index
    %c0_135 = arith.constant 0 : index
    %597 = vector.load %arg1[%c0_134, %c0_135] : memref<2x40xf32, #tpu.memory_space<vmem>>, vector<2x40xf32>
    %c0_136 = arith.constant 0 : index
    %c0_137 = arith.constant 0 : index
    %598 = vector.load %arg11[%c0_136, %c0_137] : memref<40x16xf32, #tpu.memory_space<vmem>>, vector<40x16xf32>
    %cst_138 = arith.constant dense<0.000000e+00> : vector<2x16xf32>
    %599 = tpu.matmul %597, %598, %cst_138 {dimension_numbers = #tpu.dot_dimension_numbers<[1], [0], [0], [1], [0, 0, 1, 1], [], []>} : vector<2x40xf32>, vector<40x16xf32>, vector<2x16xf32> -> vector<2x16xf32>
    %c0_139 = arith.constant 0 : index
    %c0_140 = arith.constant 0 : index
    %600 = vector.load %arg17[%c0_139, %c0_140] : memref<2x160xf32, #tpu.memory_space<vmem>>, vector<2x160xf32>
    %c0_141 = arith.constant 0 : index
    %c0_142 = arith.constant 0 : index
    %601 = vector.load %arg12[%c0_141, %c0_142] : memref<160x16xf32, #tpu.memory_space<vmem>>, vector<160x16xf32>
    %cst_143 = arith.constant dense<0.000000e+00> : vector<2x16xf32>
    %602 = tpu.matmul %600, %601, %cst_143 {dimension_numbers = #tpu.dot_dimension_numbers<[1], [0], [0], [1], [0, 0, 1, 1], [], []>} : vector<2x160xf32>, vector<160x16xf32>, vector<2x16xf32> -> vector<2x16xf32>
    %603 = arith.addf %599, %602 : vector<2x16xf32>
    %c0_144 = arith.constant 0 : index
    %c0_145 = arith.constant 0 : index
    %604 = vector.load %arg13[%c0_144, %c0_145] : memref<1x16xf32, #tpu.memory_space<vmem>>, vector<1x16xf32>
    %605 = vector.broadcast %604 : vector<1x16xf32> to vector<2x16xf32>
    %606 = arith.addf %603, %605 : vector<2x16xf32>
    %c0_146 = arith.constant 0 : index
    %c0_147 = arith.constant 0 : index
    %607 = vector.load %arg14[%c0_146, %c0_147] : memref<2x16xf32, #tpu.memory_space<vmem>>, vector<2x16xf32>
    tpu.vector_store %arg14[%c0_146, %c0_147], %606 {strides = array<i32>} : memref<2x16xf32, #tpu.memory_space<vmem>>, vector<2x16xf32>,
    return
  }
}

</mosaic_0001>

<bundles_post_ra>
// kernel: encoder_ff_forward.1
= control target key start
LH: loop header
LB: loop body
LE: loop exit
PB: predicated region body
PF: predicated region fallthrough
CT: control target
= control target key end

     0   :  { %v4979_v3 = vmov 0.0|0.0   ;;  %v4980_v5 = vmov 0.0   ;;  %vm73_vm0 = vcmask 1043456   ;;  %vm63_vm1 = vcmask 31744   ;;  %s5826_s0 = inlined_call_operand.vmem [shape: f32[20,4], index: 0, kind: input, shape index: {}]   ;;  %s5827_s1 = inlined_call_operand.vmem [shape: f32[2,40], index: 1, kind: input, shape index: {}]   ;;  %s5828_s2 = inlined_call_operand.vmem [shape: f32[4,128], index: 2, kind: input, shape index: {}]   ;;  %s5829_s3 = inlined_call_operand.vmem [shape: f32[32,128], index: 3, kind: input, shape index: {}]   ;;  %s5830_s4 = inlined_call_operand.vmem [shape: f32[1,128], index: 4, kind: input, shape index: {}]   ;;  %s5831_s5 = inlined_call_operand.vmem [shape: f32[32,128], index: 5, kind: input, shape index: {}]   ;;  %s5832_s6 = inlined_call_operand.vmem [shape: f32[32,128], index: 6, kind: input, shape index: {}]   ;;  %s5833_s7 = inlined_call_operand.vmem [shape: f32[1,128], index: 7, kind: input, shape index: {}]   ;;  %s5834_s8 = inlined_call_operand.vmem [shape: f32[32,64], index: 8, kind: input, shape index: {}]   ;;  %s5835_s9 = inlined_call_operand.vmem [shape: f32[16,64], index: 9, kind: input, shape index: {}]   ;;  %s5836_s10 = inlined_call_operand.vmem [shape: f32[1,64], index: 10, kind: input, shape index: {}]   ;;  %s5837_s11 = inlined_call_operand.vmem [shape: f32[40,16], index: 11, kind: input, shape index: {}]   ;;  %s5838_s12 = inlined_call_operand.vmem [shape: f32[160,16], index: 12, kind: input, shape index: {}]   ;;  %s5839_s13 = inlined_call_operand.vmem [shape: f32[1,16], index: 13, kind: input, shape index: {}]   ;;  %s5840_s14 = inlined_call_operand.hbm [shape: f32[2,16], index: 14, kind: output, shape index: {}]  }
   0x1   :  { %v52_v0 = vld [vmem:[%s5829_s3] sm:$0xff]  ;;  %v53_v1 = vld [vmem:[%s5829_s3 + $0x8] sm:$0xff]  ;;  %4505 = vmatprep.subr.bf16.mxu1 %v4979_v3  ;;  %4157 = vmatprep.subr.mxu0 %v4980_v5  ;;  %v54_v7 = vld [vmem:[%s5829_s3 + $0x10] sm:$0xff]  ;;  %vm4981_vm2 = vmmov 0  }
   0x2   :  { %v51_v2 = vld [vmem:[%s5828_s2] sm:$0xf]  ;;  %v5076_v4 = vpack.c.bf16 %v53_v1, %v52_v0  ;;  %v55_v8 = vld [vmem:[%s5829_s3 + $0x18] sm:$0xff]  ;;  %4159 = vmatprep.mubr.msk.f32.mxu0 %vm4981_vm2, %v4980_v5 }
   0x3   :  { %v48_v6 = vld [vmem:[%s5826_s0] sm:$0xff]  ;;  %4158 = vmatpush3.msk.msra.mxu0 %vm73_vm0, %v51_v2 }
   0x4   :  { %19 = vsyncpa [#allocation6], 0  ;;  %4507 = vmatpush3.bf16.msra.mxu1 %v5076_v4  ;;  %4160 = vmatmul.mubr.msk.f32.vlgmr.msra.gmra.mrb[0].mxu0 %vm63_vm1, %v48_v6  ;;  %v5092_v9 = vpack.c.bf16 %v55_v8, %v54_v7  ;;  %v5116_v11 = vld [vmem:[%s5830_s4] ss:$0 sm:$0xff]  ;;  %s4982_s25 = smov 64   ;;  %s4983_s4 = smov 32  }
   0x5   :  { %4508 = vmatprep.subr.bf16.mxu1 %v4979_v3  ;;  %4176 = vmatprep.mubr.msk.f32.mxu1 %vm4981_vm2, %v4980_v5  ;;  %v49_v27 = vld [vmem:[%s5826_s0 + $0x8] sm:$0xff]  ;;  %v50_v28 = vld [vmem:[%s5826_s0 + $0x10] sm:$0xf]  ;;  %vm260_vm3 = vcmask 254976   ;;  %vm157_vm4 = vcmask 261120   ;;  %vm369_vm5 = vcmask 257026  }
   0x6   :  { %4511 = vmatprep.subr.bf16.mxu0 %v4979_v3  ;;  %4162 = vmatprep.mubr.msk.f32.mxu0 %vm4981_vm2, %v4980_v5  ;;  %vm593_vm6 = vcmask 261126   ;;  %vm481_vm7 = vcmask 259076   ;;  %s4984_s21 = smov 96   ;;  %s4986_s22 = smov 80   ;;  %vm2545_vm8 = vcmask 130048   ;;  %vm2654_vm9 = vcmask 123904  }
   0x7   :  { %4513 = vmatpush3.bf16.msra.mxu0 %v5076_v4  ;;  %s4988_s23 = smov 112   ;;  %s4989_s18 = smov 48   ;;  %vm2773_vm10 = vcmask 255104   ;;  %vm2893_vm11 = vcmask 386304   ;;  %vm3832_vm12 = vcmask 326656   ;;  %vm3012_vm13 = vcmask 517504  }
   0x8   :  { %4510 = vmatpush3.bf16.msra.mxu1 %v5092_v9  ;;  %4514 = vmatprep.subr.bf16.mxu0 %v4979_v3  ;;  %vm3128_vm14 = vcmask 648704   ;;  %vm3247_vm15 = vcmask 779904   ;;  %vm3367_vm0 = vcmask 911104  }
   0x9   :  { %4517 = vmatprep.subr.bf16.mxu1 %v4979_v3  ;;  %4163 = vmatmul.mubr.msk.f32.gmra.mrb[2].mxu0 %vm63_vm1, %v49_v27 }
   0xa   :  { %4165 = vmatprep.mubr.msk.f32.mxu0 %vm4981_vm2, %v4980_v5 }
   0xb   :  { %4177 = vmatmul.mubr.f32.vlgmr.msra.gmra.mrb[0].mxu1 %v4980_v5  ;;  %4516 = vmatpush3.bf16.msra.mxu0 %v5092_v9 }
   0xc   :  { %4519 = vmatpush3.bf16.msra.mxu1 %v5076_v4  ;;  %4198 = vmatprep.mubr.msk.f32.mxu1 %vm4981_vm2, %v4980_v5 }
   0xd   :  { %4520 = vmatprep.subr.bf16.mxu1 %v4979_v3  ;;  %4523 = vmatprep.subr.bf16.mxu0 %v4979_v3 }
   0xe   :  { %4166 = vmatmul.mubr.msk.f32.gmra.mrb[4].mxu0 %vm63_vm1, %v50_v28  ;;  %vm3488_vm1 = vcmask 1042304  }
   0xf   :  { %4187 = vmatprep.mubr.msk.f32.mxu0 %vm4981_vm2, %v4980_v5 }
  0x10   :  { %4522 = vmatpush3.bf16.msra.mxu1 %v5092_v9 }
  0x11   :  { %4529 = vmatprep.subr.bf16.mxu1 %v4979_v3 }
  0xd7   :  { %v143_v10 = vpop.f32.mrb[0].mxu0 }
  0xd8   :  { %v4161_v12 = vpop.f32.mrb[1].mxu0  ;;  %v5119_v13 = vadd.f32 %v5116_v11, %v143_v10 }
  0xdc   :  { %v5138_v32 = vpop.f32.mrb[2].mxu0 }
  0xdd   :  { %v4164_v33 = vpop.f32.mrb[3].mxu0 }
  0xde   :  { %v227_v14 = vpop.f32.mrb[0].mxu1 }
  0xdf   :  { %v231_v15 = vadd.f32 %v227_v14, %v5119_v13  ;;  %v4178_v16 = vpop.f32.mrb[1].mxu1 }
  0xe1   :  { %4715 = vtanh.f32 %v231_v15  ;;  %v3934_v18 = vmul.f32 -1.442695, %v231_v15  ;;  %v5140_v34 = vpop.f32.mrb[4].mxu0 }
  0xe2   :  { %v4167_v35 = vpop.f32.mrb[5].mxu0 }
  0xe3   :  { %4717 = vpow2.f32 %v3934_v18 }
  0xeb   :  { %v4716_v17 = vpop.eup %4715 }
  0xec   :  { %241 = vrot.lane.b32.xlu0 %v4716_v17, %s4982_s25 }
  0xed   :  { %v4718_v19 = vpop.eup %4717 }
  0xee   :  { %v235_v20 = vadd.f32 1.0, %v4718_v19 }
  0xf0   :  { %4719 = vrcp.f32 %v235_v20 }
  0xfa   :  { %v4720_v21 = vpop.eup %4719 }
  0xfb   :  { %v239_v24 = vmul.f32 0.0, %v4720_v21 }
 0x15e   :  { %v242_v22 = vpop.permute.xlu0 %241 }
 0x15f   :  { %v244_v23 = vmul.f32 %v4720_v21, %v242_v22 }
 0x161   :  { %246 = vrot.lane.b32.xlu0 %v244_v23, %s4983_s4 }
 0x1d3   :  { %v247_v25 = vpop.permute.xlu0 %246 }
 0x1d4   :  { %v249_v26 = vadd.f32 %v247_v25, %v239_v24 }
 0x1d6   :  { %4721 = vtanh.f32 %v249_v26  ;;  %v346_v48 = vrot.slane %v249_v26, 6 }
 0x1e0   :  { %v4722_v29 = vpop.eup %4721 }
 0x1e1   :  { %252 = vrot.lane.b32.xlu1 %v4722_v29, %s4982_s25 }
 0x253   :  { %v253_v30 = vpop.permute.xlu1 %252 }
 0x254   :  { %v255_v31 = vmul.f32 %v4720_v21, %v253_v30 }
 0x256   :  { %257 = vrot.lane.b32.xlu1 %v255_v31, %s4983_s4 }
 0x2c8   :  { %v258_v36 = vpop.permute.xlu1 %257 }
 0x2c9   :  { %261 = vst.msk [vmem:[#allocation2] sm:$0x3] %vm260_vm3, %v258_v36  ;;  %4188 = vmatmul.mubr.msk.f32.vlgmr.msra.gmra.mrb[6].mxu0 %vm157_vm4, %v258_v36 }
 0x2ca   :  { %4525 = vmatpush3.bf16.msra.mxu0 %v5076_v4  ;;  %4209 = vmatprep.mubr.msk.f32.mxu0 %vm4981_vm2, %v4980_v5 }
 0x2cb   :  { %4526 = vmatprep.subr.bf16.mxu0 %v4979_v3 }
 0x2ce   :  { %4528 = vmatpush3.bf16.msra.mxu0 %v5092_v9 }
 0x2cf   :  { %4535 = vmatprep.subr.bf16.mxu0 %v4979_v3 }
 0x39c   :  { %v330_v37 = vpop.f32.mrb[6].mxu0 }
 0x39d   :  { %v335_v38 = vrot.slane %v330_v37, 6  ;;  %v4189_v39 = vpop.f32.mrb[7].mxu0 }
 0x39f   :  { %v337_v40 = vadd.f32 %v335_v38, %v5119_v13 }
 0x3a1   :  { %4723 = vtanh.f32 %v337_v40  ;;  %v3936_v42 = vmul.f32 -1.442695, %v337_v40  ;;  %v5197_v40 = vadd.f32 %v5116_v11, %v5138_v32 }
 0x3a3   :  { %4725 = vpow2.f32 %v3936_v42 }
 0x3ab   :  { %v4724_v41 = vpop.eup %4723 }
 0x3ac   :  { %350 = vrot.lane.b32.xlu0 %v4724_v41, %s4982_s25 }
 0x3ad   :  { %v4726_v43 = vpop.eup %4725 }
 0x3ae   :  { %v341_v44 = vadd.f32 1.0, %v4726_v43 }
 0x3b0   :  { %4727 = vrcp.f32 %v341_v44 }
 0x3ba   :  { %v4728_v45 = vpop.eup %4727 }
 0x3bb   :  { %v348_v49 = vmul.f32 %v4728_v45, %v346_v48 }
 0x41e   :  { %v351_v46 = vpop.permute.xlu0 %350 }
 0x41f   :  { %v353_v47 = vmul.f32 %v4728_v45, %v351_v46 }
 0x421   :  { %355 = vrot.lane.b32.xlu1 %v353_v47, %s4983_s4 }
 0x493   :  { %v356_v50 = vpop.permute.xlu1 %355 }
 0x494   :  { %v358_v51 = vadd.f32 %v356_v50, %v348_v49 }
 0x496   :  { %4729 = vtanh.f32 %v358_v51  ;;  %v458_v7 = vrot.slane %v358_v51, 6 }
 0x4a0   :  { %v4730_v52 = vpop.eup %4729 }
 0x4a1   :  { %361 = vrot.lane.b32.xlu0 %v4730_v52, %s4982_s25 }
 0x513   :  { %v362_v53 = vpop.permute.xlu0 %361 }
 0x514   :  { %v5154_v54 = vmul.f32 %v4728_v45, %v362_v53 }
 0x516   :  { %v371_v55 = vrot.slane %v5154_v54, 2 }
 0x518   :  { %372 = vrot.lane.b32.xlu1 %v371_v55, %s4983_s4 }
 0x58a   :  { %v373_v56 = vpop.permute.xlu1 %372 }
 0x58b   :  { %4199 = vmatmul.mubr.msk.f32.vlgmr.msra.gmra.mrb[2].mxu1 %vm157_vm4, %v373_v56 }
 0x58c   :  { %4531 = vmatpush3.bf16.msra.mxu1 %v5076_v4  ;;  %4220 = vmatprep.mubr.msk.f32.mxu1 %vm4981_vm2, %v4980_v5 }
 0x58d   :  { %4532 = vmatprep.subr.bf16.mxu1 %v4979_v3 }
 0x590   :  { %4534 = vmatpush3.bf16.msra.mxu1 %v5092_v9 }
 0x591   :  { %4541 = vmatprep.subr.bf16.mxu1 %v4979_v3 }
 0x65e   :  { %v442_v57 = vpop.f32.mrb[2].mxu1 }
 0x65f   :  { %v447_v58 = vrot.slane %v442_v57, 4  ;;  %v4200_v59 = vpop.f32.mrb[3].mxu1 }
 0x661   :  { %v449_v60 = vadd.f32 %v447_v58, %v5119_v13 }
 0x663   :  { %4731 = vtanh.f32 %v449_v60  ;;  %v3938_v62 = vmul.f32 -1.442695, %v449_v60 }
 0x665   :  { %4733 = vpow2.f32 %v3938_v62 }
 0x66d   :  { %v4732_v61 = vpop.eup %4731 }
 0x66e   :  { %462 = vrot.lane.b32.xlu0 %v4732_v61, %s4982_s25 }
 0x66f   :  { %v4734_v63 = vpop.eup %4733 }
 0x670   :  { %v453_v0 = vadd.f32 1.0, %v4734_v63 }
 0x672   :  { %4735 = vrcp.f32 %v453_v0 }
 0x67c   :  { %v4736_v1 = vpop.eup %4735 }
 0x67d   :  { %v460_v8 = vmul.f32 %v4736_v1, %v458_v7 }
 0x6e0   :  { %v463_v2 = vpop.permute.xlu0 %462 }
 0x6e1   :  { %v465_v6 = vmul.f32 %v4736_v1, %v463_v2 }
 0x6e3   :  { %467 = vrot.lane.b32.xlu1 %v465_v6, %s4983_s4 }
 0x755   :  { %v468_v10 = vpop.permute.xlu1 %467 }
 0x756   :  { %v470_v12 = vadd.f32 %v468_v10, %v460_v8 }
 0x758   :  { %4737 = vtanh.f32 %v470_v12  ;;  %v570_v30 = vrot.slane %v470_v12, 6 }
 0x762   :  { %v4738_v14 = vpop.eup %4737 }
 0x763   :  { %473 = vrot.lane.b32.xlu0 %v4738_v14, %s4982_s25 }
 0x7d5   :  { %v474_v15 = vpop.permute.xlu0 %473 }
 0x7d6   :  { %v5169_v16 = vmul.f32 %v4736_v1, %v474_v15 }
 0x7d8   :  { %v483_v17 = vrot.slane %v5169_v16, 4 }
 0x7da   :  { %484 = vrot.lane.b32.xlu1 %v483_v17, %s4983_s4 }
 0x84c   :  { %v485_v18 = vpop.permute.xlu1 %484 }
 0x84d   :  { %4210 = vmatmul.mubr.msk.f32.vlgmr.msra.gmra.mrb[8].mxu0 %vm157_vm4, %v485_v18 }
 0x84e   :  { %4537 = vmatpush3.bf16.msra.mxu0 %v5076_v4  ;;  %4231 = vmatprep.mubr.msk.f32.mxu0 %vm4981_vm2, %v4980_v5 }
 0x84f   :  { %4538 = vmatprep.subr.bf16.mxu0 %v4979_v3 }
 0x852   :  { %4540 = vmatpush3.bf16.msra.mxu0 %v5092_v9 }
 0x853   :  { %4547 = vmatprep.subr.bf16.mxu0 %v4979_v3 }
 0x920   :  { %v554_v19 = vpop.f32.mrb[8].mxu0 }
 0x921   :  { %v559_v20 = vrot.slane %v554_v19, 2  ;;  %v4211_v21 = vpop.f32.mrb[9].mxu0 }
 0x923   :  { %v561_v22 = vadd.f32 %v559_v20, %v5119_v13 }
 0x925   :  { %4739 = vtanh.f32 %v561_v22  ;;  %v3940_v24 = vmul.f32 -1.442695, %v561_v22 }
 0x927   :  { %4741 = vpow2.f32 %v3940_v24 }
 0x92f   :  { %v4740_v23 = vpop.eup %4739 }
 0x930   :  { %574 = vrot.lane.b32.xlu0 %v4740_v23, %s4982_s25 }
 0x931   :  { %v4742_v25 = vpop.eup %4741 }
 0x932   :  { %v565_v26 = vadd.f32 1.0, %v4742_v25 }
 0x934   :  { %4743 = vrcp.f32 %v565_v26 }
 0x93e   :  { %v4744_v27 = vpop.eup %4743 }
 0x93f   :  { %v572_v31 = vmul.f32 %v4744_v27, %v570_v30 }
 0x9a2   :  { %v575_v28 = vpop.permute.xlu0 %574 }
 0x9a3   :  { %v577_v29 = vmul.f32 %v4744_v27, %v575_v28 }
 0x9a5   :  { %579 = vrot.lane.b32.xlu1 %v577_v29, %s4983_s4 }
 0xa17   :  { %v580_v33 = vpop.permute.xlu1 %579 }
 0xa18   :  { %v582_v35 = vadd.f32 %v580_v33, %v572_v31 }
 0xa1a   :  { %4745 = vtanh.f32 %v582_v35  ;;  %v679_v32 = vrot.slane %v582_v35, 6 }
 0xa24   :  { %v4746_v13 = vpop.eup %4745 }
 0xa25   :  { %585 = vrot.lane.b32.xlu0 %v4746_v13, %s4982_s25 }
 0xa97   :  { %v586_v36 = vpop.permute.xlu0 %585 }
 0xa98   :  { %v5184_v37 = vmul.f32 %v4744_v27, %v586_v36 }
 0xa9a   :  { %v595_v38 = vrot.slane %v5184_v37, 6 }
 0xa9c   :  { %596 = vrot.lane.b32.xlu1 %v595_v38, %s4983_s4 }
 0xb0e   :  { %v597_v39 = vpop.permute.xlu1 %596 }
 0xb0f   :  { %4221 = vmatmul.mubr.msk.f32.vlgmr.msra.gmra.mrb[4].mxu1 %vm157_vm4, %v597_v39 }
 0xb10   :  { %4543 = vmatpush3.bf16.msra.mxu1 %v5076_v4  ;;  %4242 = vmatprep.mubr.msk.f32.mxu1 %vm4981_vm2, %v4980_v5 }
 0xb11   :  { %4544 = vmatprep.subr.bf16.mxu1 %v4979_v3 }
 0xb14   :  { %4546 = vmatpush3.bf16.msra.mxu1 %v5092_v9 }
 0xb15   :  { %4553 = vmatprep.subr.bf16.mxu1 %v4979_v3 }
 0xbe2   :  { %v666_v41 = vpop.f32.mrb[4].mxu1 }
 0xbe3   :  { %v670_v42 = vadd.f32 %v666_v41, %v5197_v40  ;;  %v4222_v43 = vpop.f32.mrb[5].mxu1 }
 0xbe5   :  { %4747 = vtanh.f32 %v670_v42  ;;  %v3942_v45 = vmul.f32 -1.442695, %v670_v42 }
 0xbe7   :  { %4749 = vpow2.f32 %v3942_v45 }
 0xbef   :  { %v4748_v44 = vpop.eup %4747 }
 0xbf0   :  { %683 = vrot.lane.b32.xlu0 %v4748_v44, %s4982_s25 }
 0xbf1   :  { %v4750_v46 = vpop.eup %4749 }
 0xbf2   :  { %v674_v47 = vadd.f32 1.0, %v4750_v46 }
 0xbf4   :  { %4751 = vrcp.f32 %v674_v47 }
 0xbfe   :  { %v4752_v48 = vpop.eup %4751 }
 0xbff   :  { %v681_v51 = vmul.f32 %v4752_v48, %v679_v32 }
 0xc62   :  { %v684_v49 = vpop.permute.xlu0 %683 }
 0xc63   :  { %v686_v50 = vmul.f32 %v4752_v48, %v684_v49 }
 0xc65   :  { %688 = vrot.lane.b32.xlu1 %v686_v50, %s4983_s4 }
 0xcd7   :  { %v689_v52 = vpop.permute.xlu1 %688 }
 0xcd8   :  { %v691_v53 = vadd.f32 %v689_v52, %v681_v51 }
 0xcda   :  { %4753 = vtanh.f32 %v691_v53  ;;  %v787_v10 = vrot.slane %v691_v53, 6 }
 0xce4   :  { %v4754_v55 = vpop.eup %4753 }
 0xce5   :  { %694 = vrot.lane.b32.xlu0 %v4754_v55, %s4982_s25 }
 0xd57   :  { %v695_v56 = vpop.permute.xlu0 %694 }
 0xd58   :  { %v697_v57 = vmul.f32 %v4752_v48, %v695_v56 }
 0xd5a   :  { %699 = vrot.lane.b32.xlu1 %v697_v57, %s4983_s4 }
 0xdcc   :  { %v700_v58 = vpop.permute.xlu1 %699 }
 0xdcd   :  { %702 = vst.msk [vmem:[#allocation2 + $0x8] sm:$0x3] %vm260_vm3, %v700_v58  ;;  %4232 = vmatmul.mubr.msk.f32.vlgmr.msra.gmra.mrb[10].mxu0 %vm157_vm4, %v700_v58 }
 0xdce   :  { %4549 = vmatpush3.bf16.msra.mxu0 %v5076_v4  ;;  %4253 = vmatprep.mubr.msk.f32.mxu0 %vm4981_vm2, %v4980_v5 }
 0xdcf   :  { %4550 = vmatprep.subr.bf16.mxu0 %v4979_v3 }
 0xdd2   :  { %4552 = vmatpush3.bf16.msra.mxu0 %v5092_v9 }
 0xdd3   :  { %4559 = vmatprep.subr.bf16.mxu0 %v4979_v3 }
 0xea0   :  { %v771_v59 = vpop.f32.mrb[10].mxu0 }
 0xea1   :  { %v776_v60 = vrot.slane %v771_v59, 6  ;;  %v4233_v61 = vpop.f32.mrb[11].mxu0 }
 0xea3   :  { %v778_v62 = vadd.f32 %v776_v60, %v5197_v40 }
 0xea5   :  { %4755 = vtanh.f32 %v778_v62  ;;  %v3944_v0 = vmul.f32 -1.442695, %v778_v62  ;;  %v154_v62 = vadd.f32 %v5116_v11, %v5140_v34 }
 0xea7   :  { %4757 = vpow2.f32 %v3944_v0 }
 0xeaf   :  { %v4756_v63 = vpop.eup %4755 }
 0xeb0   :  { %791 = vrot.lane.b32.xlu0 %v4756_v63, %s4982_s25 }
 0xeb1   :  { %v4758_v1 = vpop.eup %4757 }
 0xeb2   :  { %v782_v2 = vadd.f32 1.0, %v4758_v1 }
 0xeb4   :  { %4759 = vrcp.f32 %v782_v2 }
 0xebe   :  { %v4760_v6 = vpop.eup %4759 }
 0xebf   :  { %v789_v12 = vmul.f32 %v4760_v6, %v787_v10 }
 0xf22   :  { %v792_v7 = vpop.permute.xlu0 %791 }
 0xf23   :  { %v794_v8 = vmul.f32 %v4760_v6, %v792_v7 }
 0xf25   :  { %796 = vrot.lane.b32.xlu1 %v794_v8, %s4983_s4 }
 0xf97   :  { %v797_v14 = vpop.permute.xlu1 %796 }
 0xf98   :  { %v799_v15 = vadd.f32 %v797_v14, %v789_v12 }
 0xf9a   :  { %4761 = vtanh.f32 %v799_v15  ;;  %v898_v35 = vrot.slane %v799_v15, 6 }
 0xfa4   :  { %v4762_v17 = vpop.eup %4761 }
 0xfa5   :  { %802 = vrot.lane.b32.xlu0 %v4762_v17, %s4982_s25 }
0x1017   :  { %v803_v18 = vpop.permute.xlu0 %802 }
0x1018   :  { %v5216_v19 = vmul.f32 %v4760_v6, %v803_v18 }
0x101a   :  { %v811_v20 = vrot.slane %v5216_v19, 2 }
0x101c   :  { %812 = vrot.lane.b32.xlu1 %v811_v20, %s4983_s4 }
0x108e   :  { %v813_v21 = vpop.permute.xlu1 %812 }
0x108f   :  { %4243 = vmatmul.mubr.msk.f32.vlgmr.msra.gmra.mrb[6].mxu1 %vm157_vm4, %v813_v21 }
0x1090   :  { %4555 = vmatpush3.bf16.msra.mxu1 %v5076_v4  ;;  %4264 = vmatprep.mubr.msk.f32.mxu1 %vm4981_vm2, %v4980_v5 }
0x1091   :  { %4556 = vmatprep.subr.bf16.mxu1 %v4979_v3 }
0x1094   :  { %4558 = vmatpush3.bf16.msra.mxu1 %v5092_v9 }
0x1095   :  { %4577 = vmatprep.subr.bf16.mxu1 %v4979_v3 }
0x1162   :  { %v882_v22 = vpop.f32.mrb[6].mxu1 }
0x1163   :  { %v887_v23 = vrot.slane %v882_v22, 4  ;;  %v4244_v24 = vpop.f32.mrb[7].mxu1 }
0x1165   :  { %v889_v25 = vadd.f32 %v887_v23, %v5197_v40 }
0x1167   :  { %4763 = vtanh.f32 %v889_v25  ;;  %v3946_v27 = vmul.f32 -1.442695, %v889_v25 }
0x1169   :  { %4765 = vpow2.f32 %v3946_v27 }
0x1171   :  { %v4764_v26 = vpop.eup %4763 }
0x1172   :  { %902 = vrot.lane.b32.xlu0 %v4764_v26, %s4982_s25 }
0x1173   :  { %v4766_v28 = vpop.eup %4765 }
0x1174   :  { %v893_v29 = vadd.f32 1.0, %v4766_v28 }
0x1176   :  { %4767 = vrcp.f32 %v893_v29 }
0x1180   :  { %v4768_v30 = vpop.eup %4767 }
0x1181   :  { %v900_v13 = vmul.f32 %v4768_v30, %v898_v35 }
0x11e4   :  { %v903_v31 = vpop.permute.xlu0 %902 }
0x11e5   :  { %v905_v33 = vmul.f32 %v4768_v30, %v903_v31 }
0x11e7   :  { %907 = vrot.lane.b32.xlu1 %v905_v33, %s4983_s4 }
0x1259   :  { %v908_v36 = vpop.permute.xlu1 %907 }
0x125a   :  { %v910_v38 = vadd.f32 %v908_v36, %v900_v13 }
0x125c   :  { %4769 = vtanh.f32 %v910_v38 }
0x1266   :  { %v4770_v39 = vpop.eup %4769 }
0x1267   :  { %913 = vrot.lane.b32.xlu0 %v4770_v39, %s4982_s25 }
0x12d9   :  { %v914_v41 = vpop.permute.xlu0 %913 }
0x12da   :  { %v5231_v42 = vmul.f32 %v4768_v30, %v914_v41  ;;  %v1252_v41 = vld [vmem:[%s5831_s5] sm:$0xff] }
0x12dc   :  { %v922_v43 = vrot.slane %v5231_v42, 4 }
0x12de   :  { %923 = vrot.lane.b32.xlu1 %v922_v43, %s4983_s4 }
0x1350   :  { %v924_v44 = vpop.permute.xlu1 %923 }
0x1351   :  { %4254 = vmatmul.mubr.msk.f32.vlgmr.msra.gmra.mrb[12].mxu0 %vm157_vm4, %v924_v44 }
0x1352   :  { %4561 = vmatpush3.bf16.msra.mxu0 %v5076_v4  ;;  %4275 = vmatprep.mubr.msk.f32.mxu0 %vm4981_vm2, %v4980_v5 }
0x1353   :  { %4562 = vmatprep.subr.bf16.mxu0 %v4979_v3 }
0x1356   :  { %4564 = vmatpush3.bf16.msra.mxu0 %v5092_v9  ;;  %v1009_v9 = vrot.slane %v910_v38, 6 }
0x1357   :  { %4565 = vmatprep.subr.bf16.mxu0 %v4979_v3 }
0x1424   :  { %v993_v45 = vpop.f32.mrb[12].mxu0 }
0x1425   :  { %v998_v46 = vrot.slane %v993_v45, 2  ;;  %v4255_v47 = vpop.f32.mrb[13].mxu0 }
0x1427   :  { %v1000_v48 = vadd.f32 %v998_v46, %v5197_v40 }
0x1429   :  { %4771 = vtanh.f32 %v1000_v48  ;;  %v3948_v50 = vmul.f32 -1.442695, %v1000_v48 }
0x142b   :  { %4773 = vpow2.f32 %v3948_v50  ;;  %v1257_v50 = vld [vmem:[%s5832_s6 + $0x8] sm:$0xff] }
0x1433   :  { %v4772_v49 = vpop.eup %4771 }
0x1434   :  { %1013 = vrot.lane.b32.xlu0 %v4772_v49, %s4982_s25  ;;  %v1256_v49 = vld [vmem:[%s5832_s6] sm:$0xff] }
0x1435   :  { %v4774_v4 = vpop.eup %4773 }
0x1436   :  { %v1004_v32 = vadd.f32 1.0, %v4774_v4  ;;  %v5301_v4 = vpack.c.bf16 %v1257_v50, %v1256_v49 }
0x1438   :  { %4775 = vrcp.f32 %v1004_v32 }
0x1442   :  { %v4776_v51 = vpop.eup %4775 }
0x1443   :  { %v1011_v55 = vmul.f32 %v4776_v51, %v1009_v9 }
0x14a6   :  { %v1014_v52 = vpop.permute.xlu0 %1013 }
0x14a7   :  { %v1016_v53 = vmul.f32 %v4776_v51, %v1014_v52 }
0x14a9   :  { %1018 = vrot.lane.b32.xlu1 %v1016_v53, %s4983_s4 }
0x151b   :  { %v1019_v56 = vpop.permute.xlu1 %1018 }
0x151c   :  { %v1021_v57 = vadd.f32 %v1019_v56, %v1011_v55 }
0x151e   :  { %4777 = vtanh.f32 %v1021_v57  ;;  %v1117_v15 = vrot.slane %v1021_v57, 6 }
0x1528   :  { %v4778_v40 = vpop.eup %4777 }
0x1529   :  { %1024 = vrot.lane.b32.xlu0 %v4778_v40, %s4982_s25 }
0x159b   :  { %v1025_v58 = vpop.permute.xlu0 %1024 }
0x159c   :  { %v5246_v59 = vmul.f32 %v4776_v51, %v1025_v58 }
0x159e   :  { %v1033_v60 = vrot.slane %v5246_v59, 6 }
0x15a0   :  { %1034 = vrot.lane.b32.xlu1 %v1033_v60, %s4983_s4 }
0x1612   :  { %v1035_v61 = vpop.permute.xlu1 %1034 }
0x1613   :  { %4265 = vmatmul.mubr.msk.f32.vlgmr.msra.gmra.mrb[8].mxu1 %vm157_vm4, %v1035_v61 }
0x1614   :  { %4314 = vmatprep.mubr.msk.f32.mxu1 %vm4981_vm2, %v4980_v5  ;;  %4579 = vmatpush3.bf16.msra.mxu1 %v5301_v4 }
0x1615   :  { %4580 = vmatprep.subr.bf16.mxu1 %v4979_v3 }
0x16e6   :  { %v1104_v63 = vpop.f32.mrb[8].mxu1 }
0x16e7   :  { %v1108_v0 = vadd.f32 %v1104_v63, %v154_v62  ;;  %v4266_v1 = vpop.f32.mrb[9].mxu1  ;;  %v5345_v63 = vld [vmem:[%s5833_s7] ss:$0 sm:$0xff] }
0x16e9   :  { %4779 = vtanh.f32 %v1108_v0  ;;  %v3950_v6 = vmul.f32 -1.442695, %v1108_v0 }
0x16eb   :  { %4781 = vpow2.f32 %v3950_v6 }
0x16f3   :  { %v4780_v2 = vpop.eup %4779 }
0x16f4   :  { %1121 = vrot.lane.b32.xlu0 %v4780_v2, %s4982_s25 }
0x16f5   :  { %v4782_v7 = vpop.eup %4781 }
0x16f6   :  { %v1112_v8 = vadd.f32 1.0, %v4782_v7 }
0x16f8   :  { %4783 = vrcp.f32 %v1112_v8 }
0x1702   :  { %v4784_v10 = vpop.eup %4783 }
0x1703   :  { %v1119_v17 = vmul.f32 %v4784_v10, %v1117_v15 }
0x1766   :  { %v1122_v12 = vpop.permute.xlu0 %1121 }
0x1767   :  { %v1124_v14 = vmul.f32 %v4784_v10, %v1122_v12 }
0x1769   :  { %1126 = vrot.lane.b32.xlu1 %v1124_v14, %s4983_s4 }
0x17db   :  { %v1127_v11 = vpop.permute.xlu1 %1126 }
0x17dc   :  { %v1129_v34 = vadd.f32 %v1127_v11, %v1119_v17 }
0x17de   :  { %4785 = vtanh.f32 %v1129_v34  ;;  %v1225_v13 = vrot.slane %v1129_v34, 6 }
0x17e8   :  { %v4786_v18 = vpop.eup %4785 }
0x17e9   :  { %1132 = vrot.lane.b32.xlu0 %v4786_v18, %s4982_s25 }
0x185b   :  { %v1133_v20 = vpop.permute.xlu0 %1132 }
0x185c   :  { %v1135_v21 = vmul.f32 %v4784_v10, %v1133_v20 }
0x185e   :  { %1137 = vrot.lane.b32.xlu1 %v1135_v21, %s4983_s4 }
0x18d0   :  { %v1138_v22 = vpop.permute.xlu1 %1137 }
0x18d1   :  { %1140 = vst.msk [vmem:[#allocation2 + $0x10] sm:$0x3] %vm260_vm3, %v1138_v22  ;;  %4276 = vmatmul.mubr.msk.f32.vlgmr.msra.gmra.mrb[14].mxu0 %vm157_vm4, %v1138_v22 }
0x18d2   :  { %4286 = vmatprep.mubr.msk.f32.mxu0 %vm4981_vm2, %v4980_v5 }
0x19a4   :  { %v1209_v23 = vpop.f32.mrb[14].mxu0 }
0x19a5   :  { %v1214_v24 = vrot.slane %v1209_v23, 6  ;;  %v4277_v25 = vpop.f32.mrb[15].mxu0 }
0x19a7   :  { %v1216_v26 = vadd.f32 %v1214_v24, %v154_v62 }
0x19a9   :  { %4787 = vtanh.f32 %v1216_v26  ;;  %v3952_v28 = vmul.f32 -1.442695, %v1216_v26 }
0x19ab   :  { %4789 = vpow2.f32 %v3952_v28 }
0x19b3   :  { %v4788_v27 = vpop.eup %4787 }
0x19b4   :  { %1229 = vrot.lane.b32.xlu0 %v4788_v27, %s4982_s25 }
0x19b5   :  { %v4790_v29 = vpop.eup %4789 }
0x19b6   :  { %v1220_v30 = vadd.f32 1.0, %v4790_v29 }
0x19b8   :  { %4791 = vrcp.f32 %v1220_v30 }
0x19c2   :  { %v4792_v31 = vpop.eup %4791 }
0x19c3   :  { %v1227_v36 = vmul.f32 %v4792_v31, %v1225_v13 }
0x1a26   :  { %v1230_v33 = vpop.permute.xlu0 %1229 }
0x1a27   :  { %v1232_v35 = vmul.f32 %v4792_v31, %v1230_v33 }
0x1a29   :  { %1234 = vrot.lane.b32.xlu1 %v1232_v35, %s4983_s4 }
0x1a2d   :  { %366 = vrot.lane.b32.xlu1 %v5154_v54, %s4983_s4  ;;  %v1253_v54 = vld [vmem:[%s5831_s5 + $0x8] sm:$0xff] }
0x1a2e   :  { %v4566_v44 = vpack.c.bf16 %v1253_v54, %v1252_v41 }
0x1a30   :  { %4567 = vmatpush3.bf16.msra.mxu0 %v4566_v44 }
0x1a31   :  { %590 = vrot.lane.b32.xlu1 %v5184_v37, %s4983_s4  ;;  %4568 = vmatprep.subr.bf16.mxu0 %v4979_v3  ;;  %v1254_v37 = vld [vmem:[%s5831_s5 + $0x10] sm:$0xff] }
0x1a35   :  { %918 = vrot.lane.b32.xlu1 %v5231_v42, %s4983_s4  ;;  %v1255_v42 = vld [vmem:[%s5831_s5 + $0x18] sm:$0xff] }
0x1a36   :  { %v4569_v46 = vpack.c.bf16 %v1255_v42, %v1254_v37 }
0x1a38   :  { %4570 = vmatpush3.bf16.msra.mxu0 %v4569_v46 }
0x1a39   :  { %4571 = vmatprep.subr.bf16.mxu0 %v4979_v3 }
0x1a9b   :  { %v1235_v38 = vpop.permute.xlu1 %1234 }
0x1a9c   :  { %v1237_v39 = vadd.f32 %v1235_v38, %v1227_v36 }
0x1a9e   :  { %4793 = vtanh.f32 %v1237_v39 }
0x1a9f   :  { %v367_v43 = vpop.permute.xlu1 %366 }
0x1aa0   :  { %370 = vst.msk [vmem:[#allocation2] sm:$0xc] %vm369_vm5, %v367_v43 }
0x1aa3   :  { %v591_v45 = vpop.permute.xlu1 %590 }
0x1aa4   :  { %594 = vst.msk [vmem:[#allocation2] sm:$0xc0] %vm593_vm6, %v591_v45 }
0x1aa7   :  { %v919_v47 = vpop.permute.xlu1 %918 }
0x1aa8   :  { %v4794_v48 = vpop.eup %4793  ;;  %921 = vst.msk [vmem:[#allocation2 + $0x8] sm:$0x30] %vm481_vm7, %v919_v47 }
0x1aa9   :  { %1240 = vrot.lane.b32.xlu0 %v4794_v48, %s4982_s25 }
0x1aad   :  { %478 = vrot.lane.b32.xlu0 %v5169_v16, %s4983_s4  ;;  %v1258_v16 = vld [vmem:[%s5832_s6 + $0x10] sm:$0xff] }
0x1ab1   :  { %807 = vrot.lane.b32.xlu0 %v5216_v19, %s4983_s4  ;;  %v1259_v19 = vld [vmem:[%s5832_s6 + $0x18] sm:$0xff] }
0x1ab2   :  { %v5311_v32 = vpack.c.bf16 %v1259_v19, %v1258_v16 }
0x1ab4   :  { %4582 = vmatpush3.bf16.msra.mxu1 %v5311_v32 }
0x1ab5   :  { %1029 = vrot.lane.b32.xlu0 %v5246_v59, %s4983_s4  ;;  %4589 = vmatprep.subr.bf16.mxu1 %v4979_v3 }
0x1b1b   :  { %v1241_v51 = vpop.permute.xlu0 %1240 }
0x1b1c   :  { %v1243_v52 = vmul.f32 %v4792_v31, %v1241_v51 }
0x1b1e   :  { %1245 = vrot.lane.b32.xlu1 %v1243_v52, %s4983_s4 }
0x1b1f   :  { %v479_v53 = vpop.permute.xlu0 %478 }
0x1b20   :  { %482 = vst.msk [vmem:[#allocation2] sm:$0x30] %vm481_vm7, %v479_v53 }
0x1b23   :  { %v808_v9 = vpop.permute.xlu0 %807 }
0x1b24   :  { %810 = vst.msk [vmem:[#allocation2 + $0x8] sm:$0xc] %vm369_vm5, %v808_v9 }
0x1b27   :  { %v1030_v55 = vpop.permute.xlu0 %1029  ;;  %v1249_v56 = vld [vmem:[#allocation2] sm:$0xff] }
0x1b28   :  { %1032 = vst.msk [vmem:[#allocation2 + $0x8] sm:$0xc0] %vm593_vm6, %v1030_v55  ;;  %4287 = vmatmul.mubr.msk.f32.vlgmr.msra.gmra.mrb[16].mxu0 %vm157_vm4, %v1249_v56 }
0x1b29   :  { %4289 = vmatprep.mubr.msk.f32.mxu0 %vm4981_vm2, %v4980_v5  ;;  %4573 = vmatpush3.bf16.msra.mxu0 %v5301_v4 }
0x1b2a   :  { %4574 = vmatprep.subr.bf16.mxu0 %v4979_v3 }
0x1b2d   :  { %4576 = vmatpush3.bf16.msra.mxu0 %v5311_v32 }
0x1b2e   :  { %4583 = vmatprep.subr.bf16.mxu0 %v4979_v3 }
0x1b2f   :  { %v1250_v57 = vld [vmem:[#allocation2 + $0x8] sm:$0xff] }
0x1b30   :  { %4290 = vmatmul.mubr.msk.f32.gmra.mrb[18].mxu0 %vm157_vm4, %v1250_v57 }
0x1b31   :  { %4292 = vmatprep.mubr.msk.f32.mxu0 %vm4981_vm2, %v4980_v5 }
0x1b90   :  { %v1246_v40 = vpop.permute.xlu1 %1245 }
0x1b91   :  { %1248 = vst.msk [vmem:[#allocation2 + $0x10] sm:$0xc] %vm369_vm5, %v1246_v40 }
0x1b98   :  { %v1251_v58 = vld [vmem:[#allocation2 + $0x10] sm:$0xf] }
0x1b99   :  { %4293 = vmatmul.mubr.msk.f32.gmra.mrb[20].mxu0 %vm157_vm4, %v1251_v58 }
0x1b9a   :  { %4303 = vmatprep.mubr.msk.f32.mxu0 %vm4981_vm2, %v4980_v5 }
0x1b9d   :  { %4304 = vmatmul.mubr.f32.vlgmr.msra.gmra.mrb[22].mxu0 %v4980_v5 }
0x1b9e   :  { %4585 = vmatpush3.bf16.msra.mxu0 %v5301_v4  ;;  %4325 = vmatprep.mubr.msk.f32.mxu0 %vm4981_vm2, %v4980_v5 }
0x1b9f   :  { %4586 = vmatprep.subr.bf16.mxu0 %v4979_v3 }
0x1ba2   :  { %4588 = vmatpush3.bf16.msra.mxu0 %v5311_v32 }
0x1ba3   :  { %4595 = vmatprep.subr.bf16.mxu0 %v4979_v3 }
0x1bfb   :  { %v1342_v59 = vpop.f32.mrb[16].mxu0 }
0x1bfc   :  { %v4288_v60 = vpop.f32.mrb[17].mxu0  ;;  %v5350_v2 = vadd.f32 %v5345_v63, %v1342_v59 }
0x1c03   :  { %v5340_v61 = vpop.f32.mrb[18].mxu0 }
0x1c04   :  { %v4291_v62 = vpop.f32.mrb[19].mxu0 }
0x1c6c   :  { %v5347_v0 = vpop.f32.mrb[20].mxu0 }
0x1c6d   :  { %v4294_v1 = vpop.f32.mrb[21].mxu0 }
0x1c70   :  { %v1422_v6 = vpop.f32.mrb[22].mxu0 }
0x1c71   :  { %v1426_v7 = vadd.f32 %v1422_v6, %v5350_v2  ;;  %v4305_v8 = vpop.f32.mrb[23].mxu0 }
0x1c73   :  { %4795 = vtanh.f32 %v1426_v7  ;;  %v3957_v12 = vmul.f32 -1.442695, %v1426_v7 }
0x1c75   :  { %4797 = vpow2.f32 %v3957_v12 }
0x1c7d   :  { %v4796_v10 = vpop.eup %4795 }
0x1c7e   :  { %1436 = vrot.lane.b32.xlu0 %v4796_v10, %s4982_s25 }
0x1c7f   :  { %v4798_v14 = vpop.eup %4797 }
0x1c80   :  { %v1430_v15 = vadd.f32 1.0, %v4798_v14 }
0x1c82   :  { %4799 = vrcp.f32 %v1430_v15 }
0x1c8c   :  { %v4800_v17 = vpop.eup %4799 }
0x1c8d   :  { %v1434_v18 = vmul.f32 0.0, %v4800_v17 }
0x1cf0   :  { %v1437_v11 = vpop.permute.xlu0 %1436 }
0x1cf1   :  { %v1439_v34 = vmul.f32 %v4800_v17, %v1437_v11 }
0x1cf3   :  { %1441 = vrot.lane.b32.xlu1 %v1439_v34, %s4983_s4 }
0x1d65   :  { %v1442_v20 = vpop.permute.xlu1 %1441 }
0x1d66   :  { %v1444_v21 = vadd.f32 %v1442_v20, %v1434_v18 }
0x1d68   :  { %4801 = vtanh.f32 %v1444_v21  ;;  %v1540_v39 = vrot.slane %v1444_v21, 6 }
0x1d72   :  { %v4802_v22 = vpop.eup %4801 }
0x1d73   :  { %1447 = vrot.lane.b32.xlu0 %v4802_v22, %s4982_s25 }
0x1de5   :  { %v1448_v23 = vpop.permute.xlu0 %1447 }
0x1de6   :  { %v1450_v24 = vmul.f32 %v4800_v17, %v1448_v23 }
0x1de8   :  { %1452 = vrot.lane.b32.xlu1 %v1450_v24, %s4983_s4 }
0x1e5a   :  { %v1453_v25 = vpop.permute.xlu1 %1452 }
0x1e5b   :  { %1455 = vst.msk [vmem:[#allocation3] sm:$0x3] %vm260_vm3, %v1453_v25  ;;  %4315 = vmatmul.mubr.msk.f32.vlgmr.msra.gmra.mrb[10].mxu1 %vm157_vm4, %v1453_v25 }
0x1e5c   :  { %4591 = vmatpush3.bf16.msra.mxu1 %v5301_v4  ;;  %4336 = vmatprep.mubr.msk.f32.mxu1 %vm4981_vm2, %v4980_v5 }
0x1e5d   :  { %4592 = vmatprep.subr.bf16.mxu1 %v4979_v3 }
0x1e60   :  { %4594 = vmatpush3.bf16.msra.mxu1 %v5311_v32 }
0x1e61   :  { %4601 = vmatprep.subr.bf16.mxu1 %v4979_v3 }
0x1f2e   :  { %v1524_v26 = vpop.f32.mrb[10].mxu1 }
0x1f2f   :  { %v1529_v27 = vrot.slane %v1524_v26, 6  ;;  %v4316_v28 = vpop.f32.mrb[11].mxu1 }
0x1f31   :  { %v1531_v29 = vadd.f32 %v1529_v27, %v5350_v2 }
0x1f33   :  { %4803 = vtanh.f32 %v1531_v29  ;;  %v3959_v31 = vmul.f32 -1.442695, %v1531_v29  ;;  %v5412_v29 = vadd.f32 %v5345_v63, %v5340_v61 }
0x1f35   :  { %4805 = vpow2.f32 %v3959_v31 }
0x1f3d   :  { %v4804_v30 = vpop.eup %4803 }
0x1f3e   :  { %1544 = vrot.lane.b32.xlu0 %v4804_v30, %s4982_s25 }
0x1f3f   :  { %v4806_v33 = vpop.eup %4805 }
0x1f40   :  { %v1535_v35 = vadd.f32 1.0, %v4806_v33 }
0x1f42   :  { %4807 = vrcp.f32 %v1535_v35 }
0x1f4c   :  { %v4808_v13 = vpop.eup %4807 }
0x1f4d   :  { %v1542_v41 = vmul.f32 %v4808_v13, %v1540_v39 }
0x1fb0   :  { %v1545_v36 = vpop.permute.xlu0 %1544 }
0x1fb1   :  { %v1547_v38 = vmul.f32 %v4808_v13, %v1545_v36 }
0x1fb3   :  { %1549 = vrot.lane.b32.xlu1 %v1547_v38, %s4983_s4 }
0x2025   :  { %v1550_v54 = vpop.permute.xlu1 %1549 }
0x2026   :  { %v1552_v43 = vadd.f32 %v1550_v54, %v1542_v41 }
0x2028   :  { %4809 = vtanh.f32 %v1552_v43  ;;  %v1651_v56 = vrot.slane %v1552_v43, 6 }
0x2032   :  { %v4810_v44 = vpop.eup %4809 }
0x2033   :  { %1555 = vrot.lane.b32.xlu0 %v4810_v44, %s4982_s25 }
0x20a5   :  { %v1556_v37 = vpop.permute.xlu0 %1555 }
0x20a6   :  { %v5369_v42 = vmul.f32 %v4808_v13, %v1556_v37 }
0x20a8   :  { %v1564_v45 = vrot.slane %v5369_v42, 2 }
0x20aa   :  { %1565 = vrot.lane.b32.xlu1 %v1564_v45, %s4983_s4 }
0x211c   :  { %v1566_v46 = vpop.permute.xlu1 %1565 }
0x211d   :  { %4326 = vmatmul.mubr.msk.f32.vlgmr.msra.gmra.mrb[24].mxu0 %vm157_vm4, %v1566_v46 }
0x211e   :  { %4597 = vmatpush3.bf16.msra.mxu0 %v5301_v4  ;;  %4347 = vmatprep.mubr.msk.f32.mxu0 %vm4981_vm2, %v4980_v5 }
0x211f   :  { %4598 = vmatprep.subr.bf16.mxu0 %v4979_v3 }
0x2122   :  { %4600 = vmatpush3.bf16.msra.mxu0 %v5311_v32 }
0x2123   :  { %4607 = vmatprep.subr.bf16.mxu0 %v4979_v3 }
0x21f0   :  { %v1635_v47 = vpop.f32.mrb[24].mxu0 }
0x21f1   :  { %v1640_v48 = vrot.slane %v1635_v47, 4  ;;  %v4327_v49 = vpop.f32.mrb[25].mxu0 }
0x21f3   :  { %v1642_v50 = vadd.f32 %v1640_v48, %v5350_v2 }
0x21f5   :  { %4811 = vtanh.f32 %v1642_v50  ;;  %v3961_v19 = vmul.f32 -1.442695, %v1642_v50 }
0x21f7   :  { %4813 = vpow2.f32 %v3961_v19 }
0x21ff   :  { %v4812_v16 = vpop.eup %4811 }
0x2200   :  { %1655 = vrot.lane.b32.xlu0 %v4812_v16, %s4982_s25 }
0x2201   :  { %v4814_v51 = vpop.eup %4813 }
0x2202   :  { %v1646_v52 = vadd.f32 1.0, %v4814_v51 }
0x2204   :  { %4815 = vrcp.f32 %v1646_v52 }
0x220e   :  { %v4816_v53 = vpop.eup %4815 }
0x220f   :  { %v1653_v57 = vmul.f32 %v4816_v53, %v1651_v56 }
0x2272   :  { %v1656_v9 = vpop.permute.xlu0 %1655 }
0x2273   :  { %v1658_v55 = vmul.f32 %v4816_v53, %v1656_v9 }
0x2275   :  { %1660 = vrot.lane.b32.xlu1 %v1658_v55, %s4983_s4 }
0x22e7   :  { %v1661_v40 = vpop.permute.xlu1 %1660 }
0x22e8   :  { %v1663_v58 = vadd.f32 %v1661_v40, %v1653_v57 }
0x22ea   :  { %4817 = vtanh.f32 %v1663_v58  ;;  %v1762_v21 = vrot.slane %v1663_v58, 6 }
0x22f4   :  { %v4818_v59 = vpop.eup %4817 }
0x22f5   :  { %1666 = vrot.lane.b32.xlu0 %v4818_v59, %s4982_s25 }
0x2367   :  { %v1667_v60 = vpop.permute.xlu0 %1666 }
0x2368   :  { %v5384_v62 = vmul.f32 %v4816_v53, %v1667_v60 }
0x236a   :  { %v1675_v1 = vrot.slane %v5384_v62, 4 }
0x236c   :  { %1676 = vrot.lane.b32.xlu1 %v1675_v1, %s4983_s4 }
0x23de   :  { %v1677_v6 = vpop.permute.xlu1 %1676 }
0x23df   :  { %4337 = vmatmul.mubr.msk.f32.vlgmr.msra.gmra.mrb[12].mxu1 %vm157_vm4, %v1677_v6 }
0x23e0   :  { %4603 = vmatpush3.bf16.msra.mxu1 %v5301_v4  ;;  %4358 = vmatprep.mubr.msk.f32.mxu1 %vm4981_vm2, %v4980_v5 }
0x23e1   :  { %4604 = vmatprep.subr.bf16.mxu1 %v4979_v3 }
0x23e4   :  { %4606 = vmatpush3.bf16.msra.mxu1 %v5311_v32 }
0x23e5   :  { %4613 = vmatprep.subr.bf16.mxu1 %v4979_v3 }
0x24b2   :  { %v1746_v7 = vpop.f32.mrb[12].mxu1 }
0x24b3   :  { %v1751_v8 = vrot.slane %v1746_v7, 2  ;;  %v4338_v10 = vpop.f32.mrb[13].mxu1 }
0x24b5   :  { %v1753_v12 = vadd.f32 %v1751_v8, %v5350_v2 }
0x24b7   :  { %4819 = vtanh.f32 %v1753_v12  ;;  %v3963_v15 = vmul.f32 -1.442695, %v1753_v12 }
0x24b9   :  { %4821 = vpow2.f32 %v3963_v15 }
0x24c1   :  { %v4820_v14 = vpop.eup %4819 }
0x24c2   :  { %1766 = vrot.lane.b32.xlu0 %v4820_v14, %s4982_s25 }
0x24c3   :  { %v4822_v17 = vpop.eup %4821 }
0x24c4   :  { %v1757_v11 = vadd.f32 1.0, %v4822_v17 }
0x24c6   :  { %4823 = vrcp.f32 %v1757_v11 }
0x24d0   :  { %v4824_v34 = vpop.eup %4823 }
0x24d1   :  { %v1764_v22 = vmul.f32 %v4824_v34, %v1762_v21 }
0x2534   :  { %v1767_v18 = vpop.permute.xlu0 %1766 }
0x2535   :  { %v1769_v20 = vmul.f32 %v4824_v34, %v1767_v18 }
0x2537   :  { %1771 = vrot.lane.b32.xlu1 %v1769_v20, %s4983_s4 }
0x25a9   :  { %v1772_v23 = vpop.permute.xlu1 %1771 }
0x25aa   :  { %v1774_v24 = vadd.f32 %v1772_v23, %v1764_v22 }
0x25ac   :  { %4825 = vtanh.f32 %v1774_v24  ;;  %v1870_v61 = vrot.slane %v1774_v24, 6 }
0x25b6   :  { %v4826_v2 = vpop.eup %4825 }
0x25b7   :  { %1777 = vrot.lane.b32.xlu0 %v4826_v2, %s4982_s25 }
0x2629   :  { %v1778_v25 = vpop.permute.xlu0 %1777 }
0x262a   :  { %v5399_v26 = vmul.f32 %v4824_v34, %v1778_v25 }
0x262c   :  { %v1786_v27 = vrot.slane %v5399_v26, 6 }
0x262e   :  { %1787 = vrot.lane.b32.xlu1 %v1786_v27, %s4983_s4 }
0x26a0   :  { %v1788_v28 = vpop.permute.xlu1 %1787 }
0x26a1   :  { %4348 = vmatmul.mubr.msk.f32.vlgmr.msra.gmra.mrb[26].mxu0 %vm157_vm4, %v1788_v28 }
0x26a2   :  { %4609 = vmatpush3.bf16.msra.mxu0 %v5301_v4  ;;  %4369 = vmatprep.mubr.msk.f32.mxu0 %vm4981_vm2, %v4980_v5 }
0x26a3   :  { %4610 = vmatprep.subr.bf16.mxu0 %v4979_v3 }
0x26a6   :  { %4612 = vmatpush3.bf16.msra.mxu0 %v5311_v32 }
0x26a7   :  { %4619 = vmatprep.subr.bf16.mxu0 %v4979_v3 }
0x2774   :  { %v1857_v30 = vpop.f32.mrb[26].mxu0 }
0x2775   :  { %v1861_v31 = vadd.f32 %v1857_v30, %v5412_v29  ;;  %v4349_v33 = vpop.f32.mrb[27].mxu0 }
0x2777   :  { %4827 = vtanh.f32 %v1861_v31  ;;  %v3965_v13 = vmul.f32 -1.442695, %v1861_v31 }
0x2779   :  { %4829 = vpow2.f32 %v3965_v13 }
0x2781   :  { %v4828_v35 = vpop.eup %4827 }
0x2782   :  { %1874 = vrot.lane.b32.xlu0 %v4828_v35, %s4982_s25 }
0x2783   :  { %v4830_v36 = vpop.eup %4829 }
0x2784   :  { %v1865_v38 = vadd.f32 1.0, %v4830_v36 }
0x2786   :  { %4831 = vrcp.f32 %v1865_v38 }
0x2790   :  { %v4832_v39 = vpop.eup %4831 }
0x2791   :  { %v1872_v43 = vmul.f32 %v4832_v39, %v1870_v61 }
0x27f4   :  { %v1875_v41 = vpop.permute.xlu0 %1874 }
0x27f5   :  { %v1877_v54 = vmul.f32 %v4832_v39, %v1875_v41 }
0x27f7   :  { %1879 = vrot.lane.b32.xlu1 %v1877_v54, %s4983_s4 }
0x2869   :  { %v1880_v44 = vpop.permute.xlu1 %1879 }
0x286a   :  { %v1882_v37 = vadd.f32 %v1880_v44, %v1872_v43 }
0x286c   :  { %4833 = vtanh.f32 %v1882_v37  ;;  %v1978_v40 = vrot.slane %v1882_v37, 6 }
0x2876   :  { %v4834_v45 = vpop.eup %4833 }
0x2877   :  { %1885 = vrot.lane.b32.xlu0 %v4834_v45, %s4982_s25 }
0x28e9   :  { %v1886_v46 = vpop.permute.xlu0 %1885 }
0x28ea   :  { %v1888_v47 = vmul.f32 %v4832_v39, %v1886_v46 }
0x28ec   :  { %1890 = vrot.lane.b32.xlu1 %v1888_v47, %s4983_s4 }
0x295e   :  { %v1891_v48 = vpop.permute.xlu1 %1890 }
0x295f   :  { %1893 = vst.msk [vmem:[#allocation3 + $0x8] sm:$0x3] %vm260_vm3, %v1891_v48  ;;  %4359 = vmatmul.mubr.msk.f32.vlgmr.msra.gmra.mrb[14].mxu1 %vm157_vm4, %v1891_v48 }
0x2960   :  { %4615 = vmatpush3.bf16.msra.mxu1 %v5301_v4  ;;  %4380 = vmatprep.mubr.msk.f32.mxu1 %vm4981_vm2, %v4980_v5 }
0x2961   :  { %4616 = vmatprep.subr.bf16.mxu1 %v4979_v3 }
0x2964   :  { %4618 = vmatpush3.bf16.msra.mxu1 %v5311_v32 }
0x2965   :  { %4625 = vmatprep.subr.bf16.mxu1 %v4979_v3 }
0x2a32   :  { %v1962_v49 = vpop.f32.mrb[14].mxu1 }
0x2a33   :  { %v1967_v50 = vrot.slane %v1962_v49, 6  ;;  %v4360_v16 = vpop.f32.mrb[15].mxu1 }
0x2a35   :  { %v1969_v19 = vadd.f32 %v1967_v50, %v5412_v29 }
0x2a37   :  { %4835 = vtanh.f32 %v1969_v19  ;;  %v3967_v52 = vmul.f32 -1.442695, %v1969_v19  ;;  %v5470_v19 = vadd.f32 %v5345_v63, %v5347_v0 }
0x2a39   :  { %4837 = vpow2.f32 %v3967_v52 }
0x2a41   :  { %v4836_v51 = vpop.eup %4835 }
0x2a42   :  { %1982 = vrot.lane.b32.xlu0 %v4836_v51, %s4982_s25 }
0x2a43   :  { %v4838_v53 = vpop.eup %4837 }
0x2a44   :  { %v1973_v9 = vadd.f32 1.0, %v4838_v53 }
0x2a46   :  { %4839 = vrcp.f32 %v1973_v9 }
0x2a50   :  { %v4840_v55 = vpop.eup %4839 }
0x2a51   :  { %v1980_v58 = vmul.f32 %v4840_v55, %v1978_v40 }
0x2ab4   :  { %v1983_v56 = vpop.permute.xlu0 %1982 }
0x2ab5   :  { %v1985_v57 = vmul.f32 %v4840_v55, %v1983_v56 }
0x2ab7   :  { %1987 = vrot.lane.b32.xlu1 %v1985_v57, %s4983_s4 }
0x2b29   :  { %v1988_v59 = vpop.permute.xlu1 %1987 }
0x2b2a   :  { %v1990_v60 = vadd.f32 %v1988_v59, %v1980_v58 }
0x2b2c   :  { %4841 = vtanh.f32 %v1990_v60  ;;  %v2089_v24 = vrot.slane %v1990_v60, 6 }
0x2b36   :  { %v4842_v1 = vpop.eup %4841 }
0x2b37   :  { %1993 = vrot.lane.b32.xlu0 %v4842_v1, %s4982_s25 }
0x2ba9   :  { %v1994_v6 = vpop.permute.xlu0 %1993 }
0x2baa   :  { %v5431_v7 = vmul.f32 %v4840_v55, %v1994_v6  ;;  %v2443_v6 = vld [vmem:[%s5834_s8] sm:$0xff] }
0x2bac   :  { %v2002_v8 = vrot.slane %v5431_v7, 2 }
0x2bae   :  { %2003 = vrot.lane.b32.xlu1 %v2002_v8, %s4983_s4  ;;  %v2444_v8 = vld [vmem:[%s5834_s8 + $0x8] sm:$0xff] }
0x2c20   :  { %v2004_v10 = vpop.permute.xlu1 %2003 }
0x2c21   :  { %4370 = vmatmul.mubr.msk.f32.vlgmr.msra.gmra.mrb[28].mxu0 %vm157_vm4, %v2004_v10 }
0x2c22   :  { %4621 = vmatpush3.bf16.msra.mxu0 %v5301_v4  ;;  %4391 = vmatprep.mubr.msk.f32.mxu0 %vm4981_vm2, %v4980_v5 }
0x2c23   :  { %4622 = vmatprep.subr.bf16.mxu0 %v4979_v3 }
0x2c26   :  { %4624 = vmatpush3.bf16.msra.mxu0 %v5311_v32 }
0x2c27   :  { %4631 = vmatprep.subr.bf16.mxu0 %v4979_v3 }
0x2cf4   :  { %v2073_v12 = vpop.f32.mrb[28].mxu0 }
0x2cf5   :  { %v2078_v14 = vrot.slane %v2073_v12, 4  ;;  %v4371_v15 = vpop.f32.mrb[29].mxu0  ;;  %v2446_v12 = vld [vmem:[%s5834_s8 + $0x18] sm:$0xff] }
0x2cf7   :  { %v2080_v17 = vadd.f32 %v2078_v14, %v5412_v29 }
0x2cf9   :  { %4843 = vtanh.f32 %v2080_v17  ;;  %v3969_v34 = vmul.f32 -1.442695, %v2080_v17 }
0x2cfb   :  { %4845 = vpow2.f32 %v3969_v34 }
0x2d03   :  { %v4844_v11 = vpop.eup %4843 }
0x2d04   :  { %2093 = vrot.lane.b32.xlu0 %v4844_v11, %s4982_s25 }
0x2d05   :  { %v4846_v18 = vpop.eup %4845 }
0x2d06   :  { %v2084_v20 = vadd.f32 1.0, %v4846_v18 }
0x2d08   :  { %4847 = vrcp.f32 %v2084_v20  ;;  %v2447_v20 = vld [vmem:[%s5835_s9] sm:$0xff] }
0x2d12   :  { %v4848_v21 = vpop.eup %4847 }
0x2d13   :  { %v2091_v2 = vmul.f32 %v4848_v21, %v2089_v24 }
0x2d76   :  { %v2094_v22 = vpop.permute.xlu0 %2093 }
0x2d77   :  { %v2096_v23 = vmul.f32 %v4848_v21, %v2094_v22 }
0x2d79   :  { %2098 = vrot.lane.b32.xlu1 %v2096_v23, %s4983_s4 }
0x2deb   :  { %v2099_v25 = vpop.permute.xlu1 %2098 }
0x2dec   :  { %v2101_v27 = vadd.f32 %v2099_v25, %v2091_v2  ;;  %v5530_v25 = vld [vmem:[%s5836_s10] ss:$0 sm:$0xff]  ;;  %s4985_s10 = smov 16  }
0x2dee   :  { %4849 = vtanh.f32 %v2101_v27 }
0x2df8   :  { %v4850_v28 = vpop.eup %4849 }
0x2df9   :  { %2104 = vrot.lane.b32.xlu0 %v4850_v28, %s4982_s25 }
0x2e6b   :  { %v2105_v30 = vpop.permute.xlu0 %2104 }
0x2e6c   :  { %v5446_v31 = vmul.f32 %v4848_v21, %v2105_v30  ;;  %v2448_v21 = vld [vmem:[%s5835_s9 + $0x8] sm:$0xff] }
0x2e6d   :  { %v5509_v23 = vpack.c.bf16 %v2448_v21, %v2447_v20 }
0x2e6e   :  { %v2113_v33 = vrot.slane %v5446_v31, 4 }
0x2e70   :  { %2114 = vrot.lane.b32.xlu1 %v2113_v33, %s4983_s4 }
0x2ee2   :  { %v2115_v35 = vpop.permute.xlu1 %2114 }
0x2ee3   :  { %4381 = vmatmul.mubr.msk.f32.vlgmr.msra.gmra.mrb[16].mxu1 %vm157_vm4, %v2115_v35 }
0x2ee4   :  { %4627 = vmatpush3.bf16.msra.mxu1 %v5301_v4  ;;  %4402 = vmatprep.mubr.msk.f32.mxu1 %vm4981_vm2, %v4980_v5 }
0x2ee5   :  { %4628 = vmatprep.subr.bf16.mxu1 %v4979_v3 }
0x2ee8   :  { %4630 = vmatpush3.bf16.msra.mxu1 %v5311_v32  ;;  %v2200_v32 = vrot.slane %v2101_v27, 6 }
0x2ee9   :  { %4637 = vmatprep.subr.bf16.mxu1 %v4979_v3 }
0x2fb6   :  { %v2184_v13 = vpop.f32.mrb[16].mxu1 }
0x2fb7   :  { %v2189_v36 = vrot.slane %v2184_v13, 2  ;;  %v4382_v38 = vpop.f32.mrb[17].mxu1 }
0x2fb9   :  { %v2191_v39 = vadd.f32 %v2189_v36, %v5412_v29 }
0x2fbb   :  { %4851 = vtanh.f32 %v2191_v39  ;;  %v3971_v54 = vmul.f32 -1.442695, %v2191_v39 }
0x2fbd   :  { %4853 = vpow2.f32 %v3971_v54 }
0x2fc5   :  { %v4852_v41 = vpop.eup %4851 }
0x2fc6   :  { %2204 = vrot.lane.b32.xlu0 %v4852_v41, %s4982_s25 }
0x2fc7   :  { %v4854_v4 = vpop.eup %4853 }
0x2fc8   :  { %v2195_v61 = vadd.f32 1.0, %v4854_v4 }
0x2fca   :  { %4855 = vrcp.f32 %v2195_v61 }
0x2fd4   :  { %v4856_v43 = vpop.eup %4855 }
0x2fd5   :  { %v2202_v45 = vmul.f32 %v4856_v43, %v2200_v32 }
0x3038   :  { %v2205_v44 = vpop.permute.xlu0 %2204 }
0x3039   :  { %v2207_v37 = vmul.f32 %v4856_v43, %v2205_v44 }
0x303b   :  { %2209 = vrot.lane.b32.xlu1 %v2207_v37, %s4983_s4 }
0x30ad   :  { %v2210_v46 = vpop.permute.xlu1 %2209 }
0x30ae   :  { %v2212_v47 = vadd.f32 %v2210_v46, %v2202_v45 }
0x30b0   :  { %4857 = vtanh.f32 %v2212_v47  ;;  %v2308_v63 = vrot.slane %v2212_v47, 6 }
0x30ba   :  { %v4858_v29 = vpop.eup %4857 }
0x30bb   :  { %2215 = vrot.lane.b32.xlu0 %v4858_v29, %s4982_s25 }
0x312d   :  { %v2216_v48 = vpop.permute.xlu0 %2215 }
0x312e   :  { %v5461_v49 = vmul.f32 %v4856_v43, %v2216_v48 }
0x3130   :  { %v2224_v50 = vrot.slane %v5461_v49, 6 }
0x3132   :  { %2225 = vrot.lane.b32.xlu1 %v2224_v50, %s4983_s4 }
0x31a4   :  { %v2226_v16 = vpop.permute.xlu1 %2225 }
0x31a5   :  { %4392 = vmatmul.mubr.msk.f32.vlgmr.msra.gmra.mrb[30].mxu0 %vm157_vm4, %v2226_v16 }
0x31a6   :  { %4413 = vmatprep.mubr.msk.f32.mxu0 %vm4981_vm2, %v4980_v5 }
0x3278   :  { %v2295_v51 = vpop.f32.mrb[30].mxu0 }
0x3279   :  { %v2299_v52 = vadd.f32 %v2295_v51, %v5470_v19  ;;  %v4393_v53 = vpop.f32.mrb[31].mxu0 }
0x327b   :  { %4859 = vtanh.f32 %v2299_v52  ;;  %v3973_v55 = vmul.f32 -1.442695, %v2299_v52 }
0x327d   :  { %4861 = vpow2.f32 %v3973_v55 }
0x3285   :  { %v4860_v9 = vpop.eup %4859 }
0x3286   :  { %2312 = vrot.lane.b32.xlu0 %v4860_v9, %s4982_s25 }
0x3287   :  { %v4862_v56 = vpop.eup %4861 }
0x3288   :  { %v2303_v57 = vadd.f32 1.0, %v4862_v56 }
0x328a   :  { %4863 = vrcp.f32 %v2303_v57 }
0x3294   :  { %v4864_v40 = vpop.eup %4863 }
0x3295   :  { %v2310_v0 = vmul.f32 %v4864_v40, %v2308_v63 }
0x32f8   :  { %v2313_v58 = vpop.permute.xlu0 %2312 }
0x32f9   :  { %v2315_v59 = vmul.f32 %v4864_v40, %v2313_v58 }
0x32fb   :  { %2317 = vrot.lane.b32.xlu1 %v2315_v59, %s4983_s4 }
0x32ff   :  { %1560 = vrot.lane.b32.xlu1 %v5369_v42, %s4983_s4  ;;  %v4632_v42 = vpack.c.bf16 %v2444_v8, %v2443_v6 }
0x3301   :  { %4633 = vmatpush3.bf16.msra.mxu0 %v4632_v42 }
0x3302   :  { %4634 = vmatprep.subr.bf16.mxu0 %v4979_v3 }
0x3303   :  { %1782 = vrot.lane.b32.xlu1 %v5399_v26, %s4983_s4  ;;  %v2445_v26 = vld [vmem:[%s5834_s8 + $0x10] sm:$0xff] }
0x3304   :  { %v4635_v14 = vpack.c.bf16 %v2446_v12, %v2445_v26 }
0x3306   :  { %4636 = vmatpush3.bf16.msra.mxu0 %v4635_v14 }
0x3307   :  { %4646 = vmatprep.subr.bf16.mxu0 %v4979_v3 }
0x336d   :  { %v2318_v60 = vpop.permute.xlu1 %2317 }
0x336e   :  { %v5479_v1 = vadd.f32 %v2318_v60, %v2310_v0 }
0x3370   :  { %4865 = vtanh.f32 %v5479_v1 }
0x3371   :  { %v1561_v10 = vpop.permute.xlu1 %1560 }
0x3372   :  { %1563 = vst.msk [vmem:[#allocation3] sm:$0xc] %vm369_vm5, %v1561_v10 }
0x3375   :  { %v1783_v15 = vpop.permute.xlu1 %1782 }
0x3376   :  { %1785 = vst.msk [vmem:[#allocation3] sm:$0xc0] %vm593_vm6, %v1783_v15 }
0x337a   :  { %v4866_v17 = vpop.eup %4865 }
0x337b   :  { %2323 = vrot.lane.b32.xlu0 %v4866_v17, %s4982_s25 }
0x337f   :  { %1671 = vrot.lane.b32.xlu0 %v5384_v62, %s4983_s4 }
0x33ed   :  { %v2324_v11 = vpop.permute.xlu0 %2323 }
0x33ee   :  { %v2326_v34 = vmul.f32 %v4864_v40, %v2324_v11 }
0x33f0   :  { %2328 = vrot.lane.b32.xlu0 %v2326_v34, %s4983_s4  ;;  %v2416_v34 = vrot.slane %v5479_v1, 6 }
0x33f1   :  { %v1672_v18 = vpop.permute.xlu0 %1671 }
0x33f2   :  { %1674 = vst.msk [vmem:[#allocation3] sm:$0x30] %vm481_vm7, %v1672_v18 }
0x33f9   :  { %v2440_v22 = vld [vmem:[#allocation3] sm:$0xff] }
0x33fa   :  { %4414 = vmatmul.mubr.msk.f32.vlgmr.msra.gmra.mrb[32].mxu0 %vm157_vm4, %v2440_v22 }
0x33fb   :  { %4416 = vmatprep.mubr.msk.f32.mxu0 %vm4981_vm2, %v4980_v5  ;;  %4648 = vmatpush3.bf16.msra.mxu0 %v5509_v23 }
0x33fc   :  { %4652 = vmatprep.subr.bf16.mxu0 %v4979_v3 }
0x3462   :  { %v2329_v62 = vpop.permute.xlu0 %2328 }
0x3463   :  { %2331 = vst.msk [vmem:[#allocation3 + $0x10] sm:$0x3] %vm260_vm3, %v2329_v62  ;;  %4403 = vmatmul.mubr.msk.f32.vlgmr.msra.gmra.mrb[18].mxu1 %vm157_vm4, %v2329_v62 }
0x3464   :  { %4639 = vmatpush3.bf16.msra.mxu1 %v5509_v23  ;;  %4426 = vmatprep.mubr.msk.f32.mxu1 %vm4981_vm2, %v4980_v5 }
0x3465   :  { %4640 = vmatprep.subr.bf16.mxu1 %v4979_v3 }
0x3467   :  { %4427 = vmatmul.mubr.f32.vlgmr.msra.gmra.mrb[20].mxu1 %v4980_v5 }
0x3468   :  { %4642 = vmatpush3.bf16.msra.mxu1 %v5509_v23  ;;  %4433 = vmatprep.mubr.msk.f32.mxu1 %vm4981_vm2, %v4980_v5 }
0x3469   :  { %4643 = vmatprep.subr.bf16.mxu1 %v4979_v3 }
0x34cd   :  { %v2531_v24 = vpop.f32.mrb[32].mxu0 }
0x34ce   :  { %v4415_v2 = vpop.f32.mrb[33].mxu0  ;;  %v5533_v30 = vadd.f32 %v5530_v25, %v2531_v24 }
0x3536   :  { %v2400_v27 = vpop.f32.mrb[18].mxu1 }
0x3537   :  { %v4404_v28 = vpop.f32.mrb[19].mxu1  ;;  %v2405_v58 = vrot.slane %v2400_v27, 6 }
0x3539   :  { %v2407_v60 = vadd.f32 %v2405_v58, %v5470_v19 }
0x353a   :  { %v2614_v33 = vpop.f32.mrb[20].mxu1 }
0x353b   :  { %v2618_v35 = vadd.f32 %v2614_v33, %v5533_v30  ;;  %v4428_v13 = vpop.f32.mrb[21].mxu1  ;;  %v3975_v10 = vmul.f32 -1.442695, %v2407_v60 }
0x353d   :  { %4867 = vtanh.f32 %v2618_v35  ;;  %v3980_v38 = vmul.f32 -1.442695, %v2618_v35 }
0x353f   :  { %4869 = vpow2.f32 %v3980_v38 }
0x3547   :  { %v4868_v36 = vpop.eup %4867 }
0x3548   :  { %2628 = vrot.lane.b32.xlu1 %v4868_v36, %s4984_s21 }
0x3549   :  { %v4870_v39 = vpop.eup %4869 }
0x354a   :  { %v2622_v41 = vadd.f32 1.0, %v4870_v39 }
0x354c   :  { %4871 = vrcp.f32 %v2622_v41 }
0x3556   :  { %v4872_v54 = vpop.eup %4871 }
0x3557   :  { %v2626_v43 = vmul.f32 0.0, %v4872_v54 }
0x35ba   :  { %v2629_v4 = vpop.permute.xlu1 %2628 }
0x35bb   :  { %v2631_v61 = vmul.f32 %v4872_v54, %v2629_v4 }
0x35bd   :  { %2633 = vrot.lane.b32.xlu0 %v2631_v61, %s4985_s10 }
0x362f   :  { %v2634_v44 = vpop.permute.xlu0 %2633 }
0x3630   :  { %v2636_v37 = vadd.f32 %v2634_v44, %v2626_v43 }
0x3632   :  { %4873 = vtanh.f32 %v2636_v37  ;;  %v2742_v40 = vrot.slane %v2636_v37, 6 }
0x363c   :  { %v4874_v32 = vpop.eup %4873 }
0x363d   :  { %2639 = vrot.lane.b32.xlu1 %v4874_v32, %s4983_s4 }
0x36af   :  { %v2640_v45 = vpop.permute.xlu1 %2639 }
0x36b0   :  { %v5539_v46 = vmul.f32 %v4872_v54, %v2640_v45 }
0x36b2   :  { %2656 = vrot.lane.b32.xlu0 %v5539_v46, %s4986_s22 }
0x3724   :  { %v2657_v47 = vpop.permute.xlu0 %2656 }
0x3725   :  { %4434 = vmatmul.mubr.msk.f32.vlgmr.msra.gmra.mrb[22].mxu1 %vm2545_vm8, %v2657_v47 }
0x3726   :  { %4645 = vmatpush3.bf16.msra.mxu1 %v5509_v23  ;;  %4440 = vmatprep.mubr.msk.f32.mxu1 %vm4981_vm2, %v4980_v5 }
0x3727   :  { %4649 = vmatprep.subr.bf16.mxu1 %v4979_v3 }
0x37f8   :  { %v2726_v29 = vpop.f32.mrb[22].mxu1 }
0x37f9   :  { %v2731_v48 = vrot.slane %v2726_v29, 6  ;;  %v4435_v50 = vpop.f32.mrb[23].mxu1 }
0x37fb   :  { %v2733_v16 = vadd.f32 %v2731_v48, %v5533_v30 }
0x37fd   :  { %4875 = vtanh.f32 %v2733_v16  ;;  %v3982_v52 = vmul.f32 -1.442695, %v2733_v16 }
0x37ff   :  { %4877 = vpow2.f32 %v3982_v52 }
0x3807   :  { %v4876_v51 = vpop.eup %4875 }
0x3808   :  { %2746 = vrot.lane.b32.xlu1 %v4876_v51, %s4984_s21 }
0x3809   :  { %v4878_v53 = vpop.eup %4877 }
0x380a   :  { %v2737_v9 = vadd.f32 1.0, %v4878_v53 }
0x380c   :  { %4879 = vrcp.f32 %v2737_v9 }
0x3816   :  { %v4880_v55 = vpop.eup %4879 }
0x3817   :  { %v2744_v59 = vmul.f32 %v4880_v55, %v2742_v40 }
0x387a   :  { %v2747_v56 = vpop.permute.xlu1 %2746 }
0x387b   :  { %v2749_v57 = vmul.f32 %v4880_v55, %v2747_v56 }
0x387d   :  { %2751 = vrot.lane.b32.xlu0 %v2749_v57, %s4985_s10 }
0x38ef   :  { %v2752_v63 = vpop.permute.xlu0 %2751 }
0x38f0   :  { %v2754_v0 = vadd.f32 %v2752_v63, %v2744_v59 }
0x38f2   :  { %4881 = vtanh.f32 %v2754_v0  ;;  %v2862_v54 = vrot.slane %v2754_v0, 6 }
0x38f3   :  { %4883 = vtanh.f32 %v2407_v60 }
0x38f4   :  { %4885 = vpow2.f32 %v3975_v10 }
0x38fc   :  { %v4882_v6 = vpop.eup %4881 }
0x38fd   :  { %2757 = vrot.lane.b32.xlu1 %v4882_v6, %s4983_s4  ;;  %v4884_v8 = vpop.eup %4883 }
0x38fe   :  { %v4886_v42 = vpop.eup %4885 }
0x38ff   :  { %v2411_v26 = vadd.f32 1.0, %v4886_v42 }
0x3901   :  { %2420 = vrot.lane.b32.xlu1 %v4884_v8, %s4982_s25  ;;  %4887 = vrcp.f32 %v2411_v26 }
0x390b   :  { %v4888_v17 = vpop.eup %4887 }
0x390c   :  { %v2418_v20 = vmul.f32 %v4888_v17, %v2416_v34 }
0x396f   :  { %v2758_v12 = vpop.permute.xlu1 %2757 }
0x3970   :  { %v5554_v14 = vmul.f32 %v4880_v55, %v2758_v12 }
0x3972   :  { %v2775_v15 = vrot.slane %v5554_v14, 2 }
0x3973   :  { %v2421_v19 = vpop.permute.xlu1 %2420 }
0x3974   :  { %v2423_v11 = vmul.f32 %v4888_v17, %v2421_v19  ;;  %2776 = vrot.lane.b32.xlu0 %v2775_v15, %s4986_s22 }
0x3976   :  { %2425 = vrot.lane.b32.xlu1 %v2423_v11, %s4983_s4 }
0x39e6   :  { %v2777_v18 = vpop.permute.xlu0 %2776 }
0x39e7   :  { %4441 = vmatmul.mubr.msk.f32.vlgmr.msra.gmra.mrb[24].mxu1 %vm2545_vm8, %v2777_v18 }
0x39e8   :  { %v2426_v21 = vpop.permute.xlu1 %2425  ;;  %4651 = vmatpush3.bf16.msra.mxu1 %v5509_v23  ;;  %4454 = vmatprep.mubr.msk.f32.mxu1 %vm4981_vm2, %v4980_v5 }
0x39e9   :  { %v2428_v22 = vadd.f32 %v2426_v21, %v2418_v20  ;;  %4655 = vmatprep.subr.bf16.mxu1 %v4979_v3 }
0x39eb   :  { %4889 = vtanh.f32 %v2428_v22 }
0x39f5   :  { %v4890_v62 = vpop.eup %4889 }
0x39f6   :  { %2431 = vrot.lane.b32.xlu1 %v4890_v62, %s4982_s25 }
0x39fa   :  { %1998 = vrot.lane.b32.xlu1 %v5431_v7, %s4983_s4 }
0x39fe   :  { %2220 = vrot.lane.b32.xlu1 %v5461_v49, %s4983_s4 }
0x3a68   :  { %v2432_v1 = vpop.permute.xlu1 %2431 }
0x3a69   :  { %v2434_v37 = vmul.f32 %v4888_v17, %v2432_v1 }
0x3a6c   :  { %v1999_v24 = vpop.permute.xlu1 %1998 }
0x3a6d   :  { %2001 = vst.msk [vmem:[#allocation3 + $0x8] sm:$0xc] %vm369_vm5, %v1999_v24 }
0x3a70   :  { %v2221_v2 = vpop.permute.xlu1 %2220 }
0x3a71   :  { %2223 = vst.msk [vmem:[#allocation3 + $0x8] sm:$0xc0] %vm593_vm6, %v2221_v2 }
0x3aba   :  { %v2846_v27 = vpop.f32.mrb[24].mxu1 }
0x3abb   :  { %v2851_v28 = vrot.slane %v2846_v27, 4  ;;  %v4442_v33 = vpop.f32.mrb[25].mxu1 }
0x3abd   :  { %v2853_v35 = vadd.f32 %v2851_v28, %v5533_v30 }
0x3abf   :  { %4891 = vtanh.f32 %v2853_v35  ;;  %v3984_v7 = vmul.f32 -1.442695, %v2853_v35 }
0x3ac1   :  { %4893 = vpow2.f32 %v3984_v7 }
0x3ac9   :  { %v4892_v13 = vpop.eup %4891 }
0x3aca   :  { %2866 = vrot.lane.b32.xlu0 %v4892_v13, %s4984_s21 }
0x3acb   :  { %v4894_v36 = vpop.eup %4893 }
0x3acc   :  { %v2857_v49 = vadd.f32 1.0, %v4894_v36 }
0x3ace   :  { %4895 = vrcp.f32 %v2857_v49 }
0x3ad8   :  { %v4896_v38 = vpop.eup %4895 }
0x3ad9   :  { %v2864_v4 = vmul.f32 %v4896_v38, %v2862_v54 }
0x3b3c   :  { %v2867_v39 = vpop.permute.xlu0 %2866 }
0x3b3d   :  { %v2869_v41 = vmul.f32 %v4896_v38, %v2867_v39 }
0x3b3f   :  { %2871 = vrot.lane.b32.xlu0 %v2869_v41, %s4985_s10 }
0x3bb1   :  { %v2872_v61 = vpop.permute.xlu0 %2871 }
0x3bb2   :  { %v2874_v43 = vadd.f32 %v2872_v61, %v2864_v4 }
0x3bb4   :  { %4897 = vtanh.f32 %v2874_v43  ;;  %v2982_v10 = vrot.slane %v2874_v43, 6 }
0x3bbe   :  { %v4898_v44 = vpop.eup %4897 }
0x3bbf   :  { %2877 = vrot.lane.b32.xlu0 %v4898_v44, %s4983_s4 }
0x3bc3   :  { %2109 = vrot.lane.b32.xlu0 %v5446_v31, %s4983_s4 }
0x3bc7   :  { %2436 = vrot.lane.b32.xlu0 %v2434_v37, %s4983_s4 }
0x3c31   :  { %v2878_v32 = vpop.permute.xlu0 %2877 }
0x3c32   :  { %v5579_v45 = vmul.f32 %v4896_v38, %v2878_v32 }
0x3c34   :  { %v2895_v47 = vrot.slane %v5579_v45, 4 }
0x3c35   :  { %v2110_v29 = vpop.permute.xlu0 %2109 }
0x3c36   :  { %2112 = vst.msk [vmem:[#allocation3 + $0x8] sm:$0x30] %vm481_vm7, %v2110_v29  ;;  %2896 = vrot.lane.b32.xlu1 %v2895_v47, %s4986_s22 }
0x3c39   :  { %v2437_v48 = vpop.permute.xlu0 %2436 }
0x3c3a   :  { %2439 = vst.msk [vmem:[#allocation3 + $0x10] sm:$0xc] %vm369_vm5, %v2437_v48 }
0x3c3d   :  { %v2441_v50 = vld [vmem:[#allocation3 + $0x8] sm:$0xff] }
0x3c3e   :  { %4417 = vmatmul.mubr.msk.f32.gmra.mrb[34].mxu0 %vm157_vm4, %v2441_v50 }
0x3c3f   :  { %4419 = vmatprep.mubr.msk.f32.mxu0 %vm4981_vm2, %v4980_v5 }
0x3c41   :  { %v2442_v31 = vld [vmem:[#allocation3 + $0x10] sm:$0xf] }
0x3c42   :  { %4420 = vmatmul.mubr.msk.f32.gmra.mrb[36].mxu0 %vm157_vm4, %v2442_v31 }
0x3c43   :  { %4447 = vmatprep.mubr.msk.f32.mxu0 %vm4981_vm2, %v4980_v5 }
0x3ca8   :  { %v2897_v16 = vpop.permute.xlu1 %2896 }
0x3ca9   :  { %4448 = vmatmul.mubr.msk.f32.vlgmr.msra.gmra.mrb[38].mxu0 %vm2545_vm8, %v2897_v16 }
0x3caa   :  { %4654 = vmatpush3.bf16.msra.mxu0 %v5509_v23  ;;  %4461 = vmatprep.mubr.msk.f32.mxu0 %vm4981_vm2, %v4980_v5 }
0x3cab   :  { %4658 = vmatprep.subr.bf16.mxu0 %v4979_v3 }
0x3d11   :  { %v2536_v51 = vpop.f32.mrb[34].mxu0 }
0x3d12   :  { %v4418_v52 = vpop.f32.mrb[35].mxu0  ;;  %v5612_v34 = vadd.f32 %v5530_v25, %v2536_v51 }
0x3d15   :  { %v5596_v53 = vpop.f32.mrb[36].mxu0 }
0x3d16   :  { %v4421_v9 = vpop.f32.mrb[37].mxu0 }
0x3d7c   :  { %v2966_v55 = vpop.f32.mrb[38].mxu0 }
0x3d7d   :  { %v2971_v56 = vrot.slane %v2966_v55, 2  ;;  %v4449_v57 = vpop.f32.mrb[39].mxu0 }
0x3d7f   :  { %v2973_v40 = vadd.f32 %v2971_v56, %v5533_v30 }
0x3d81   :  { %4899 = vtanh.f32 %v2973_v40  ;;  %v3986_v59 = vmul.f32 -1.442695, %v2973_v40 }
0x3d83   :  { %4901 = vpow2.f32 %v3986_v59 }
0x3d8b   :  { %v4900_v58 = vpop.eup %4899 }
0x3d8c   :  { %2986 = vrot.lane.b32.xlu0 %v4900_v58, %s4984_s21 }
0x3d8d   :  { %v4902_v63 = vpop.eup %4901 }
0x3d8e   :  { %v2977_v0 = vadd.f32 1.0, %v4902_v63 }
0x3d90   :  { %4903 = vrcp.f32 %v2977_v0 }
0x3d9a   :  { %v4904_v60 = vpop.eup %4903 }
0x3d9b   :  { %v2984_v42 = vmul.f32 %v4904_v60, %v2982_v10 }
0x3dfe   :  { %v2987_v6 = vpop.permute.xlu0 %2986 }
0x3dff   :  { %v2989_v8 = vmul.f32 %v4904_v60, %v2987_v6 }
0x3e01   :  { %2991 = vrot.lane.b32.xlu1 %v2989_v8, %s4985_s10 }
0x3e73   :  { %v2992_v26 = vpop.permute.xlu1 %2991 }
0x3e74   :  { %v2994_v12 = vadd.f32 %v2992_v26, %v2984_v42 }
0x3e76   :  { %4905 = vtanh.f32 %v2994_v12  ;;  %v3098_v33 = vrot.slane %v2994_v12, 6 }
0x3e80   :  { %v4906_v30 = vpop.eup %4905 }
0x3e81   :  { %2997 = vrot.lane.b32.xlu0 %v4906_v30, %s4983_s4 }
0x3ef3   :  { %v2998_v15 = vpop.permute.xlu0 %2997 }
0x3ef4   :  { %v5602_v17 = vmul.f32 %v4904_v60, %v2998_v15 }
0x3ef6   :  { %v3014_v19 = vrot.slane %v5602_v17, 6 }
0x3ef8   :  { %3015 = vrot.lane.b32.xlu1 %v3014_v19, %s4986_s22 }
0x3f6a   :  { %v3016_v11 = vpop.permute.xlu1 %3015 }
0x3f6b   :  { %4455 = vmatmul.mubr.msk.f32.vlgmr.msra.gmra.mrb[26].mxu1 %vm2545_vm8, %v3016_v11 }
0x3f6c   :  { %4657 = vmatpush3.bf16.msra.mxu1 %v5509_v23  ;;  %4468 = vmatprep.mubr.msk.f32.mxu1 %vm4981_vm2, %v4980_v5 }
0x3f6d   :  { %4661 = vmatprep.subr.bf16.mxu1 %v4979_v3 }
0x403e   :  { %v3085_v18 = vpop.f32.mrb[26].mxu1 }
0x403f   :  { %v3089_v20 = vadd.f32 %v3085_v18, %v5612_v34  ;;  %v4456_v21 = vpop.f32.mrb[27].mxu1 }
0x4041   :  { %4907 = vtanh.f32 %v3089_v20  ;;  %v3988_v62 = vmul.f32 -1.442695, %v3089_v20 }
0x4043   :  { %4909 = vpow2.f32 %v3988_v62 }
0x404b   :  { %v4908_v22 = vpop.eup %4907 }
0x404c   :  { %3102 = vrot.lane.b32.xlu0 %v4908_v22, %s4984_s21 }
0x404d   :  { %v4910_v1 = vpop.eup %4909 }
0x404e   :  { %v3093_v24 = vadd.f32 1.0, %v4910_v1 }
0x4050   :  { %4911 = vrcp.f32 %v3093_v24 }
0x405a   :  { %v4912_v2 = vpop.eup %4911 }
0x405b   :  { %v3100_v35 = vmul.f32 %v4912_v2, %v3098_v33 }
0x40be   :  { %v3103_v27 = vpop.permute.xlu0 %3102 }
0x40bf   :  { %v3105_v28 = vmul.f32 %v4912_v2, %v3103_v27 }
0x40c1   :  { %3107 = vrot.lane.b32.xlu1 %v3105_v28, %s4985_s10 }
0x4133   :  { %v3108_v13 = vpop.permute.xlu1 %3107 }
0x4134   :  { %v3110_v7 = vadd.f32 %v3108_v13, %v3100_v35 }
0x4136   :  { %4913 = vtanh.f32 %v3110_v7  ;;  %v3216_v50 = vrot.slane %v3110_v7, 6 }
0x4140   :  { %v4914_v36 = vpop.eup %4913 }
0x4141   :  { %3113 = vrot.lane.b32.xlu0 %v4914_v36, %s4983_s4 }
0x41b3   :  { %v3114_v49 = vpop.permute.xlu0 %3113 }
0x41b4   :  { %v5618_v38 = vmul.f32 %v4912_v2, %v3114_v49 }
0x41b6   :  { %3130 = vrot.lane.b32.xlu1 %v5618_v38, %s4986_s22 }
0x4228   :  { %v3131_v39 = vpop.permute.xlu1 %3130 }
0x4229   :  { %4462 = vmatmul.mubr.msk.f32.vlgmr.msra.gmra.mrb[40].mxu0 %vm2545_vm8, %v3131_v39 }
0x422a   :  { %4660 = vmatpush3.bf16.msra.mxu0 %v5509_v23  ;;  %4475 = vmatprep.mubr.msk.f32.mxu0 %vm4981_vm2, %v4980_v5 }
0x422b   :  { %4664 = vmatprep.subr.bf16.mxu0 %v4979_v3 }
0x42fc   :  { %v3200_v41 = vpop.f32.mrb[40].mxu0 }
0x42fd   :  { %v3205_v54 = vrot.slane %v3200_v41, 6  ;;  %v4463_v4 = vpop.f32.mrb[41].mxu0 }
0x42ff   :  { %v3207_v61 = vadd.f32 %v3205_v54, %v5612_v34 }
0x4301   :  { %4915 = vtanh.f32 %v3207_v61  ;;  %v3990_v44 = vmul.f32 -1.442695, %v3207_v61 }
0x4303   :  { %4917 = vpow2.f32 %v3990_v44  ;;  %v2542_v44 = vadd.f32 %v5530_v25, %v5596_v53 }
0x430b   :  { %v4916_v43 = vpop.eup %4915 }
0x430c   :  { %3220 = vrot.lane.b32.xlu0 %v4916_v43, %s4984_s21 }
0x430d   :  { %v4918_v37 = vpop.eup %4917 }
0x430e   :  { %v3211_v32 = vadd.f32 1.0, %v4918_v37 }
0x4310   :  { %4919 = vrcp.f32 %v3211_v32 }
0x431a   :  { %v4920_v47 = vpop.eup %4919 }
0x431b   :  { %v3218_v31 = vmul.f32 %v4920_v47, %v3216_v50 }
0x437e   :  { %v3221_v29 = vpop.permute.xlu0 %3220 }
0x437f   :  { %v3223_v48 = vmul.f32 %v4920_v47, %v3221_v29 }
0x4381   :  { %3225 = vrot.lane.b32.xlu1 %v3223_v48, %s4985_s10 }
0x43f3   :  { %v3226_v16 = vpop.permute.xlu1 %3225 }
0x43f4   :  { %v3228_v51 = vadd.f32 %v3226_v16, %v3218_v31 }
0x43f6   :  { %4921 = vtanh.f32 %v3228_v51  ;;  %v3336_v12 = vrot.slane %v3228_v51, 6 }
0x4400   :  { %v4922_v52 = vpop.eup %4921 }
0x4401   :  { %3231 = vrot.lane.b32.xlu0 %v4922_v52, %s4983_s4 }
0x4473   :  { %v3232_v9 = vpop.permute.xlu0 %3231 }
0x4474   :  { %v5631_v55 = vmul.f32 %v4920_v47, %v3232_v9 }
0x4476   :  { %v3249_v56 = vrot.slane %v5631_v55, 2 }
0x4478   :  { %3250 = vrot.lane.b32.xlu1 %v3249_v56, %s4986_s22 }
0x44ea   :  { %v3251_v57 = vpop.permute.xlu1 %3250 }
0x44eb   :  { %4469 = vmatmul.mubr.msk.f32.vlgmr.msra.gmra.mrb[28].mxu1 %vm2545_vm8, %v3251_v57 }
0x44ec   :  { %4663 = vmatpush3.bf16.msra.mxu1 %v5509_v23  ;;  %4482 = vmatprep.mubr.msk.f32.mxu1 %vm4981_vm2, %v4980_v5 }
0x44ed   :  { %4667 = vmatprep.subr.bf16.mxu1 %v4979_v3 }
0x45be   :  { %v3320_v40 = vpop.f32.mrb[28].mxu1 }
0x45bf   :  { %v3325_v58 = vrot.slane %v3320_v40, 4  ;;  %v4470_v59 = vpop.f32.mrb[29].mxu1 }
0x45c1   :  { %v3327_v63 = vadd.f32 %v3325_v58, %v5612_v34 }
0x45c3   :  { %4923 = vtanh.f32 %v3327_v63  ;;  %v3992_v60 = vmul.f32 -1.442695, %v3327_v63 }
0x45c5   :  { %4925 = vpow2.f32 %v3992_v60 }
0x45cd   :  { %v4924_v0 = vpop.eup %4923 }
0x45ce   :  { %3340 = vrot.lane.b32.xlu0 %v4924_v0, %s4984_s21 }
0x45cf   :  { %v4926_v6 = vpop.eup %4925 }
0x45d0   :  { %v3331_v8 = vadd.f32 1.0, %v4926_v6 }
0x45d2   :  { %4927 = vrcp.f32 %v3331_v8 }
0x45dc   :  { %v4928_v10 = vpop.eup %4927 }
0x45dd   :  { %v3338_v30 = vmul.f32 %v4928_v10, %v3336_v12  ;;  %v4987_v12 = vmov 1983009808  }
0x4640   :  { %v3341_v42 = vpop.permute.xlu0 %3340 }
0x4641   :  { %v3343_v26 = vmul.f32 %v4928_v10, %v3341_v42 }
0x4643   :  { %3345 = vrot.lane.b32.xlu1 %v3343_v26, %s4985_s10 }
0x46b5   :  { %v3346_v15 = vpop.permute.xlu1 %3345 }
0x46b6   :  { %v3348_v19 = vadd.f32 %v3346_v15, %v3338_v30  ;;  %v2645_v30 = vunpack.c.l.s4 %v4987_v12  ;;  %v2647_v15 = vlaneseq  ;;  %v3726_v12 = vld [vmem:[%s5837_s11 + $0x10] sm:$0xff] }
0x46b8   :  { %4929 = vtanh.f32 %v3348_v19  ;;  %v3456_v36 = vrot.slane %v3348_v19, 6  ;;  %v2646_v19 = vunpack.c.0.s8 %v2645_v30 }
0x46c2   :  { %v4930_v11 = vpop.eup %4929 }
0x46c3   :  { %3351 = vrot.lane.b32.xlu0 %v4930_v11, %s4983_s4  ;;  %v2648_v11 = vshrl.u32 %v2647_v15, 7  ;;  %v3727_v15 = vld [vmem:[%s5837_s11 + $0x18] sm:$0xff] }
0x4735   :  { %v3352_v18 = vpop.permute.xlu0 %3351 }
0x4736   :  { %v5644_v20 = vmul.f32 %v4928_v10, %v3352_v18 }
0x4738   :  { %v3369_v21 = vrot.slane %v5644_v20, 4 }
0x473a   :  { %3370 = vrot.lane.b32.xlu1 %v3369_v21, %s4986_s22 }
0x47ac   :  { %v3371_v22 = vpop.permute.xlu1 %3370 }
0x47ad   :  { %4476 = vmatmul.mubr.msk.f32.vlgmr.msra.gmra.mrb[42].mxu0 %vm2545_vm8, %v3371_v22  ;;  %v5674_v22 = vsub.s32 %v2646_v19, %v2648_v11  ;;  %v3748_v19 = vld [vmem:[%s5838_s12 + $0x90] sm:$0xff]  ;;  %v3749_v11 = vld [vmem:[%s5838_s12 + $0x98] sm:$0xff] }
0x47ae   :  { %4666 = vmatpush3.bf16.msra.mxu0 %v5509_v23  ;;  %4489 = vmatprep.mubr.msk.f32.mxu0 %vm4981_vm2, %v4980_v5 }
0x47af   :  { %4697 = vmatprep.subr.bf16.mxu0 %v4979_v3 }
0x4880   :  { %v3440_v62 = vpop.f32.mrb[42].mxu0 }
0x4881   :  { %v3445_v1 = vrot.slane %v3440_v62, 2  ;;  %v4477_v24 = vpop.f32.mrb[43].mxu0 }
0x4882   :  { %v2882_v24 = vcombine.high %v5579_v45, %v5579_v45 }
0x4883   :  { %v3447_v2 = vadd.f32 %v3445_v1, %v5612_v34  ;;  %v2650_v1 = vrot.slane %v5539_v46, %v5674_v22 }
0x4885   :  { %4931 = vtanh.f32 %v3447_v2  ;;  %v3994_v28 = vmul.f32 -1.442695, %v3447_v2  ;;  %v2889_v2 = vrot.slane %v2882_v24, %v5674_v22 }
0x4887   :  { %4933 = vpow2.f32 %v3994_v28 }
0x488f   :  { %v4932_v27 = vpop.eup %4931 }
0x4890   :  { %3460 = vrot.lane.b32.xlu0 %v4932_v27, %s4984_s21  ;;  %v3242_v27 = vrot.slane %v5631_v55, %v5674_v22 }
0x4891   :  { %v4934_v33 = vpop.eup %4933 }
0x4892   :  { %v3451_v35 = vadd.f32 1.0, %v4934_v33  ;;  %v3243_v28 = vcombine.high %v3242_v27, %v3242_v27 }
0x4894   :  { %4935 = vrcp.f32 %v3451_v35 }
0x489e   :  { %v4936_v23 = vpop.eup %4935 }
0x489f   :  { %v3458_v49 = vmul.f32 %v4936_v23, %v3456_v36 }
0x4902   :  { %v3461_v13 = vpop.permute.xlu0 %3460 }
0x4903   :  { %v3463_v7 = vmul.f32 %v4936_v23, %v3461_v13 }
0x4905   :  { %3465 = vrot.lane.b32.xlu1 %v3463_v7, %s4985_s10  ;;  %v2768_v7 = vrot.slane %v5554_v14, %v5674_v22  ;;  %v3732_v14 = vld [vmem:[%s5838_s12 + $0x10] sm:$0xff] }
0x4977   :  { %v3466_v39 = vpop.permute.xlu1 %3465 }
0x4978   :  { %v3468_v41 = vadd.f32 %v3466_v39, %v3458_v49  ;;  %v2769_v39 = vcombine.high %v2768_v7, %v2768_v7 }
0x497a   :  { %4937 = vtanh.f32 %v3468_v41  ;;  %v3574_v9 = vrot.slane %v3468_v41, 6 }
0x4984   :  { %v4938_v34 = vpop.eup %4937 }
0x4985   :  { %3471 = vrot.lane.b32.xlu0 %v4938_v34, %s4983_s4  ;;  %v3730_v34 = vld [vmem:[%s5838_s12] sm:$0xff] }
0x49f7   :  { %v3472_v54 = vpop.permute.xlu0 %3471 }
0x49f8   :  { %v5657_v4 = vmul.f32 %v4936_v23, %v3472_v54  ;;  %v3731_v54 = vld [vmem:[%s5838_s12 + $0x8] sm:$0xff] }
0x49fa   :  { %v3490_v61 = vrot.slane %v5657_v4, 6 }
0x49fc   :  { %3491 = vrot.lane.b32.xlu1 %v3490_v61, %s4986_s22  ;;  %v4668_v61 = vpack.c.bf16 %v3731_v54, %v3730_v34 }
0x4a6e   :  { %v3492_v43 = vpop.permute.xlu1 %3491 }
0x4a6f   :  { %4483 = vmatmul.mubr.msk.f32.vlgmr.msra.gmra.mrb[30].mxu1 %vm2545_vm8, %v3492_v43  ;;  %v3733_v43 = vld [vmem:[%s5838_s12 + $0x18] sm:$0xff] }
0x4a70   :  { %4669 = vmatpush1.bf16.msra.mxu1 %v4668_v61 }
0x4a71   :  { %4670 = vmatprep.subr.bf16.mxu1 %v4979_v3 }
0x4b42   :  { %v3561_v37 = vpop.f32.mrb[30].mxu1 }
0x4b43   :  { %v3565_v32 = vadd.f32 %v3561_v37, %v2542_v44  ;;  %v4484_v47 = vpop.f32.mrb[31].mxu1  ;;  %v3356_v37 = vcombine.high %v5644_v20, %v5644_v20 }
0x4b44   :  { %v4671_v47 = vpack.c.bf16 %v3733_v43, %v3732_v14 }
0x4b45   :  { %4939 = vtanh.f32 %v3565_v32  ;;  %v3996_v48 = vmul.f32 -1.442695, %v3565_v32  ;;  %v3476_v32 = vcombine.high %v5657_v4, %v5657_v4 }
0x4b46   :  { %4672 = vmatpush1.bf16.msra.mxu1 %v4671_v47 }
0x4b47   :  { %4941 = vpow2.f32 %v3996_v48  ;;  %v3735_v48 = vld [vmem:[%s5838_s12 + $0x28] sm:$0xff]  ;;  %v3483_v20 = vrot.slane %v3476_v32, %v5674_v22  ;;  %4673 = vmatprep.subr.bf16.mxu1 %v4979_v3 }
0x4b4f   :  { %v4940_v29 = vpop.eup %4939 }
0x4b50   :  { %3578 = vrot.lane.b32.xlu0 %v4940_v29, %s4984_s21  ;;  %v3734_v29 = vld [vmem:[%s5838_s12 + $0x20] sm:$0xff] }
0x4b51   :  { %v4942_v50 = vpop.eup %4941  ;;  %v4674_v4 = vpack.c.bf16 %v3735_v48, %v3734_v29 }
0x4b52   :  { %v3569_v31 = vadd.f32 1.0, %v4942_v50  ;;  %v3736_v50 = vld [vmem:[%s5838_s12 + $0x30] sm:$0xff] }
0x4b53   :  { %4675 = vmatpush1.bf16.msra.mxu1 %v4674_v4 }
0x4b54   :  { %4943 = vrcp.f32 %v3569_v31  ;;  %v3737_v31 = vld [vmem:[%s5838_s12 + $0x38] sm:$0xff]  ;;  %4676 = vmatprep.subr.bf16.mxu1 %v4979_v3 }
0x4b5e   :  { %v4944_v16 = vpop.eup %4943 }
0x4b5f   :  { %v3576_v56 = vmul.f32 %v4944_v16, %v3574_v9  ;;  %v3739_v9 = vld [vmem:[%s5838_s12 + $0x48] sm:$0xff] }
0x4bc2   :  { %v3579_v51 = vpop.permute.xlu0 %3578 }
0x4bc3   :  { %v3581_v52 = vmul.f32 %v4944_v16, %v3579_v51  ;;  %v4677_v51 = vpack.c.bf16 %v3737_v31, %v3736_v50 }
0x4bc5   :  { %3583 = vrot.lane.b32.xlu1 %v3581_v52, %s4985_s10  ;;  %v3738_v52 = vld [vmem:[%s5838_s12 + $0x40] sm:$0xff]  ;;  %4678 = vmatpush1.bf16.msra.mxu1 %v4677_v51 }
0x4bc6   :  { %4679 = vmatprep.subr.bf16.mxu1 %v4979_v3 }
0x4c37   :  { %v3584_v25 = vpop.permute.xlu1 %3583 }
0x4c38   :  { %v3586_v53 = vadd.f32 %v3584_v25, %v3576_v56  ;;  %v4680_v56 = vpack.c.bf16 %v3739_v9, %v3738_v52  ;;  %v3740_v25 = vld [vmem:[%s5838_s12 + $0x50] sm:$0xff] }
0x4c3a   :  { %4945 = vtanh.f32 %v3586_v53  ;;  %v3691_v46 = vrot.slane %v3586_v53, 6  ;;  %v3741_v53 = vld [vmem:[%s5838_s12 + $0x58] sm:$0xff]  ;;  %4681 = vmatpush1.bf16.msra.mxu1 %v4680_v56 }
0x4c3b   :  { %4682 = vmatprep.subr.bf16.mxu1 %v4979_v3 }
0x4c44   :  { %v4946_v57 = vpop.eup %4945 }
0x4c45   :  { %3589 = vrot.lane.b32.xlu0 %v4946_v57, %s4983_s4  ;;  %v4683_v57 = vpack.c.bf16 %v3741_v53, %v3740_v25 }
0x4c47   :  { %4684 = vmatpush1.bf16.msra.mxu1 %v4683_v57 }
0x4c48   :  { %4685 = vmatprep.subr.bf16.mxu1 %v4979_v3 }
0x4cb7   :  { %v3590_v40 = vpop.permute.xlu0 %3589 }
0x4cb8   :  { %v3592_v58 = vmul.f32 %v4944_v16, %v3590_v40  ;;  %v3484_v16 = vcombine.high %v3483_v20, %v3483_v20  ;;  %v3742_v40 = vld [vmem:[%s5838_s12 + $0x60] sm:$0xff] }
0x4cba   :  { %3605 = vrot.lane.b32.xlu1 %v3592_v58, %s4986_s22  ;;  %v3600_v33 = vrot.slane %v3592_v58, %v5674_v22  ;;  %v3743_v58 = vld [vmem:[%s5838_s12 + $0x68] sm:$0xff] }
0x4d2c   :  { %v3606_v59 = vpop.permute.xlu1 %3605 }
0x4d2d   :  { %4490 = vmatmul.mubr.msk.f32.vlgmr.msra.gmra.mrb[44].mxu0 %vm2545_vm8, %v3606_v59  ;;  %v4686_v59 = vpack.c.bf16 %v3743_v58, %v3742_v40 }
0x4d2e   :  { %4502 = vmatprep.mubr.msk.f32.mxu0 %vm4981_vm2, %v4980_v5 }
0x4d2f   :  { %4687 = vmatpush1.bf16.msra.mxu1 %v4686_v59 }
0x4d30   :  { %4688 = vmatprep.subr.bf16.mxu1 %v4979_v3 }
0x4e00   :  { %v3675_v63 = vpop.f32.mrb[44].mxu0 }
0x4e01   :  { %v3680_v0 = vrot.slane %v3675_v63, 6  ;;  %v4491_v60 = vpop.f32.mrb[45].mxu0  ;;  %v3744_v63 = vld [vmem:[%s5838_s12 + $0x70] sm:$0xff] }
0x4e03   :  { %v3682_v6 = vadd.f32 %v3680_v0, %v2542_v44  ;;  %v3124_v44 = vrot.slane %v5618_v38, %v5674_v22  ;;  %v3363_v38 = vrot.slane %v3356_v37, %v5674_v22  ;;  %v3745_v0 = vld [vmem:[%s5838_s12 + $0x78] sm:$0xff] }
0x4e04   :  { %v4689_v60 = vpack.c.bf16 %v3745_v0, %v3744_v63 }
0x4e05   :  { %4947 = vtanh.f32 %v3682_v6  ;;  %v3998_v10 = vmul.f32 -1.442695, %v3682_v6  ;;  %v3724_v6 = vld [vmem:[%s5837_s11] sm:$0xff] }
0x4e06   :  { %4690 = vmatpush1.bf16.msra.mxu1 %v4689_v60 }
0x4e07   :  { %4949 = vpow2.f32 %v3998_v10  ;;  %4691 = vmatprep.subr.bf16.mxu1 %v4979_v3 }
0x4e0f   :  { %v4948_v8 = vpop.eup %4947 }
0x4e10   :  { %3695 = vrot.lane.b32.xlu0 %v4948_v8, %s4984_s21  ;;  %v3725_v8 = vld [vmem:[%s5837_s11 + $0x8] sm:$0xff] }
0x4e11   :  { %v4950_v42 = vpop.eup %4949  ;;  %v4698_v10 = vpack.c.bf16 %v3725_v8, %v3724_v6 }
0x4e12   :  { %v3686_v26 = vadd.f32 1.0, %v4950_v42  ;;  %v3746_v42 = vld [vmem:[%s5838_s12 + $0x80] sm:$0xff] }
0x4e13   :  { %4699 = vmatpush3.bf16.msra.mxu0 %v4698_v10 }
0x4e14   :  { %4951 = vrcp.f32 %v3686_v26  ;;  %v3747_v26 = vld [vmem:[%s5838_s12 + $0x88] sm:$0xff]  ;;  %4700 = vmatprep.subr.bf16.mxu0 %v4979_v3 }
0x4e15   :  { %v4692_v30 = vpack.c.bf16 %v3747_v26, %v3746_v42 }
0x4e17   :  { %4693 = vmatpush1.bf16.msra.mxu1 %v4692_v30 }
0x4e18   :  { %4694 = vmatprep.subr.bf16.mxu1 %v4979_v3  ;;  %v3723_v3 = vld [vmem:[%s5827_s1] sm:$0x3] }
0x4e1e   :  { %v5672_v18 = vpop.eup %4951 }
0x4e1f   :  { %v3693_v35 = vmul.f32 %v5672_v18, %v3691_v46 }
0x4e82   :  { %v3696_v21 = vpop.permute.xlu0 %3695 }
0x4e83   :  { %v3698_v62 = vmul.f32 %v5672_v18, %v3696_v21  ;;  %v4701_v21 = vpack.c.bf16 %v3727_v15, %v3726_v12 }
0x4e85   :  { %3700 = vrot.lane.b32.xlu1 %v3698_v62, %s4985_s10  ;;  %v3002_v62 = vcombine.high %v5602_v17, %v5602_v17  ;;  %4702 = vmatpush3.bf16.msra.mxu0 %v4701_v21 }
0x4e86   :  { %4500 = vmatprep.subr.mxu0 %v4980_v5 }
0x4e87   :  { %v3009_v27 = vrot.slane %v3002_v62, %v5674_v22 }
0x4e89   :  { %2651 = vrot.lane.b32.xlu1 %v2650_v1, %s4986_s22  ;;  %v4695_v1 = vpack.c.bf16 %v3749_v11, %v3748_v19 }
0x4e8b   :  { %4696 = vmatpush1.bf16.msra.mxu1 %v4695_v1 }
0x4e8d   :  { %2890 = vrot.lane.b32.xlu1 %v2889_v2, %s4988_s23  ;;  %v3728_v2 = vld [vmem:[%s5837_s11 + $0x20] sm:$0xff] }
0x4e8e   :  { %4501 = vmatpush3.msra.mxu0 %v3728_v2 }
0x4e8f   :  { %4503 = vmatmul.mubr.msk.f32.vlgmr.msra.gmra.mrb[46].mxu0 %vm3832_vm12, %v3723_v3 }
0x4e91   :  { %3244 = vrot.lane.b32.xlu1 %v3243_v28, %s4983_s4 }
0x4e95   :  { %3601 = vrot.lane.b32.xlu1 %v3600_v33, %s4986_s22  ;;  %v3010_v33 = vcombine.high %v3009_v27, %v3009_v27 }
0x4ef7   :  { %v3701_v45 = vpop.permute.xlu1 %3700 }
0x4ef8   :  { %v3703_v23 = vadd.f32 %v3701_v45, %v3693_v35 }
0x4efa   :  { %4953 = vtanh.f32 %v3703_v23 }
0x4efb   :  { %v2652_v13 = vpop.permute.xlu1 %2651 }
0x4efc   :  { %2655 = vst.msk [vmem:[#allocation4] sm:$0x3] %vm2654_vm9, %v2652_v13 }
0x4eff   :  { %v5691_v55 = vpop.permute.xlu1 %2890 }
0x4f03   :  { %v5695_v36 = vpop.permute.xlu1 %3244 }
0x4f04   :  { %v4954_v49 = vpop.eup %4953 }
0x4f05   :  { %3706 = vrot.lane.b32.xlu0 %v4954_v49, %s4983_s4 }
0x4f07   :  { %v3602_v41 = vpop.permute.xlu1 %3601 }
0x4f08   :  { %3604 = vst.msk [vmem:[#allocation4 + $0x2] sm:$0x3] %vm2654_vm9, %v3602_v41 }
0x4f09   :  { %2770 = vrot.lane.b32.xlu0 %v2769_v39, %s4984_s21 }
0x4f0d   :  { %3125 = vrot.lane.b32.xlu0 %v3124_v44, %s4985_s10 }
0x4f11   :  { %3364 = vrot.lane.b32.xlu0 %v3363_v38, %s4989_s18 }
0x4f15   :  { %3485 = vrot.lane.b32.xlu0 %v3484_v16, %s4982_s25 }
0x4f77   :  { %v3707_v24 = vpop.permute.xlu0 %3706 }
0x4f78   :  { %v3709_v28 = vmul.f32 %v5672_v18, %v3707_v24 }
0x4f7a   :  { %v3717_v17 = vrot.slane %v3709_v28, %v5674_v22 }
0x4f7b   :  { %v2771_v5 = vpop.permute.xlu0 %2770 }
0x4f7c   :  { %v3718_v46 = vcombine.high %v3717_v17, %v3717_v17  ;;  %2774 = vst.msk [vmem:[#allocation4] sm:$0x3] %vm2773_vm10, %v2771_v5 }
0x4f7d   :  { %2894 = vst.msk [vmem:[#allocation4] sm:$0x3] %vm2893_vm11, %v5691_v55  ;;  %v3902_v55 = vpop.f32.mrb[46].mxu0 }
0x4f7e   :  { %3719 = vrot.lane.b32.xlu1 %v3718_v46, %s4984_s21  ;;  %3013 = vst.msk [vmem:[#allocation4] sm:$0x3] %vm3012_vm13, %v3010_v33  ;;  %v4504_v7 = vpop.f32.mrb[47].mxu0  ;;  %s4990_s21 = smov [#allocation5]  }
0x4f7f   :  { %v3126_v18 = vpop.permute.xlu0 %3125  ;;  %s3921_s25 = sshll.u32 %s4990_s21, 4  ;;  %s3922_s25 = int_to_ptr.vmem [resolvable:$true] %s3921_s25 }
0x4f80   :  { %3129 = vst.msk [vmem:[#allocation4] sm:$0x3] %vm3128_vm14, %v3126_v18  ;;  %s4955_s26 = scalar_lea.vmem %s3922_s25, 32  ;;  %p4960_p1 = scmp.lt.s32.totalorder %s3922_s25, %s3922_s25 }
0x4f81   :  { %3248 = vst.msk [vmem:[#allocation4] sm:$0x3] %vm3247_vm15, %v5695_v36  ;;  %v4002_v36 = vld [vmem:[%s5839_s13] ss:$0 sm:$0xff]  ;;  %p4956_p0 = scmp.ne.s32.totalorder %s3922_s25, %s4955_s26  ;;  %p4961_p2 = scmp.lt.s32.totalorder %s4955_s26, %s4955_s26 }
0x4f83   :  { %v3365_v22 = vpop.permute.xlu0 %3364  ;;  %p4962_p3 = por %p4961_p2, %p4960_p1 }
0x4f84   :  { %3368 = vst.msk [vmem:[#allocation4] sm:$0x3] %vm3367_vm0, %v3365_v22 }
0x4f85   :  { %p4963_p4 = pnand %p4962_p3, %p4956_p0 }
0x4f87   :  { %v3486_v35 = vpop.permute.xlu0 %3485 }
0x4f88   :  { %3489 = vst.msk [vmem:[#allocation4] sm:$0x3] %vm3488_vm1, %v3486_v35 }
0x4ff0   :  { %v3720_v45 = vpop.permute.xlu1 %3719 }
0x4ff1   :  { %3722 = vst.msk [vmem:[#allocation4 + $0x2] sm:$0x3] %vm2773_vm10, %v3720_v45 }
0x4ff8   :  { %v3999_v23 = vld.sshfl [vmem:[#allocation4] sm:$0x33 pattern:$0x76325410] }
0x4ff9   :  { %v3758_v13 = vcombine.high %v3999_v23, %v3999_v23 }
0x4ffb   :  { %4000 = vmatprep.mubr.msk.f32.mxu1 %vm157_vm4, %v3758_v13 }
0x4ffc   :  { %3827 = vmatmul.mubr.f32.vlgmr.msra.gmra.mrb[32].mxu1 %v3999_v23 }
0x50cf   :  { %v3828_v49 = vpop.f32.mrb[32].mxu1 }
0x50d0   :  { %v3903_v39 = vadd.f32 %v3902_v55, %v3828_v49  ;;  %v3830_v41 = vpop.f32.mrb[33].mxu1 }
0x50d2   :  { %v3913_v34 = vadd.f32 %v4002_v36, %v3903_v39 }
0x50d4   :  { %3914 = vst.msk [vmem:[#allocation5] sm:$0x3] %vm2654_vm9, %v3913_v34 }
0x50d5   :  { %4966 = shalt.err (!%p4963_p4)
}
0x50d6   :  { %s4967_s4 = scalar_lea.hbm %s5840_s14, 32 }
0x50d7   :  { %p4968_p5 = scmp.ne.s32.totalorder %s5840_s14, %s4967_s4  ;;  %p4971_p6 = scmp.lt.u32.totalorder %s4967_s4, %s5840_s14 }
0x50d9   :  { %p4973_p7 = pnand %p4971_p6, %p4968_p5 }
0x50db   :  { %4976 = shalt.err (!%p4973_p7)
}
0x50dc   :  { %3924 = dma.vmem_to_hbm [thread:$0]  %s3922_s25, 32, %s5840_s14, [#allocation6]  }
0x50dd   :  { %4977 = dma.done.wait [#allocation6], 32  }
0x50de   :  { %4978 = vsyncadd [#allocation6], 4294967264 }
0x50df   :  { %3928 = vsyncpa [#allocation6], 1 }

</bundles_post_ra>
